<compile_context>
chip_gen: v6e
topology: v6e:2x2x1
jax: 0.10.0
libtpu: 0.0.40
codegen_flags: <defaults>
</compile_context>

<pallas_src>
import numpy as np
import jax
import jax.numpy as jnp
from jax import lax
from jax.experimental import pallas as pl
from jax.experimental.pallas import tpu as pltpu

N_BUF = 2  # double-buffer slots for the streamed w_ih chunks


# ----------------------------------------------------------------------------
# Host-side constant selector matrices (precomputed once -- never rebuilt
# inside the kernel).
# ----------------------------------------------------------------------------
def _even_col_selector(n):
    """(n, n//2) 0/1 matrix picking even columns (right-multiply)."""
    s = np.zeros((n, n // 2), np.float32)
    s[2 * np.arange(n // 2), np.arange(n // 2)] = 1.0
    return s


def _even_row_selector(n):
    """(n//2, n) 0/1 matrix picking even rows (left-multiply)."""
    s = np.zeros((n // 2, n), np.float32)
    s[np.arange(n // 2), 2 * np.arange(n // 2)] = 1.0
    return s


def _flatten_selectors(c, hp, wp):
    """CHW flatten of the pooled (c*hp, wp) slab into a (1, c*hp*wp) row.

    Element order is identical to torch .view() of the NCHW conv output:
    f = chan*hp*wp + y*wp + x.
    """
    f = np.arange(c * hp * wp)
    x_of = f % wp
    row_of = (f // (hp * wp)) * hp + (f // wp) % hp
    fsel = np.zeros((wp, f.size), np.float32)
    fsel[x_of, f] = 1.0           # g = pooled @ fsel  ->  g[r, f] = pooled[r, x(f)]
    rpick = np.zeros((c * hp, f.size), np.float32)
    rpick[row_of, f] = 1.0        # feat[f] = sum_r g[r, f] * rpick[r, f]
    return fsel, rpick


# ----------------------------------------------------------------------------
# In-kernel helpers (traced inline; all shapes are static Python ints)
# ----------------------------------------------------------------------------
def _tree_sum(terms):
    """Balanced pairwise sum (short VALU dependency chains)."""
    while len(terms) > 1:
        nxt = [a + b for a, b in zip(terms[0::2], terms[1::2])]
        if len(terms) % 2:
            nxt.append(terms[-1])
        terms = nxt
    return terms[0]


def _shifted_slabs(slab, cin, h, w):
    """All 9 zero-padded 3x3 shifts of a channel-stacked (cin*h, w) slab.

    Shifts are XLU rolls + one-vreg edge masks; no shift matmuls and no big
    iota-built matrices.  h must be a power of two (true for 32/16 here and
    128/64 at the real model size).
    """
    f32 = jnp.float32
    li = lax.broadcasted_iota(jnp.int32, (1, w), 1)
    cmask = {-1: (li != 0).astype(f32), 1: (li != w - 1).astype(f32)}
    ri = lax.broadcasted_iota(jnp.int32, (cin * h, 1), 0)
    rloc = jnp.bitwise_and(ri, h - 1)
    rmask = {-1: (rloc != 0).astype(f32), 1: (rloc != h - 1).astype(f32)}

    def col(s, dw):      # out[:, x] = s[:, x + dw], zero padded
        if dw == 0:
            return s
        return pltpu.roll(s, shift=(-dw) % w, axis=1) * cmask[dw]

    def row(s, dh):      # out[r, :] = s[r + dh, :], zero padded per channel block
        if dh == 0:
            return s
        return pltpu.roll(s, shift=(-dh) % (cin * h), axis=0) * rmask[dh]

    cols = {dw: col(slab, dw) for dw in (-1, 0, 1)}
    return {(kh, kw): row(cols[kw - 1], kh - 1)
            for kh in range(3) for kw in range(3)}


def _conv3x3_relu(slab, cin, cout, h, w, w_ref, b_ref):
    """3x3 conv (padding=1) + bias + ReLU on a channel-stacked (cin*h, w) slab.

    Channel mixing = scalar-weight FMAs on the VPU (weights read from SMEM),
    summed as a balanced tree.  Returns a (cout*h, w) channel-stacked slab.
    """
    shifted = _shifted_slabs(slab, cin, h, w)
    # hoist the per-(kh,kw,ci) aligned sublane blocks (reused by every co)
    blk = {(kh, kw, ci): shifted[(kh, kw)][ci * h:(ci + 1) * h, :]
           for kh in range(3) for kw in range(3) for ci in range(cin)}
    outs = []
    for co in range(cout):
        terms = [w_ref[((co * cin + ci) * 3 + kh) * 3 + kw] * blk[(kh, kw, ci)]
                 for ci in range(cin) for kh in range(3) for kw in range(3)]
        outs.append(jnp.maximum(_tree_sum(terms) + b_ref[co], 0.0))
    return outs[0] if cout == 1 else jnp.concatenate(outs, axis=0)


def _maxpool2x2(slab, csel_ref, rsel_ref):
    """2x2 / stride-2 max pool on a channel-stacked slab.

    roll + pair-max per axis, then one precomputed bf16 even-index selector
    matmul per axis (the wrapped / cross-channel rows+cols land only on odd
    indices, which the selectors discard).
    """
    f32, bf16 = jnp.float32, jnp.bfloat16
    rows, cols = slab.shape
    cm = jnp.maximum(slab, pltpu.roll(slab, shift=cols - 1, axis=1))
    cm = jnp.dot(cm.astype(bf16), csel_ref[...], preferred_element_type=f32)
    rm = jnp.maximum(cm, pltpu.roll(cm, shift=rows - 1, axis=0))
    return jnp.dot(rsel_ref[...], rm.astype(bf16), preferred_element_type=f32)


def _flatten_chw(pooled, fsel_ref, rpick_ref):
    """(c*hp, wp) pooled slab -> lane-dense (1, c*hp*wp) CHW feature row.

    One precomputed bf16 selector matmul + masked sublane reduce; no transpose.
    """
    g = jnp.dot(pooled.astype(jnp.bfloat16), fsel_ref[...],
                preferred_element_type=jnp.float32)          # (c*hp, F)
    return jnp.sum(g * rpick_ref[...], axis=0, keepdims=True)  # (1, F)


# ----------------------------------------------------------------------------
# The single fused kernel: CNN -> LSTM cell -> FC head
# ----------------------------------------------------------------------------
def dino_fused_kernel(c1w, c1b, c2w, c2b,
                      x_ref, h0_ref, c0_ref,
                      csel1, rsel1, csel2, rsel2, fsel, rpick,
                      wih_hbm, whh_ref, bg_ref,
                      w1_ref, b1_ref, w2_ref, b2_ref, w3_ref, b3_ref,
                      out_ref, hn_ref, cn_ref,
                      wih_buf, wih_sem):
    f32, bf16 = jnp.float32, jnp.bfloat16
    n_chunk = wih_hbm.shape[0]
    n_buf = wih_buf.shape[0]

    def wih_copy(k, slot):
        return pltpu.make_async_copy(wih_hbm.at[k], wih_buf.at[slot],
                                     wih_sem.at[slot])

    # Kick off the bandwidth-dominant w_ih stream immediately so its DMAs
    # overlap the whole CNN stage (double-buffered, chunked along gate cols).
    for k in range(min(n_buf, n_chunk)):
        wih_copy(k, k).start()

    H1, W1 = x_ref.shape
    C1 = c1b.shape[0]
    C2 = c2b.shape[0]
    hid = h0_ref.shape[1]

    # ---- CNN stage 1: conv(1->C1, 3x3, pad=1) + ReLU + maxpool2x2 ----
    a1 = _conv3x3_relu(x_ref[...], 1, C1, H1, W1, c1w, c1b)      # (C1*H1, W1)
    p1 = _maxpool2x2(a1, csel1, rsel1)                           # (C1*H1/2, W1/2)

    # ---- CNN stage 2: conv(C1->C2) + ReLU + maxpool2x2 + CHW flatten ----
    H2, W2 = H1 // 2, W1 // 2
    a2 = _conv3x3_relu(p1, C1, C2, H2, W2, c2w, c2b)             # (C2*H2, W2)
    p2 = _maxpool2x2(a2, csel2, rsel2)                           # (C2*H2/2, W2/2)
    feat = _flatten_chw(p2, fsel, rpick)                         # (1, F) f32
    feat_bf = feat.astype(bf16)

    # ---- LSTM cell, single step, PyTorch gate order (i, f, g, o) ----
    # h-part + combined bias once; x-part streamed chunk-by-chunk so the
    # partial gate matmuls overlap the remaining w_ih DMAs.
    gates = jnp.dot(h0_ref[...].astype(bf16), whh_ref[...],
                    preferred_element_type=f32) + bg_ref[...]
    parts = []
    for k in range(n_chunk):
        slot = k % n_buf
        wih_copy(k, slot).wait()
        parts.append(jnp.dot(feat_bf, wih_buf[slot],
                             preferred_element_type=f32))       # (1, cc)
        if k + n_buf < n_chunk:
            wih_copy(k + n_buf, slot).start()   # refill slot after its matmul
    gates = gates + (parts[0] if n_chunk == 1
                     else jnp.concatenate(parts, axis=1))       # (1, 4*hid)

    def sigmoid(v):   # exp + approx reciprocal -> EUP slots, keeps VALU free
        return pl.reciprocal(1.0 + jnp.exp(-v), approx=True)

    i_g = sigmoid(gates[:, 0 * hid:1 * hid])
    f_g = sigmoid(gates[:, 1 * hid:2 * hid])
    g_g = jnp.tanh(gates[:, 2 * hid:3 * hid])
    o_g = sigmoid(gates[:, 3 * hid:4 * hid])
    c_new = f_g * c0_ref[...] + i_g * g_g
    h_new = o_g * jnp.tanh(c_new)
    cn_ref[...] = c_new
    hn_ref[...] = h_new

    # ---- FC head: Linear+ReLU, Linear+ReLU, Linear ----
    z1 = jnp.maximum(jnp.dot(h_new.astype(bf16), w1_ref[...],
                             preferred_element_type=f32) + b1_ref[...], 0.0)
    z2 = jnp.maximum(jnp.dot(z1, w2_ref[...],
                             preferred_element_type=f32) + b2_ref[...], 0.0)
    out_ref[...] = (jnp.dot(z2, w3_ref[...], preferred_element_type=f32)
                    + b3_ref[...])


# ----------------------------------------------------------------------------
# Wrapper: one pallas_call for the whole forward pass
# ----------------------------------------------------------------------------
def dino_forward(x, h_0, c_0, params, hidden, num_classes, n_chunks=4):
    # x: (1, 1, H, W) NCHW (batch = C_in = 1, as in the module spec).
    x2d = x[0, 0].astype(jnp.float32)
    H, W = x2d.shape
    C1 = int(params["conv1_b"].shape[0])
    C2 = int(params["conv2_b"].shape[0])
    assert H % 4 == 0 and W % 4 == 0
    for hh in (H, H // 2):                   # bitwise row masks need pow2 heights
        assert hh & (hh - 1) == 0
    Hp, Wp = H // 4, W // 4
    feat_dim = C2 * Hp * Wp
    gdim = 4 * hidden
    assert params["w_ih"].shape == (feat_dim, gdim)
    assert gdim % n_chunks == 0 and (gdim // n_chunks) % 128 == 0
    cc = gdim // n_chunks
    n_buf = min(N_BUF, n_chunks)

    # Precomputed constant selectors (bf16 matmul operands, f32 row-pick mask).
    csel1 = jnp.asarray(_even_col_selector(W), jnp.bfloat16)
    rsel1 = jnp.asarray(_even_row_selector(C1 * H), jnp.bfloat16)
    csel2 = jnp.asarray(_even_col_selector(W // 2), jnp.bfloat16)
    rsel2 = jnp.asarray(_even_row_selector(C2 * (H // 2)), jnp.bfloat16)
    fsel_np, rpick_np = _flatten_selectors(C2, Hp, Wp)
    fsel = jnp.asarray(fsel_np, jnp.bfloat16)
    rpick = jnp.asarray(rpick_np, jnp.float32)

    # w_ih chunked along the gate columns; each chunk is contiguous in HBM so
    # every per-chunk DMA is a single contiguous transfer.
    wih_chunks = (params["w_ih"].astype(jnp.bfloat16)
                  .reshape(feat_dim, n_chunks, cc).transpose(1, 0, 2))

    vmem = pl.BlockSpec(memory_space=pltpu.MemorySpace.VMEM)
    smem = pl.BlockSpec(memory_space=pltpu.MemorySpace.SMEM)
    anyspace = pl.BlockSpec(memory_space=pl.ANY)   # stays in HBM; manual DMA

    h4, h16 = hidden // 4, hidden // 16
    flops = (2 * 9 * 1 * C1 * H * W
             + 2 * 9 * C1 * C2 * (H // 2) * (W // 2)
             + 2 * feat_dim * gdim + 2 * hidden * gdim
             + 2 * (hidden * h4 + h4 * h16 + h16 * num_classes))
    bytes_accessed = int(feat_dim * gdim * 2          # w_ih (bf16)
                         + hidden * gdim * 2 + gdim * 4
                         + x2d.size * 4 + 3 * hidden * 4
                         + (hidden * h4 + h4 * h16 + h16 * num_classes) * 4
                         + num_classes * 4)
    cost = pl.CostEstimate(flops=int(flops), transcendentals=6 * hidden,
                           bytes_accessed=bytes_accessed)

    out, h_n, c_n = pl.pallas_call(
        dino_fused_kernel,
        out_shape=(jax.ShapeDtypeStruct((1, num_classes), jnp.float32),
                   jax.ShapeDtypeStruct((1, hidden), jnp.float32),
                   jax.ShapeDtypeStruct((1, hidden), jnp.float32)),
        in_specs=[smem, smem, smem, smem] + [vmem] * 9 + [anyspace] + [vmem] * 8,
        out_specs=(vmem, vmem, vmem),
        scratch_shapes=[pltpu.VMEM((n_buf, feat_dim, cc), jnp.bfloat16),
                        pltpu.SemaphoreType.DMA((n_buf,))],
        compiler_params=pltpu.CompilerParams(
            vmem_limit_bytes=32 * 1024 * 1024),
        cost_estimate=cost,
    )(params["conv1_w"], params["conv1_b"], params["conv2_w"], params["conv2_b"],
      x2d, h_0.reshape(1, hidden), c_0.reshape(1, hidden),
      csel1, rsel1, csel2, rsel2, fsel, rpick,
      wih_chunks, params["w_hh"], params["b_gates"],
      params["fc1_w"], params["fc1_b"], params["fc2_w"], params["fc2_b"],
      params["fc3_w"], params["fc3_b"])
    return (out.reshape(1, 1, num_classes),
            h_n.reshape(1, 1, hidden),
            c_n.reshape(1, 1, hidden))


# ----------------------------------------------------------------------------
# Pure-JAX reference (mirrors the PyTorch module) for a tolerance check
# ----------------------------------------------------------------------------
def dino_reference(x, h_0, c_0, params, hidden, num_classes):
    f32 = jnp.float32
    C1 = int(params["conv1_b"].shape[0])
    C2 = int(params["conv2_b"].shape[0])
    c1w = params["conv1_w"].reshape(C1, 1, 3, 3).astype(f32)
    c2w = params["conv2_w"].reshape(C2, C1, 3, 3).astype(f32)

    def conv(a, w, b):
        y = lax.conv_general_dilated(a, w, (1, 1), "SAME",
                                     dimension_numbers=("NCHW", "OIHW", "NCHW"))
        return jax.nn.relu(y + b.reshape(1, -1, 1, 1))

    def pool(a):
        return lax.reduce_window(a, -jnp.inf, lax.max,
                                 (1, 1, 2, 2), (1, 1, 2, 2), "VALID")

    a = pool(conv(x.astype(f32), c1w, params["conv1_b"]))
    a = pool(conv(a, c2w, params["conv2_b"]))
    feat = a.reshape(1, -1)                                   # CHW flatten
    gates = (feat @ params["w_ih"].astype(f32)
             + h_0.reshape(1, hidden) @ params["w_hh"].astype(f32)
             + params["b_gates"])
    i_g, f_g, g_g, o_g = jnp.split(gates, 4, axis=1)
    i_g, f_g, o_g = jax.nn.sigmoid(i_g), jax.nn.sigmoid(f_g), jax.nn.sigmoid(o_g)
    g_g = jnp.tanh(g_g)
    c_n = f_g * c_0.reshape(1, hidden) + i_g * g_g
    h_n = o_g * jnp.tanh(c_n)
    z1 = jax.nn.relu(h_n @ params["fc1_w"].astype(f32) + params["fc1_b"])
    z2 = jax.nn.relu(z1 @ params["fc2_w"] + params["fc2_b"])
    out = z2 @ params["fc3_w"] + params["fc3_b"]
    return (out.reshape(1, 1, num_classes),
            h_n.reshape(1, 1, hidden),
            c_n.reshape(1, 1, hidden))


# ----------------------------------------------------------------------------
# Deterministic parameter init (PyTorch-style uniform(-1/sqrt(fan_in), ...))
# ----------------------------------------------------------------------------
def init_params(key, hidden, num_classes, cnn_output_size):
    ks = jax.random.split(key, 16)

    def u(k, shape, fan_in):
        bound = 1.0 / float(fan_in) ** 0.5
        return jax.random.uniform(k, shape, jnp.float32, -bound, bound)

    h4, h16 = hidden // 4, hidden // 16
    p = {}
    # Conv weights pre-flattened (C order: co, ci, kh, kw) for SMEM scalar reads.
    p["conv1_w"] = u(ks[0], (2, 1, 3, 3), 1 * 9).reshape(-1)
    p["conv1_b"] = u(ks[1], (2,), 1 * 9)
    p["conv2_w"] = u(ks[2], (4, 2, 3, 3), 2 * 9).reshape(-1)
    p["conv2_b"] = u(ks[3], (4,), 2 * 9)
    # LSTM weights stored transposed (in, 4*hidden), gate order i,f,g,o.
    # Bandwidth-dominant matrices in bf16; combined gate bias precomputed (f32).
    p["w_ih"] = u(ks[4], (cnn_output_size, 4 * hidden), hidden).astype(jnp.bfloat16)
    p["w_hh"] = u(ks[5], (hidden, 4 * hidden), hidden).astype(jnp.bfloat16)
    p["b_gates"] = (u(ks[6], (1, 4 * hidden), hidden)
                    + u(ks[7], (1, 4 * hidden), hidden))
    # FC head (weights transposed to (in, out)); fc1 in bf16, tiny tails in f32.
    p["fc1_w"] = u(ks[8], (hidden, h4), hidden).astype(jnp.bfloat16)
    p["fc1_b"] = u(ks[9], (1, h4), hidden)
    p["fc2_w"] = u(ks[10], (h4, h16), h4)
    p["fc2_b"] = u(ks[11], (1, h16), h4)
    p["fc3_w"] = u(ks[12], (h16, num_classes), h16)
    p["fc3_b"] = u(ks[13], (1, num_classes), h16)
    return p


if __name__ == "__main__":
    H_IMG, W_IMG = 32, 64          # small analogue of the original 128 x 320
    HIDDEN, NUM_CLASSES = 128, 2   # small analogue of hidden_size = 512
    CNN_OUT = 4 * (H_IMG // 4) * (W_IMG // 4)   # = 512 (4 * H/4 * W/4 rule)

    key = jax.random.PRNGKey(0)
    kx, kh, kc, kp = jax.random.split(key, 4)
    x = jax.random.normal(kx, (1, 1, H_IMG, W_IMG), jnp.float32)
    h_0 = 0.1 * jax.random.normal(kh, (1, 1, HIDDEN), jnp.float32)
    c_0 = 0.1 * jax.random.normal(kc, (1, 1, HIDDEN), jnp.float32)

    params = init_params(kp, HIDDEN, NUM_CLASSES, CNN_OUT)

    out, h_n, c_n = dino_forward(x, h_0, c_0, params, HIDDEN, NUM_CLASSES)
    jax.block_until_ready((out, h_n, c_n))

    assert out.shape == (1, 1, NUM_CLASSES)
    assert h_n.shape == (1, 1, HIDDEN)
    assert c_n.shape == (1, 1, HIDDEN)
    assert bool(jnp.all(jnp.isfinite(out)))
    assert bool(jnp.all(jnp.isfinite(h_n))) and bool(jnp.all(jnp.isfinite(c_n)))

    # Tolerance check against the pure-JAX (f32) reference of the module;
    # deviations come from bf16 MXU inputs / bf16 pooled activations.
    ref_out, ref_h, ref_c = dino_reference(x, h_0, c_0, params, HIDDEN, NUM_CLASSES)
    for got, ref, name in ((out, ref_out, "out"),
                           (h_n, ref_h, "h_n"),
                           (c_n, ref_c, "c_n")):
        err = float(jnp.max(jnp.abs(got - ref)))
        assert err < 0.1, f"{name}: max abs err {err}"

    print("KERNEL_OK")
</pallas_src>

<mosaic_0001>
module attributes {stable_mosaic.version = 11 : i64} {
  func.func @dino_fused_kernel(%arg0: memref<18xf32, #tpu.memory_space<smem>>, %arg1: memref<2xf32, #tpu.memory_space<smem>>, %arg2: memref<72xf32, #tpu.memory_space<smem>>, %arg3: memref<4xf32, #tpu.memory_space<smem>>, %arg4: memref<32x64xf32, #tpu.memory_space<vmem>>, %arg5: memref<1x128xf32, #tpu.memory_space<vmem>>, %arg6: memref<1x128xf32, #tpu.memory_space<vmem>>, %arg7: memref<64x32xbf16, #tpu.memory_space<vmem>>, %arg8: memref<32x64xbf16, #tpu.memory_space<vmem>>, %arg9: memref<32x16xbf16, #tpu.memory_space<vmem>>, %arg10: memref<32x64xbf16, #tpu.memory_space<vmem>>, %arg11: memref<16x512xbf16, #tpu.memory_space<vmem>>, %arg12: memref<32x512xf32, #tpu.memory_space<vmem>>, %arg13: memref<4x512x128xbf16, #tpu.memory_space<any>>, %arg14: memref<128x512xbf16, #tpu.memory_space<vmem>>, %arg15: memref<1x512xf32, #tpu.memory_space<vmem>>, %arg16: memref<128x32xbf16, #tpu.memory_space<vmem>>, %arg17: memref<1x32xf32, #tpu.memory_space<vmem>>, %arg18: memref<32x8xf32, #tpu.memory_space<vmem>>, %arg19: memref<1x8xf32, #tpu.memory_space<vmem>>, %arg20: memref<8x2xf32, #tpu.memory_space<vmem>>, %arg21: memref<1x2xf32, #tpu.memory_space<vmem>>, %arg22: memref<1x2xf32, #tpu.memory_space<vmem>>, %arg23: memref<1x128xf32, #tpu.memory_space<vmem>>, %arg24: memref<1x128xf32, #tpu.memory_space<vmem>>, %arg25: memref<2x512x128xbf16, #tpu.memory_space<vmem>>, %arg26: memref<2x!tpu.dma_semaphore, #tpu.memory_space<semaphore_mem>>) attributes {dimension_semantics = [], scalar_prefetch = 0 : i64, scratch_operands = 2 : i64, tpu.core_type = #tpu.core_type<tc>} {
    %c0_i32 = arith.constant 0 : i32
    %c0_i32_0 = arith.constant 0 : i32
    %c0_i32_1 = arith.constant 0 : i32
    %c0_i32_2 = arith.constant 0 : i32
    %c0_i32_3 = arith.constant 0 : i32
    %0 = tpu.memref_slice %arg13[%c0_i32, %c0_i32_2, %c0_i32_3] : memref<4x512x128xbf16, #tpu.memory_space<any>> -> memref<1x512x128xbf16, #tpu.memory_space<any>>
    %1 = tpu.memref_squeeze %0 : memref<1x512x128xbf16, #tpu.memory_space<any>> -> memref<512x128xbf16, #tpu.memory_space<any>>
    %c0_i32_4 = arith.constant 0 : i32
    %c0_i32_5 = arith.constant 0 : i32
    %2 = tpu.memref_slice %arg25[%c0_i32_0, %c0_i32_4, %c0_i32_5] : memref<2x512x128xbf16, #tpu.memory_space<vmem>> -> memref<1x512x128xbf16, #tpu.memory_space<vmem>>
    %3 = tpu.memref_squeeze %2 : memref<1x512x128xbf16, #tpu.memory_space<vmem>> -> memref<512x128xbf16, #tpu.memory_space<vmem>>
    %4 = tpu.memref_slice %arg26[%c0_i32_1] : memref<2x!tpu.dma_semaphore, #tpu.memory_space<semaphore_mem>> -> memref<1x!tpu.dma_semaphore, #tpu.memory_space<semaphore_mem>>
    %5 = tpu.memref_squeeze %4 : memref<1x!tpu.dma_semaphore, #tpu.memory_space<semaphore_mem>> -> memref<!tpu.dma_semaphore, #tpu.memory_space<semaphore_mem>>
    tpu.enqueue_dma source(%1 : memref<512x128xbf16, #tpu.memory_space<any>>) target(%3 : memref<512x128xbf16, #tpu.memory_space<vmem>>) target_semaphore(%5 : memref<!tpu.dma_semaphore, #tpu.memory_space<semaphore_mem>>)
    %c1_i32 = arith.constant 1 : i32
    %c1_i32_6 = arith.constant 1 : i32
    %c1_i32_7 = arith.constant 1 : i32
    %c0_i32_8 = arith.constant 0 : i32
    %c0_i32_9 = arith.constant 0 : i32
    %6 = tpu.memref_slice %arg13[%c1_i32, %c0_i32_8, %c0_i32_9] : memref<4x512x128xbf16, #tpu.memory_space<any>> -> memref<1x512x128xbf16, #tpu.memory_space<any>>
    %7 = tpu.memref_squeeze %6 : memref<1x512x128xbf16, #tpu.memory_space<any>> -> memref<512x128xbf16, #tpu.memory_space<any>>
    %c0_i32_10 = arith.constant 0 : i32
    %c0_i32_11 = arith.constant 0 : i32
    %8 = tpu.memref_slice %arg25[%c1_i32_6, %c0_i32_10, %c0_i32_11] : memref<2x512x128xbf16, #tpu.memory_space<vmem>> -> memref<1x512x128xbf16, #tpu.memory_space<vmem>>
    %9 = tpu.memref_squeeze %8 : memref<1x512x128xbf16, #tpu.memory_space<vmem>> -> memref<512x128xbf16, #tpu.memory_space<vmem>>
    %10 = tpu.memref_slice %arg26[%c1_i32_7] : memref<2x!tpu.dma_semaphore, #tpu.memory_space<semaphore_mem>> -> memref<1x!tpu.dma_semaphore, #tpu.memory_space<semaphore_mem>>
    %11 = tpu.memref_squeeze %10 : memref<1x!tpu.dma_semaphore, #tpu.memory_space<semaphore_mem>> -> memref<!tpu.dma_semaphore, #tpu.memory_space<semaphore_mem>>
    tpu.enqueue_dma source(%7 : memref<512x128xbf16, #tpu.memory_space<any>>) target(%9 : memref<512x128xbf16, #tpu.memory_space<vmem>>) target_semaphore(%11 : memref<!tpu.dma_semaphore, #tpu.memory_space<semaphore_mem>>)
    %c0 = arith.constant 0 : index
    %c0_12 = arith.constant 0 : index
    %12 = vector.load %arg4[%c0, %c0_12] : memref<32x64xf32, #tpu.memory_space<vmem>>, vector<32x64xf32>
    %13 = tpu.iota {dimensions = array<i32: 1>} : vector<1x64xi32>
    %c0_i32_13 = arith.constant 0 : i32
    %14 = vector.broadcast %c0_i32_13 : i32 to vector<1x64xi32>
    %15 = arith.cmpi ne, %13, %14 : vector<1x64xi32>
    %16 = arith.extui %15 : vector<1x64xi1> to vector<1x64xi32>
    %17 = arith.sitofp %16 : vector<1x64xi32> to vector<1x64xf32>
    %c63_i32 = arith.constant 63 : i32
    %18 = vector.broadcast %c63_i32 : i32 to vector<1x64xi32>
    %19 = arith.cmpi ne, %13, %18 : vector<1x64xi32>
    %20 = arith.extui %19 : vector<1x64xi1> to vector<1x64xi32>
    %21 = arith.sitofp %20 : vector<1x64xi32> to vector<1x64xf32>
    %22 = tpu.iota {dimensions = array<i32: 0>} : vector<32x1xi32>
    %c31_i32 = arith.constant 31 : i32
    %23 = vector.broadcast %c31_i32 : i32 to vector<32x1xi32>
    %24 = arith.andi %22, %23 : vector<32x1xi32>
    %c0_i32_14 = arith.constant 0 : i32
    %25 = vector.broadcast %c0_i32_14 : i32 to vector<32x1xi32>
    %26 = arith.cmpi ne, %24, %25 : vector<32x1xi32>
    %27 = arith.extui %26 : vector<32x1xi1> to vector<32x1xi32>
    %28 = arith.sitofp %27 : vector<32x1xi32> to vector<32x1xf32>
    %c31_i32_15 = arith.constant 31 : i32
    %29 = vector.broadcast %c31_i32_15 : i32 to vector<32x1xi32>
    %30 = arith.cmpi ne, %24, %29 : vector<32x1xi32>
    %31 = arith.extui %30 : vector<32x1xi1> to vector<32x1xi32>
    %32 = arith.sitofp %31 : vector<32x1xi32> to vector<32x1xf32>
    %c1_i32_16 = arith.constant 1 : i32
    %33 = tpu.dynamic_rotate %12 by %c1_i32_16 dim 1 : vector<32x64xf32>, i32 -> vector<32x64xf32>
    %34 = vector.broadcast %17 : vector<1x64xf32> to vector<32x64xf32>
    %35 = arith.mulf %33, %34 : vector<32x64xf32>
    %c63_i32_17 = arith.constant 63 : i32
    %36 = tpu.dynamic_rotate %12 by %c63_i32_17 dim 1 : vector<32x64xf32>, i32 -> vector<32x64xf32>
    %37 = vector.broadcast %21 : vector<1x64xf32> to vector<32x64xf32>
    %38 = arith.mulf %36, %37 : vector<32x64xf32>
    %c1_i32_18 = arith.constant 1 : i32
    %39 = tpu.dynamic_rotate %35 by %c1_i32_18 dim 0 : vector<32x64xf32>, i32 -> vector<32x64xf32>
    %40 = vector.broadcast %28 : vector<32x1xf32> to vector<32x64xf32>
    %41 = arith.mulf %39, %40 : vector<32x64xf32>
    %c1_i32_19 = arith.constant 1 : i32
    %42 = tpu.dynamic_rotate %12 by %c1_i32_19 dim 0 : vector<32x64xf32>, i32 -> vector<32x64xf32>
    %43 = vector.broadcast %28 : vector<32x1xf32> to vector<32x64xf32>
    %44 = arith.mulf %42, %43 : vector<32x64xf32>
    %c1_i32_20 = arith.constant 1 : i32
    %45 = tpu.dynamic_rotate %38 by %c1_i32_20 dim 0 : vector<32x64xf32>, i32 -> vector<32x64xf32>
    %46 = vector.broadcast %28 : vector<32x1xf32> to vector<32x64xf32>
    %47 = arith.mulf %45, %46 : vector<32x64xf32>
    %c31_i32_21 = arith.constant 31 : i32
    %48 = tpu.dynamic_rotate %35 by %c31_i32_21 dim 0 : vector<32x64xf32>, i32 -> vector<32x64xf32>
    %49 = vector.broadcast %32 : vector<32x1xf32> to vector<32x64xf32>
    %50 = arith.mulf %48, %49 : vector<32x64xf32>
    %c31_i32_22 = arith.constant 31 : i32
    %51 = tpu.dynamic_rotate %12 by %c31_i32_22 dim 0 : vector<32x64xf32>, i32 -> vector<32x64xf32>
    %52 = vector.broadcast %32 : vector<32x1xf32> to vector<32x64xf32>
    %53 = arith.mulf %51, %52 : vector<32x64xf32>
    %c31_i32_23 = arith.constant 31 : i32
    %54 = tpu.dynamic_rotate %38 by %c31_i32_23 dim 0 : vector<32x64xf32>, i32 -> vector<32x64xf32>
    %55 = vector.broadcast %32 : vector<32x1xf32> to vector<32x64xf32>
    %56 = arith.mulf %54, %55 : vector<32x64xf32>
    %c0_24 = arith.constant 0 : index
    %57 = memref.load %arg0[%c0_24] : memref<18xf32, #tpu.memory_space<smem>>
    %58 = vector.broadcast %57 : f32 to vector<32x64xf32>
    %59 = arith.mulf %58, %41 : vector<32x64xf32>
    %c1 = arith.constant 1 : index
    %60 = memref.load %arg0[%c1] : memref<18xf32, #tpu.memory_space<smem>>
    %61 = vector.broadcast %60 : f32 to vector<32x64xf32>
    %62 = arith.mulf %61, %44 : vector<32x64xf32>
    %c2 = arith.constant 2 : index
    %63 = memref.load %arg0[%c2] : memref<18xf32, #tpu.memory_space<smem>>
    %64 = vector.broadcast %63 : f32 to vector<32x64xf32>
    %65 = arith.mulf %64, %47 : vector<32x64xf32>
    %c3 = arith.constant 3 : index
    %66 = memref.load %arg0[%c3] : memref<18xf32, #tpu.memory_space<smem>>
    %67 = vector.broadcast %66 : f32 to vector<32x64xf32>
    %68 = arith.mulf %67, %35 : vector<32x64xf32>
    %c4 = arith.constant 4 : index
    %69 = memref.load %arg0[%c4] : memref<18xf32, #tpu.memory_space<smem>>
    %70 = vector.broadcast %69 : f32 to vector<32x64xf32>
    %71 = arith.mulf %70, %12 : vector<32x64xf32>
    %c5 = arith.constant 5 : index
    %72 = memref.load %arg0[%c5] : memref<18xf32, #tpu.memory_space<smem>>
    %73 = vector.broadcast %72 : f32 to vector<32x64xf32>
    %74 = arith.mulf %73, %38 : vector<32x64xf32>
    %c6 = arith.constant 6 : index
    %75 = memref.load %arg0[%c6] : memref<18xf32, #tpu.memory_space<smem>>
    %76 = vector.broadcast %75 : f32 to vector<32x64xf32>
    %77 = arith.mulf %76, %50 : vector<32x64xf32>
    %c7 = arith.constant 7 : index
    %78 = memref.load %arg0[%c7] : memref<18xf32, #tpu.memory_space<smem>>
    %79 = vector.broadcast %78 : f32 to vector<32x64xf32>
    %80 = arith.mulf %79, %53 : vector<32x64xf32>
    %c8 = arith.constant 8 : index
    %81 = memref.load %arg0[%c8] : memref<18xf32, #tpu.memory_space<smem>>
    %82 = vector.broadcast %81 : f32 to vector<32x64xf32>
    %83 = arith.mulf %82, %56 : vector<32x64xf32>
    %84 = arith.addf %59, %62 : vector<32x64xf32>
    %85 = arith.addf %65, %68 : vector<32x64xf32>
    %86 = arith.addf %71, %74 : vector<32x64xf32>
    %87 = arith.addf %77, %80 : vector<32x64xf32>
    %88 = arith.addf %84, %85 : vector<32x64xf32>
    %89 = arith.addf %86, %87 : vector<32x64xf32>
    %90 = arith.addf %88, %89 : vector<32x64xf32>
    %91 = arith.addf %90, %83 : vector<32x64xf32>
    %c0_25 = arith.constant 0 : index
    %92 = memref.load %arg1[%c0_25] : memref<2xf32, #tpu.memory_space<smem>>
    %93 = vector.broadcast %92 : f32 to vector<32x64xf32>
    %94 = arith.addf %91, %93 : vector<32x64xf32>
    %cst = arith.constant 0.000000e+00 : f32
    %95 = vector.broadcast %cst : f32 to vector<32x64xf32>
    %96 = arith.maximumf %94, %95 : vector<32x64xf32>
    %c9 = arith.constant 9 : index
    %97 = memref.load %arg0[%c9] : memref<18xf32, #tpu.memory_space<smem>>
    %98 = vector.broadcast %97 : f32 to vector<32x64xf32>
    %99 = arith.mulf %98, %41 : vector<32x64xf32>
    %c10 = arith.constant 10 : index
    %100 = memref.load %arg0[%c10] : memref<18xf32, #tpu.memory_space<smem>>
    %101 = vector.broadcast %100 : f32 to vector<32x64xf32>
    %102 = arith.mulf %101, %44 : vector<32x64xf32>
    %c11 = arith.constant 11 : index
    %103 = memref.load %arg0[%c11] : memref<18xf32, #tpu.memory_space<smem>>
    %104 = vector.broadcast %103 : f32 to vector<32x64xf32>
    %105 = arith.mulf %104, %47 : vector<32x64xf32>
    %c12 = arith.constant 12 : index
    %106 = memref.load %arg0[%c12] : memref<18xf32, #tpu.memory_space<smem>>
    %107 = vector.broadcast %106 : f32 to vector<32x64xf32>
    %108 = arith.mulf %107, %35 : vector<32x64xf32>
    %c13 = arith.constant 13 : index
    %109 = memref.load %arg0[%c13] : memref<18xf32, #tpu.memory_space<smem>>
    %110 = vector.broadcast %109 : f32 to vector<32x64xf32>
    %111 = arith.mulf %110, %12 : vector<32x64xf32>
    %c14 = arith.constant 14 : index
    %112 = memref.load %arg0[%c14] : memref<18xf32, #tpu.memory_space<smem>>
    %113 = vector.broadcast %112 : f32 to vector<32x64xf32>
    %114 = arith.mulf %113, %38 : vector<32x64xf32>
    %c15 = arith.constant 15 : index
    %115 = memref.load %arg0[%c15] : memref<18xf32, #tpu.memory_space<smem>>
    %116 = vector.broadcast %115 : f32 to vector<32x64xf32>
    %117 = arith.mulf %116, %50 : vector<32x64xf32>
    %c16 = arith.constant 16 : index
    %118 = memref.load %arg0[%c16] : memref<18xf32, #tpu.memory_space<smem>>
    %119 = vector.broadcast %118 : f32 to vector<32x64xf32>
    %120 = arith.mulf %119, %53 : vector<32x64xf32>
    %c17 = arith.constant 17 : index
    %121 = memref.load %arg0[%c17] : memref<18xf32, #tpu.memory_space<smem>>
    %122 = vector.broadcast %121 : f32 to vector<32x64xf32>
    %123 = arith.mulf %122, %56 : vector<32x64xf32>
    %124 = arith.addf %99, %102 : vector<32x64xf32>
    %125 = arith.addf %105, %108 : vector<32x64xf32>
    %126 = arith.addf %111, %114 : vector<32x64xf32>
    %127 = arith.addf %117, %120 : vector<32x64xf32>
    %128 = arith.addf %124, %125 : vector<32x64xf32>
    %129 = arith.addf %126, %127 : vector<32x64xf32>
    %130 = arith.addf %128, %129 : vector<32x64xf32>
    %131 = arith.addf %130, %123 : vector<32x64xf32>
    %c1_26 = arith.constant 1 : index
    %132 = memref.load %arg1[%c1_26] : memref<2xf32, #tpu.memory_space<smem>>
    %133 = vector.broadcast %132 : f32 to vector<32x64xf32>
    %134 = arith.addf %131, %133 : vector<32x64xf32>
    %cst_27 = arith.constant 0.000000e+00 : f32
    %135 = vector.broadcast %cst_27 : f32 to vector<32x64xf32>
    %136 = arith.maximumf %134, %135 : vector<32x64xf32>
    %137 = tpu.concatenate %96, %136 in 0 : vector<32x64xf32>, vector<32x64xf32> -> vector<64x64xf32>
    %c63_i32_28 = arith.constant 63 : i32
    %138 = tpu.dynamic_rotate %137 by %c63_i32_28 dim 1 : vector<64x64xf32>, i32 -> vector<64x64xf32>
    %139 = arith.maximumf %137, %138 : vector<64x64xf32>
    %140 = arith.truncf %139 : vector<64x64xf32> to vector<64x64xbf16>
    %c0_29 = arith.constant 0 : index
    %c0_30 = arith.constant 0 : index
    %141 = vector.load %arg7[%c0_29, %c0_30] : memref<64x32xbf16, #tpu.memory_space<vmem>>, vector<64x32xbf16>
    %cst_31 = arith.constant dense<0.000000e+00> : vector<64x32xf32>
    %142 = tpu.matmul %140, %141, %cst_31 {dimension_numbers = #tpu.dot_dimension_numbers<[1], [0], [0], [1], [0, 0, 1, 1], [], []>} : vector<64x64xbf16>, vector<64x32xbf16>, vector<64x32xf32> -> vector<64x32xf32>
    %c63_i32_32 = arith.constant 63 : i32
    %143 = tpu.dynamic_rotate %142 by %c63_i32_32 dim 0 : vector<64x32xf32>, i32 -> vector<64x32xf32>
    %144 = arith.maximumf %142, %143 : vector<64x32xf32>
    %c0_33 = arith.constant 0 : index
    %c0_34 = arith.constant 0 : index
    %145 = vector.load %arg8[%c0_33, %c0_34] : memref<32x64xbf16, #tpu.memory_space<vmem>>, vector<32x64xbf16>
    %146 = arith.truncf %144 : vector<64x32xf32> to vector<64x32xbf16>
    %cst_35 = arith.constant dense<0.000000e+00> : vector<32x32xf32>
    %147 = tpu.matmul %145, %146, %cst_35 {dimension_numbers = #tpu.dot_dimension_numbers<[1], [0], [0], [1], [0, 0, 1, 1], [], []>} : vector<32x64xbf16>, vector<64x32xbf16>, vector<32x32xf32> -> vector<32x32xf32>
    %148 = tpu.iota {dimensions = array<i32: 1>} : vector<1x32xi32>
    %c0_i32_36 = arith.constant 0 : i32
    %149 = vector.broadcast %c0_i32_36 : i32 to vector<1x32xi32>
    %150 = arith.cmpi ne, %148, %149 : vector<1x32xi32>
    %151 = arith.extui %150 : vector<1x32xi1> to vector<1x32xi32>
    %152 = arith.sitofp %151 : vector<1x32xi32> to vector<1x32xf32>
    %c31_i32_37 = arith.constant 31 : i32
    %153 = vector.broadcast %c31_i32_37 : i32 to vector<1x32xi32>
    %154 = arith.cmpi ne, %148, %153 : vector<1x32xi32>
    %155 = arith.extui %154 : vector<1x32xi1> to vector<1x32xi32>
    %156 = arith.sitofp %155 : vector<1x32xi32> to vector<1x32xf32>
    %157 = tpu.iota {dimensions = array<i32: 0>} : vector<32x1xi32>
    %c15_i32 = arith.constant 15 : i32
    %158 = vector.broadcast %c15_i32 : i32 to vector<32x1xi32>
    %159 = arith.andi %157, %158 : vector<32x1xi32>
    %c0_i32_38 = arith.constant 0 : i32
    %160 = vector.broadcast %c0_i32_38 : i32 to vector<32x1xi32>
    %161 = arith.cmpi ne, %159, %160 : vector<32x1xi32>
    %162 = arith.extui %161 : vector<32x1xi1> to vector<32x1xi32>
    %163 = arith.sitofp %162 : vector<32x1xi32> to vector<32x1xf32>
    %c15_i32_39 = arith.constant 15 : i32
    %164 = vector.broadcast %c15_i32_39 : i32 to vector<32x1xi32>
    %165 = arith.cmpi ne, %159, %164 : vector<32x1xi32>
    %166 = arith.extui %165 : vector<32x1xi1> to vector<32x1xi32>
    %167 = arith.sitofp %166 : vector<32x1xi32> to vector<32x1xf32>
    %c1_i32_40 = arith.constant 1 : i32
    %168 = tpu.dynamic_rotate %147 by %c1_i32_40 dim 1 : vector<32x32xf32>, i32 -> vector<32x32xf32>
    %169 = vector.broadcast %152 : vector<1x32xf32> to vector<32x32xf32>
    %170 = arith.mulf %168, %169 : vector<32x32xf32>
    %c31_i32_41 = arith.constant 31 : i32
    %171 = tpu.dynamic_rotate %147 by %c31_i32_41 dim 1 : vector<32x32xf32>, i32 -> vector<32x32xf32>
    %172 = vector.broadcast %156 : vector<1x32xf32> to vector<32x32xf32>
    %173 = arith.mulf %171, %172 : vector<32x32xf32>
    %c1_i32_42 = arith.constant 1 : i32
    %174 = tpu.dynamic_rotate %170 by %c1_i32_42 dim 0 : vector<32x32xf32>, i32 -> vector<32x32xf32>
    %175 = vector.broadcast %163 : vector<32x1xf32> to vector<32x32xf32>
    %176 = arith.mulf %174, %175 : vector<32x32xf32>
    %c1_i32_43 = arith.constant 1 : i32
    %177 = tpu.dynamic_rotate %147 by %c1_i32_43 dim 0 : vector<32x32xf32>, i32 -> vector<32x32xf32>
    %178 = vector.broadcast %163 : vector<32x1xf32> to vector<32x32xf32>
    %179 = arith.mulf %177, %178 : vector<32x32xf32>
    %c1_i32_44 = arith.constant 1 : i32
    %180 = tpu.dynamic_rotate %173 by %c1_i32_44 dim 0 : vector<32x32xf32>, i32 -> vector<32x32xf32>
    %181 = vector.broadcast %163 : vector<32x1xf32> to vector<32x32xf32>
    %182 = arith.mulf %180, %181 : vector<32x32xf32>
    %c31_i32_45 = arith.constant 31 : i32
    %183 = tpu.dynamic_rotate %170 by %c31_i32_45 dim 0 : vector<32x32xf32>, i32 -> vector<32x32xf32>
    %184 = vector.broadcast %167 : vector<32x1xf32> to vector<32x32xf32>
    %185 = arith.mulf %183, %184 : vector<32x32xf32>
    %c31_i32_46 = arith.constant 31 : i32
    %186 = tpu.dynamic_rotate %147 by %c31_i32_46 dim 0 : vector<32x32xf32>, i32 -> vector<32x32xf32>
    %187 = vector.broadcast %167 : vector<32x1xf32> to vector<32x32xf32>
    %188 = arith.mulf %186, %187 : vector<32x32xf32>
    %c31_i32_47 = arith.constant 31 : i32
    %189 = tpu.dynamic_rotate %173 by %c31_i32_47 dim 0 : vector<32x32xf32>, i32 -> vector<32x32xf32>
    %190 = vector.broadcast %167 : vector<32x1xf32> to vector<32x32xf32>
    %191 = arith.mulf %189, %190 : vector<32x32xf32>
    %192 = vector.extract_strided_slice %176 {offsets = [0, 0], sizes = [16, 32], strides = [1, 1]} : vector<32x32xf32> to vector<16x32xf32>
    %193 = vector.extract_strided_slice %176 {offsets = [16, 0], sizes = [16, 32], strides = [1, 1]} : vector<32x32xf32> to vector<16x32xf32>
    %194 = vector.extract_strided_slice %179 {offsets = [0, 0], sizes = [16, 32], strides = [1, 1]} : vector<32x32xf32> to vector<16x32xf32>
    %195 = vector.extract_strided_slice %179 {offsets = [16, 0], sizes = [16, 32], strides = [1, 1]} : vector<32x32xf32> to vector<16x32xf32>
    %196 = vector.extract_strided_slice %182 {offsets = [0, 0], sizes = [16, 32], strides = [1, 1]} : vector<32x32xf32> to vector<16x32xf32>
    %197 = vector.extract_strided_slice %182 {offsets = [16, 0], sizes = [16, 32], strides = [1, 1]} : vector<32x32xf32> to vector<16x32xf32>
    %198 = vector.extract_strided_slice %170 {offsets = [0, 0], sizes = [16, 32], strides = [1, 1]} : vector<32x32xf32> to vector<16x32xf32>
    %199 = vector.extract_strided_slice %170 {offsets = [16, 0], sizes = [16, 32], strides = [1, 1]} : vector<32x32xf32> to vector<16x32xf32>
    %200 = vector.extract_strided_slice %147 {offsets = [0, 0], sizes = [16, 32], strides = [1, 1]} : vector<32x32xf32> to vector<16x32xf32>
    %201 = vector.extract_strided_slice %147 {offsets = [16, 0], sizes = [16, 32], strides = [1, 1]} : vector<32x32xf32> to vector<16x32xf32>
    %202 = vector.extract_strided_slice %173 {offsets = [0, 0], sizes = [16, 32], strides = [1, 1]} : vector<32x32xf32> to vector<16x32xf32>
    %203 = vector.extract_strided_slice %173 {offsets = [16, 0], sizes = [16, 32], strides = [1, 1]} : vector<32x32xf32> to vector<16x32xf32>
    %204 = vector.extract_strided_slice %185 {offsets = [0, 0], sizes = [16, 32], strides = [1, 1]} : vector<32x32xf32> to vector<16x32xf32>
    %205 = vector.extract_strided_slice %185 {offsets = [16, 0], sizes = [16, 32], strides = [1, 1]} : vector<32x32xf32> to vector<16x32xf32>
    %206 = vector.extract_strided_slice %188 {offsets = [0, 0], sizes = [16, 32], strides = [1, 1]} : vector<32x32xf32> to vector<16x32xf32>
    %207 = vector.extract_strided_slice %188 {offsets = [16, 0], sizes = [16, 32], strides = [1, 1]} : vector<32x32xf32> to vector<16x32xf32>
    %208 = vector.extract_strided_slice %191 {offsets = [0, 0], sizes = [16, 32], strides = [1, 1]} : vector<32x32xf32> to vector<16x32xf32>
    %209 = vector.extract_strided_slice %191 {offsets = [16, 0], sizes = [16, 32], strides = [1, 1]} : vector<32x32xf32> to vector<16x32xf32>
    %c0_48 = arith.constant 0 : index
    %210 = memref.load %arg2[%c0_48] : memref<72xf32, #tpu.memory_space<smem>>
    %211 = vector.broadcast %210 : f32 to vector<16x32xf32>
    %212 = arith.mulf %211, %192 : vector<16x32xf32>
    %c1_49 = arith.constant 1 : index
    %213 = memref.load %arg2[%c1_49] : memref<72xf32, #tpu.memory_space<smem>>
    %214 = vector.broadcast %213 : f32 to vector<16x32xf32>
    %215 = arith.mulf %214, %194 : vector<16x32xf32>
    %c2_50 = arith.constant 2 : index
    %216 = memref.load %arg2[%c2_50] : memref<72xf32, #tpu.memory_space<smem>>
    %217 = vector.broadcast %216 : f32 to vector<16x32xf32>
    %218 = arith.mulf %217, %196 : vector<16x32xf32>
    %c3_51 = arith.constant 3 : index
    %219 = memref.load %arg2[%c3_51] : memref<72xf32, #tpu.memory_space<smem>>
    %220 = vector.broadcast %219 : f32 to vector<16x32xf32>
    %221 = arith.mulf %220, %198 : vector<16x32xf32>
    %c4_52 = arith.constant 4 : index
    %222 = memref.load %arg2[%c4_52] : memref<72xf32, #tpu.memory_space<smem>>
    %223 = vector.broadcast %222 : f32 to vector<16x32xf32>
    %224 = arith.mulf %223, %200 : vector<16x32xf32>
    %c5_53 = arith.constant 5 : index
    %225 = memref.load %arg2[%c5_53] : memref<72xf32, #tpu.memory_space<smem>>
    %226 = vector.broadcast %225 : f32 to vector<16x32xf32>
    %227 = arith.mulf %226, %202 : vector<16x32xf32>
    %c6_54 = arith.constant 6 : index
    %228 = memref.load %arg2[%c6_54] : memref<72xf32, #tpu.memory_space<smem>>
    %229 = vector.broadcast %228 : f32 to vector<16x32xf32>
    %230 = arith.mulf %229, %204 : vector<16x32xf32>
    %c7_55 = arith.constant 7 : index
    %231 = memref.load %arg2[%c7_55] : memref<72xf32, #tpu.memory_space<smem>>
    %232 = vector.broadcast %231 : f32 to vector<16x32xf32>
    %233 = arith.mulf %232, %206 : vector<16x32xf32>
    %c8_56 = arith.constant 8 : index
    %234 = memref.load %arg2[%c8_56] : memref<72xf32, #tpu.memory_space<smem>>
    %235 = vector.broadcast %234 : f32 to vector<16x32xf32>
    %236 = arith.mulf %235, %208 : vector<16x32xf32>
    %c9_57 = arith.constant 9 : index
    %237 = memref.load %arg2[%c9_57] : memref<72xf32, #tpu.memory_space<smem>>
    %238 = vector.broadcast %237 : f32 to vector<16x32xf32>
    %239 = arith.mulf %238, %193 : vector<16x32xf32>
    %c10_58 = arith.constant 10 : index
    %240 = memref.load %arg2[%c10_58] : memref<72xf32, #tpu.memory_space<smem>>
    %241 = vector.broadcast %240 : f32 to vector<16x32xf32>
    %242 = arith.mulf %241, %195 : vector<16x32xf32>
    %c11_59 = arith.constant 11 : index
    %243 = memref.load %arg2[%c11_59] : memref<72xf32, #tpu.memory_space<smem>>
    %244 = vector.broadcast %243 : f32 to vector<16x32xf32>
    %245 = arith.mulf %244, %197 : vector<16x32xf32>
    %c12_60 = arith.constant 12 : index
    %246 = memref.load %arg2[%c12_60] : memref<72xf32, #tpu.memory_space<smem>>
    %247 = vector.broadcast %246 : f32 to vector<16x32xf32>
    %248 = arith.mulf %247, %199 : vector<16x32xf32>
    %c13_61 = arith.constant 13 : index
    %249 = memref.load %arg2[%c13_61] : memref<72xf32, #tpu.memory_space<smem>>
    %250 = vector.broadcast %249 : f32 to vector<16x32xf32>
    %251 = arith.mulf %250, %201 : vector<16x32xf32>
    %c14_62 = arith.constant 14 : index
    %252 = memref.load %arg2[%c14_62] : memref<72xf32, #tpu.memory_space<smem>>
    %253 = vector.broadcast %252 : f32 to vector<16x32xf32>
    %254 = arith.mulf %253, %203 : vector<16x32xf32>
    %c15_63 = arith.constant 15 : index
    %255 = memref.load %arg2[%c15_63] : memref<72xf32, #tpu.memory_space<smem>>
    %256 = vector.broadcast %255 : f32 to vector<16x32xf32>
    %257 = arith.mulf %256, %205 : vector<16x32xf32>
    %c16_64 = arith.constant 16 : index
    %258 = memref.load %arg2[%c16_64] : memref<72xf32, #tpu.memory_space<smem>>
    %259 = vector.broadcast %258 : f32 to vector<16x32xf32>
    %260 = arith.mulf %259, %207 : vector<16x32xf32>
    %c17_65 = arith.constant 17 : index
    %261 = memref.load %arg2[%c17_65] : memref<72xf32, #tpu.memory_space<smem>>
    %262 = vector.broadcast %261 : f32 to vector<16x32xf32>
    %263 = arith.mulf %262, %209 : vector<16x32xf32>
    %264 = arith.addf %212, %215 : vector<16x32xf32>
    %265 = arith.addf %218, %221 : vector<16x32xf32>
    %266 = arith.addf %224, %227 : vector<16x32xf32>
    %267 = arith.addf %230, %233 : vector<16x32xf32>
    %268 = arith.addf %236, %239 : vector<16x32xf32>
    %269 = arith.addf %242, %245 : vector<16x32xf32>
    %270 = arith.addf %248, %251 : vector<16x32xf32>
    %271 = arith.addf %254, %257 : vector<16x32xf32>
    %272 = arith.addf %260, %263 : vector<16x32xf32>
    %273 = arith.addf %264, %265 : vector<16x32xf32>
    %274 = arith.addf %266, %267 : vector<16x32xf32>
    %275 = arith.addf %268, %269 : vector<16x32xf32>
    %276 = arith.addf %270, %271 : vector<16x32xf32>
    %277 = arith.addf %273, %274 : vector<16x32xf32>
    %278 = arith.addf %275, %276 : vector<16x32xf32>
    %279 = arith.addf %277, %278 : vector<16x32xf32>
    %280 = arith.addf %279, %272 : vector<16x32xf32>
    %c0_66 = arith.constant 0 : index
    %281 = memref.load %arg3[%c0_66] : memref<4xf32, #tpu.memory_space<smem>>
    %282 = vector.broadcast %281 : f32 to vector<16x32xf32>
    %283 = arith.addf %280, %282 : vector<16x32xf32>
    %cst_67 = arith.constant 0.000000e+00 : f32
    %284 = vector.broadcast %cst_67 : f32 to vector<16x32xf32>
    %285 = arith.maximumf %283, %284 : vector<16x32xf32>
    %c18 = arith.constant 18 : index
    %286 = memref.load %arg2[%c18] : memref<72xf32, #tpu.memory_space<smem>>
    %287 = vector.broadcast %286 : f32 to vector<16x32xf32>
    %288 = arith.mulf %287, %192 : vector<16x32xf32>
    %c19 = arith.constant 19 : index
    %289 = memref.load %arg2[%c19] : memref<72xf32, #tpu.memory_space<smem>>
    %290 = vector.broadcast %289 : f32 to vector<16x32xf32>
    %291 = arith.mulf %290, %194 : vector<16x32xf32>
    %c20 = arith.constant 20 : index
    %292 = memref.load %arg2[%c20] : memref<72xf32, #tpu.memory_space<smem>>
    %293 = vector.broadcast %292 : f32 to vector<16x32xf32>
    %294 = arith.mulf %293, %196 : vector<16x32xf32>
    %c21 = arith.constant 21 : index
    %295 = memref.load %arg2[%c21] : memref<72xf32, #tpu.memory_space<smem>>
    %296 = vector.broadcast %295 : f32 to vector<16x32xf32>
    %297 = arith.mulf %296, %198 : vector<16x32xf32>
    %c22 = arith.constant 22 : index
    %298 = memref.load %arg2[%c22] : memref<72xf32, #tpu.memory_space<smem>>
    %299 = vector.broadcast %298 : f32 to vector<16x32xf32>
    %300 = arith.mulf %299, %200 : vector<16x32xf32>
    %c23 = arith.constant 23 : index
    %301 = memref.load %arg2[%c23] : memref<72xf32, #tpu.memory_space<smem>>
    %302 = vector.broadcast %301 : f32 to vector<16x32xf32>
    %303 = arith.mulf %302, %202 : vector<16x32xf32>
    %c24 = arith.constant 24 : index
    %304 = memref.load %arg2[%c24] : memref<72xf32, #tpu.memory_space<smem>>
    %305 = vector.broadcast %304 : f32 to vector<16x32xf32>
    %306 = arith.mulf %305, %204 : vector<16x32xf32>
    %c25 = arith.constant 25 : index
    %307 = memref.load %arg2[%c25] : memref<72xf32, #tpu.memory_space<smem>>
    %308 = vector.broadcast %307 : f32 to vector<16x32xf32>
    %309 = arith.mulf %308, %206 : vector<16x32xf32>
    %c26 = arith.constant 26 : index
    %310 = memref.load %arg2[%c26] : memref<72xf32, #tpu.memory_space<smem>>
    %311 = vector.broadcast %310 : f32 to vector<16x32xf32>
    %312 = arith.mulf %311, %208 : vector<16x32xf32>
    %c27 = arith.constant 27 : index
    %313 = memref.load %arg2[%c27] : memref<72xf32, #tpu.memory_space<smem>>
    %314 = vector.broadcast %313 : f32 to vector<16x32xf32>
    %315 = arith.mulf %314, %193 : vector<16x32xf32>
    %c28 = arith.constant 28 : index
    %316 = memref.load %arg2[%c28] : memref<72xf32, #tpu.memory_space<smem>>
    %317 = vector.broadcast %316 : f32 to vector<16x32xf32>
    %318 = arith.mulf %317, %195 : vector<16x32xf32>
    %c29 = arith.constant 29 : index
    %319 = memref.load %arg2[%c29] : memref<72xf32, #tpu.memory_space<smem>>
    %320 = vector.broadcast %319 : f32 to vector<16x32xf32>
    %321 = arith.mulf %320, %197 : vector<16x32xf32>
    %c30 = arith.constant 30 : index
    %322 = memref.load %arg2[%c30] : memref<72xf32, #tpu.memory_space<smem>>
    %323 = vector.broadcast %322 : f32 to vector<16x32xf32>
    %324 = arith.mulf %323, %199 : vector<16x32xf32>
    %c31 = arith.constant 31 : index
    %325 = memref.load %arg2[%c31] : memref<72xf32, #tpu.memory_space<smem>>
    %326 = vector.broadcast %325 : f32 to vector<16x32xf32>
    %327 = arith.mulf %326, %201 : vector<16x32xf32>
    %c32 = arith.constant 32 : index
    %328 = memref.load %arg2[%c32] : memref<72xf32, #tpu.memory_space<smem>>
    %329 = vector.broadcast %328 : f32 to vector<16x32xf32>
    %330 = arith.mulf %329, %203 : vector<16x32xf32>
    %c33 = arith.constant 33 : index
    %331 = memref.load %arg2[%c33] : memref<72xf32, #tpu.memory_space<smem>>
    %332 = vector.broadcast %331 : f32 to vector<16x32xf32>
    %333 = arith.mulf %332, %205 : vector<16x32xf32>
    %c34 = arith.constant 34 : index
    %334 = memref.load %arg2[%c34] : memref<72xf32, #tpu.memory_space<smem>>
    %335 = vector.broadcast %334 : f32 to vector<16x32xf32>
    %336 = arith.mulf %335, %207 : vector<16x32xf32>
    %c35 = arith.constant 35 : index
    %337 = memref.load %arg2[%c35] : memref<72xf32, #tpu.memory_space<smem>>
    %338 = vector.broadcast %337 : f32 to vector<16x32xf32>
    %339 = arith.mulf %338, %209 : vector<16x32xf32>
    %340 = arith.addf %288, %291 : vector<16x32xf32>
    %341 = arith.addf %294, %297 : vector<16x32xf32>
    %342 = arith.addf %300, %303 : vector<16x32xf32>
    %343 = arith.addf %306, %309 : vector<16x32xf32>
    %344 = arith.addf %312, %315 : vector<16x32xf32>
    %345 = arith.addf %318, %321 : vector<16x32xf32>
    %346 = arith.addf %324, %327 : vector<16x32xf32>
    %347 = arith.addf %330, %333 : vector<16x32xf32>
    %348 = arith.addf %336, %339 : vector<16x32xf32>
    %349 = arith.addf %340, %341 : vector<16x32xf32>
    %350 = arith.addf %342, %343 : vector<16x32xf32>
    %351 = arith.addf %344, %345 : vector<16x32xf32>
    %352 = arith.addf %346, %347 : vector<16x32xf32>
    %353 = arith.addf %349, %350 : vector<16x32xf32>
    %354 = arith.addf %351, %352 : vector<16x32xf32>
    %355 = arith.addf %353, %354 : vector<16x32xf32>
    %356 = arith.addf %355, %348 : vector<16x32xf32>
    %c1_68 = arith.constant 1 : index
    %357 = memref.load %arg3[%c1_68] : memref<4xf32, #tpu.memory_space<smem>>
    %358 = vector.broadcast %357 : f32 to vector<16x32xf32>
    %359 = arith.addf %356, %358 : vector<16x32xf32>
    %cst_69 = arith.constant 0.000000e+00 : f32
    %360 = vector.broadcast %cst_69 : f32 to vector<16x32xf32>
    %361 = arith.maximumf %359, %360 : vector<16x32xf32>
    %c36 = arith.constant 36 : index
    %362 = memref.load %arg2[%c36] : memref<72xf32, #tpu.memory_space<smem>>
    %363 = vector.broadcast %362 : f32 to vector<16x32xf32>
    %364 = arith.mulf %363, %192 : vector<16x32xf32>
    %c37 = arith.constant 37 : index
    %365 = memref.load %arg2[%c37] : memref<72xf32, #tpu.memory_space<smem>>
    %366 = vector.broadcast %365 : f32 to vector<16x32xf32>
    %367 = arith.mulf %366, %194 : vector<16x32xf32>
    %c38 = arith.constant 38 : index
    %368 = memref.load %arg2[%c38] : memref<72xf32, #tpu.memory_space<smem>>
    %369 = vector.broadcast %368 : f32 to vector<16x32xf32>
    %370 = arith.mulf %369, %196 : vector<16x32xf32>
    %c39 = arith.constant 39 : index
    %371 = memref.load %arg2[%c39] : memref<72xf32, #tpu.memory_space<smem>>
    %372 = vector.broadcast %371 : f32 to vector<16x32xf32>
    %373 = arith.mulf %372, %198 : vector<16x32xf32>
    %c40 = arith.constant 40 : index
    %374 = memref.load %arg2[%c40] : memref<72xf32, #tpu.memory_space<smem>>
    %375 = vector.broadcast %374 : f32 to vector<16x32xf32>
    %376 = arith.mulf %375, %200 : vector<16x32xf32>
    %c41 = arith.constant 41 : index
    %377 = memref.load %arg2[%c41] : memref<72xf32, #tpu.memory_space<smem>>
    %378 = vector.broadcast %377 : f32 to vector<16x32xf32>
    %379 = arith.mulf %378, %202 : vector<16x32xf32>
    %c42 = arith.constant 42 : index
    %380 = memref.load %arg2[%c42] : memref<72xf32, #tpu.memory_space<smem>>
    %381 = vector.broadcast %380 : f32 to vector<16x32xf32>
    %382 = arith.mulf %381, %204 : vector<16x32xf32>
    %c43 = arith.constant 43 : index
    %383 = memref.load %arg2[%c43] : memref<72xf32, #tpu.memory_space<smem>>
    %384 = vector.broadcast %383 : f32 to vector<16x32xf32>
    %385 = arith.mulf %384, %206 : vector<16x32xf32>
    %c44 = arith.constant 44 : index
    %386 = memref.load %arg2[%c44] : memref<72xf32, #tpu.memory_space<smem>>
    %387 = vector.broadcast %386 : f32 to vector<16x32xf32>
    %388 = arith.mulf %387, %208 : vector<16x32xf32>
    %c45 = arith.constant 45 : index
    %389 = memref.load %arg2[%c45] : memref<72xf32, #tpu.memory_space<smem>>
    %390 = vector.broadcast %389 : f32 to vector<16x32xf32>
    %391 = arith.mulf %390, %193 : vector<16x32xf32>
    %c46 = arith.constant 46 : index
    %392 = memref.load %arg2[%c46] : memref<72xf32, #tpu.memory_space<smem>>
    %393 = vector.broadcast %392 : f32 to vector<16x32xf32>
    %394 = arith.mulf %393, %195 : vector<16x32xf32>
    %c47 = arith.constant 47 : index
    %395 = memref.load %arg2[%c47] : memref<72xf32, #tpu.memory_space<smem>>
    %396 = vector.broadcast %395 : f32 to vector<16x32xf32>
    %397 = arith.mulf %396, %197 : vector<16x32xf32>
    %c48 = arith.constant 48 : index
    %398 = memref.load %arg2[%c48] : memref<72xf32, #tpu.memory_space<smem>>
    %399 = vector.broadcast %398 : f32 to vector<16x32xf32>
    %400 = arith.mulf %399, %199 : vector<16x32xf32>
    %c49 = arith.constant 49 : index
    %401 = memref.load %arg2[%c49] : memref<72xf32, #tpu.memory_space<smem>>
    %402 = vector.broadcast %401 : f32 to vector<16x32xf32>
    %403 = arith.mulf %402, %201 : vector<16x32xf32>
    %c50 = arith.constant 50 : index
    %404 = memref.load %arg2[%c50] : memref<72xf32, #tpu.memory_space<smem>>
    %405 = vector.broadcast %404 : f32 to vector<16x32xf32>
    %406 = arith.mulf %405, %203 : vector<16x32xf32>
    %c51 = arith.constant 51 : index
    %407 = memref.load %arg2[%c51] : memref<72xf32, #tpu.memory_space<smem>>
    %408 = vector.broadcast %407 : f32 to vector<16x32xf32>
    %409 = arith.mulf %408, %205 : vector<16x32xf32>
    %c52 = arith.constant 52 : index
    %410 = memref.load %arg2[%c52] : memref<72xf32, #tpu.memory_space<smem>>
    %411 = vector.broadcast %410 : f32 to vector<16x32xf32>
    %412 = arith.mulf %411, %207 : vector<16x32xf32>
    %c53 = arith.constant 53 : index
    %413 = memref.load %arg2[%c53] : memref<72xf32, #tpu.memory_space<smem>>
    %414 = vector.broadcast %413 : f32 to vector<16x32xf32>
    %415 = arith.mulf %414, %209 : vector<16x32xf32>
    %416 = arith.addf %364, %367 : vector<16x32xf32>
    %417 = arith.addf %370, %373 : vector<16x32xf32>
    %418 = arith.addf %376, %379 : vector<16x32xf32>
    %419 = arith.addf %382, %385 : vector<16x32xf32>
    %420 = arith.addf %388, %391 : vector<16x32xf32>
    %421 = arith.addf %394, %397 : vector<16x32xf32>
    %422 = arith.addf %400, %403 : vector<16x32xf32>
    %423 = arith.addf %406, %409 : vector<16x32xf32>
    %424 = arith.addf %412, %415 : vector<16x32xf32>
    %425 = arith.addf %416, %417 : vector<16x32xf32>
    %426 = arith.addf %418, %419 : vector<16x32xf32>
    %427 = arith.addf %420, %421 : vector<16x32xf32>
    %428 = arith.addf %422, %423 : vector<16x32xf32>
    %429 = arith.addf %425, %426 : vector<16x32xf32>
    %430 = arith.addf %427, %428 : vector<16x32xf32>
    %431 = arith.addf %429, %430 : vector<16x32xf32>
    %432 = arith.addf %431, %424 : vector<16x32xf32>
    %c2_70 = arith.constant 2 : index
    %433 = memref.load %arg3[%c2_70] : memref<4xf32, #tpu.memory_space<smem>>
    %434 = vector.broadcast %433 : f32 to vector<16x32xf32>
    %435 = arith.addf %432, %434 : vector<16x32xf32>
    %cst_71 = arith.constant 0.000000e+00 : f32
    %436 = vector.broadcast %cst_71 : f32 to vector<16x32xf32>
    %437 = arith.maximumf %435, %436 : vector<16x32xf32>
    %c54 = arith.constant 54 : index
    %438 = memref.load %arg2[%c54] : memref<72xf32, #tpu.memory_space<smem>>
    %439 = vector.broadcast %438 : f32 to vector<16x32xf32>
    %440 = arith.mulf %439, %192 : vector<16x32xf32>
    %c55 = arith.constant 55 : index
    %441 = memref.load %arg2[%c55] : memref<72xf32, #tpu.memory_space<smem>>
    %442 = vector.broadcast %441 : f32 to vector<16x32xf32>
    %443 = arith.mulf %442, %194 : vector<16x32xf32>
    %c56 = arith.constant 56 : index
    %444 = memref.load %arg2[%c56] : memref<72xf32, #tpu.memory_space<smem>>
    %445 = vector.broadcast %444 : f32 to vector<16x32xf32>
    %446 = arith.mulf %445, %196 : vector<16x32xf32>
    %c57 = arith.constant 57 : index
    %447 = memref.load %arg2[%c57] : memref<72xf32, #tpu.memory_space<smem>>
    %448 = vector.broadcast %447 : f32 to vector<16x32xf32>
    %449 = arith.mulf %448, %198 : vector<16x32xf32>
    %c58 = arith.constant 58 : index
    %450 = memref.load %arg2[%c58] : memref<72xf32, #tpu.memory_space<smem>>
    %451 = vector.broadcast %450 : f32 to vector<16x32xf32>
    %452 = arith.mulf %451, %200 : vector<16x32xf32>
    %c59 = arith.constant 59 : index
    %453 = memref.load %arg2[%c59] : memref<72xf32, #tpu.memory_space<smem>>
    %454 = vector.broadcast %453 : f32 to vector<16x32xf32>
    %455 = arith.mulf %454, %202 : vector<16x32xf32>
    %c60 = arith.constant 60 : index
    %456 = memref.load %arg2[%c60] : memref<72xf32, #tpu.memory_space<smem>>
    %457 = vector.broadcast %456 : f32 to vector<16x32xf32>
    %458 = arith.mulf %457, %204 : vector<16x32xf32>
    %c61 = arith.constant 61 : index
    %459 = memref.load %arg2[%c61] : memref<72xf32, #tpu.memory_space<smem>>
    %460 = vector.broadcast %459 : f32 to vector<16x32xf32>
    %461 = arith.mulf %460, %206 : vector<16x32xf32>
    %c62 = arith.constant 62 : index
    %462 = memref.load %arg2[%c62] : memref<72xf32, #tpu.memory_space<smem>>
    %463 = vector.broadcast %462 : f32 to vector<16x32xf32>
    %464 = arith.mulf %463, %208 : vector<16x32xf32>
    %c63 = arith.constant 63 : index
    %465 = memref.load %arg2[%c63] : memref<72xf32, #tpu.memory_space<smem>>
    %466 = vector.broadcast %465 : f32 to vector<16x32xf32>
    %467 = arith.mulf %466, %193 : vector<16x32xf32>
    %c64 = arith.constant 64 : index
    %468 = memref.load %arg2[%c64] : memref<72xf32, #tpu.memory_space<smem>>
    %469 = vector.broadcast %468 : f32 to vector<16x32xf32>
    %470 = arith.mulf %469, %195 : vector<16x32xf32>
    %c65 = arith.constant 65 : index
    %471 = memref.load %arg2[%c65] : memref<72xf32, #tpu.memory_space<smem>>
    %472 = vector.broadcast %471 : f32 to vector<16x32xf32>
    %473 = arith.mulf %472, %197 : vector<16x32xf32>
    %c66 = arith.constant 66 : index
    %474 = memref.load %arg2[%c66] : memref<72xf32, #tpu.memory_space<smem>>
    %475 = vector.broadcast %474 : f32 to vector<16x32xf32>
    %476 = arith.mulf %475, %199 : vector<16x32xf32>
    %c67 = arith.constant 67 : index
    %477 = memref.load %arg2[%c67] : memref<72xf32, #tpu.memory_space<smem>>
    %478 = vector.broadcast %477 : f32 to vector<16x32xf32>
    %479 = arith.mulf %478, %201 : vector<16x32xf32>
    %c68 = arith.constant 68 : index
    %480 = memref.load %arg2[%c68] : memref<72xf32, #tpu.memory_space<smem>>
    %481 = vector.broadcast %480 : f32 to vector<16x32xf32>
    %482 = arith.mulf %481, %203 : vector<16x32xf32>
    %c69 = arith.constant 69 : index
    %483 = memref.load %arg2[%c69] : memref<72xf32, #tpu.memory_space<smem>>
    %484 = vector.broadcast %483 : f32 to vector<16x32xf32>
    %485 = arith.mulf %484, %205 : vector<16x32xf32>
    %c70 = arith.constant 70 : index
    %486 = memref.load %arg2[%c70] : memref<72xf32, #tpu.memory_space<smem>>
    %487 = vector.broadcast %486 : f32 to vector<16x32xf32>
    %488 = arith.mulf %487, %207 : vector<16x32xf32>
    %c71 = arith.constant 71 : index
    %489 = memref.load %arg2[%c71] : memref<72xf32, #tpu.memory_space<smem>>
    %490 = vector.broadcast %489 : f32 to vector<16x32xf32>
    %491 = arith.mulf %490, %209 : vector<16x32xf32>
    %492 = arith.addf %440, %443 : vector<16x32xf32>
    %493 = arith.addf %446, %449 : vector<16x32xf32>
    %494 = arith.addf %452, %455 : vector<16x32xf32>
    %495 = arith.addf %458, %461 : vector<16x32xf32>
    %496 = arith.addf %464, %467 : vector<16x32xf32>
    %497 = arith.addf %470, %473 : vector<16x32xf32>
    %498 = arith.addf %476, %479 : vector<16x32xf32>
    %499 = arith.addf %482, %485 : vector<16x32xf32>
    %500 = arith.addf %488, %491 : vector<16x32xf32>
    %501 = arith.addf %492, %493 : vector<16x32xf32>
    %502 = arith.addf %494, %495 : vector<16x32xf32>
    %503 = arith.addf %496, %497 : vector<16x32xf32>
    %504 = arith.addf %498, %499 : vector<16x32xf32>
    %505 = arith.addf %501, %502 : vector<16x32xf32>
    %506 = arith.addf %503, %504 : vector<16x32xf32>
    %507 = arith.addf %505, %506 : vector<16x32xf32>
    %508 = arith.addf %507, %500 : vector<16x32xf32>
    %c3_72 = arith.constant 3 : index
    %509 = memref.load %arg3[%c3_72] : memref<4xf32, #tpu.memory_space<smem>>
    %510 = vector.broadcast %509 : f32 to vector<16x32xf32>
    %511 = arith.addf %508, %510 : vector<16x32xf32>
    %cst_73 = arith.constant 0.000000e+00 : f32
    %512 = vector.broadcast %cst_73 : f32 to vector<16x32xf32>
    %513 = arith.maximumf %511, %512 : vector<16x32xf32>
    %514 = tpu.concatenate %285, %361, %437, %513 in 0 : vector<16x32xf32>, vector<16x32xf32>, vector<16x32xf32>, vector<16x32xf32> -> vector<64x32xf32>
    %c31_i32_74 = arith.constant 31 : i32
    %515 = tpu.dynamic_rotate %514 by %c31_i32_74 dim 1 : vector<64x32xf32>, i32 -> vector<64x32xf32>
    %516 = arith.maximumf %514, %515 : vector<64x32xf32>
    %517 = arith.truncf %516 : vector<64x32xf32> to vector<64x32xbf16>
    %c0_75 = arith.constant 0 : index
    %c0_76 = arith.constant 0 : index
    %518 = vector.load %arg9[%c0_75, %c0_76] : memref<32x16xbf16, #tpu.memory_space<vmem>>, vector<32x16xbf16>
    %cst_77 = arith.constant dense<0.000000e+00> : vector<64x16xf32>
    %519 = tpu.matmul %517, %518, %cst_77 {dimension_numbers = #tpu.dot_dimension_numbers<[1], [0], [0], [1], [0, 0, 1, 1], [], []>} : vector<64x32xbf16>, vector<32x16xbf16>, vector<64x16xf32> -> vector<64x16xf32>
    %c63_i32_78 = arith.constant 63 : i32
    %520 = tpu.dynamic_rotate %519 by %c63_i32_78 dim 0 : vector<64x16xf32>, i32 -> vector<64x16xf32>
    %521 = arith.maximumf %519, %520 : vector<64x16xf32>
    %c0_79 = arith.constant 0 : index
    %c0_80 = arith.constant 0 : index
    %522 = vector.load %arg10[%c0_79, %c0_80] : memref<32x64xbf16, #tpu.memory_space<vmem>>, vector<32x64xbf16>
    %523 = arith.truncf %521 : vector<64x16xf32> to vector<64x16xbf16>
    %cst_81 = arith.constant dense<0.000000e+00> : vector<32x16xf32>
    %524 = tpu.matmul %522, %523, %cst_81 {dimension_numbers = #tpu.dot_dimension_numbers<[1], [0], [0], [1], [0, 0, 1, 1], [], []>} : vector<32x64xbf16>, vector<64x16xbf16>, vector<32x16xf32> -> vector<32x16xf32>
    %525 = arith.truncf %524 : vector<32x16xf32> to vector<32x16xbf16>
    %c0_82 = arith.constant 0 : index
    %c0_83 = arith.constant 0 : index
    %526 = vector.load %arg11[%c0_82, %c0_83] : memref<16x512xbf16, #tpu.memory_space<vmem>>, vector<16x512xbf16>
    %cst_84 = arith.constant dense<0.000000e+00> : vector<32x512xf32>
    %527 = tpu.matmul %525, %526, %cst_84 {dimension_numbers = #tpu.dot_dimension_numbers<[1], [0], [0], [1], [0, 0, 1, 1], [], []>} : vector<32x16xbf16>, vector<16x512xbf16>, vector<32x512xf32> -> vector<32x512xf32>
    %c0_85 = arith.constant 0 : index
    %c0_86 = arith.constant 0 : index
    %528 = vector.load %arg12[%c0_85, %c0_86] : memref<32x512xf32, #tpu.memory_space<vmem>>, vector<32x512xf32>
    %529 = arith.mulf %527, %528 : vector<32x512xf32>
    %cst_87 = arith.constant dense<0.000000e+00> : vector<512xf32>
    %530 = vector.multi_reduction <add>, %529, %cst_87 [0] : vector<32x512xf32> to vector<512xf32>
    %531 = vector.shape_cast %530 : vector<512xf32> to vector<1x512xf32>
    %532 = arith.truncf %531 : vector<1x512xf32> to vector<1x512xbf16>
    %c0_88 = arith.constant 0 : index
    %c0_89 = arith.constant 0 : index
    %533 = vector.load %arg5[%c0_88, %c0_89] : memref<1x128xf32, #tpu.memory_space<vmem>>, vector<1x128xf32>
    %534 = arith.truncf %533 : vector<1x128xf32> to vector<1x128xbf16>
    %c0_90 = arith.constant 0 : index
    %c0_91 = arith.constant 0 : index
    %535 = vector.load %arg14[%c0_90, %c0_91] : memref<128x512xbf16, #tpu.memory_space<vmem>>, vector<128x512xbf16>
    %cst_92 = arith.constant dense<0.000000e+00> : vector<1x512xf32>
    %536 = tpu.matmul %534, %535, %cst_92 {dimension_numbers = #tpu.dot_dimension_numbers<[1], [0], [0], [1], [0, 0, 1, 1], [], []>} : vector<1x128xbf16>, vector<128x512xbf16>, vector<1x512xf32> -> vector<1x512xf32>
    %c0_93 = arith.constant 0 : index
    %c0_94 = arith.constant 0 : index
    %537 = vector.load %arg15[%c0_93, %c0_94] : memref<1x512xf32, #tpu.memory_space<vmem>>, vector<1x512xf32>
    %538 = arith.addf %536, %537 : vector<1x512xf32>
    %c0_i32_95 = arith.constant 0 : i32
    %c0_i32_96 = arith.constant 0 : i32
    %c0_i32_97 = arith.constant 0 : i32
    %c0_i32_98 = arith.constant 0 : i32
    %c0_i32_99 = arith.constant 0 : i32
    %539 = tpu.memref_slice %arg13[%c0_i32_95, %c0_i32_98, %c0_i32_99] : memref<4x512x128xbf16, #tpu.memory_space<any>> -> memref<1x512x128xbf16, #tpu.memory_space<any>>
    %540 = tpu.memref_squeeze %539 : memref<1x512x128xbf16, #tpu.memory_space<any>> -> memref<512x128xbf16, #tpu.memory_space<any>>
    %c0_i32_100 = arith.constant 0 : i32
    %c0_i32_101 = arith.constant 0 : i32
    %541 = tpu.memref_slice %arg25[%c0_i32_96, %c0_i32_100, %c0_i32_101] : memref<2x512x128xbf16, #tpu.memory_space<vmem>> -> memref<1x512x128xbf16, #tpu.memory_space<vmem>>
    %542 = tpu.memref_squeeze %541 : memref<1x512x128xbf16, #tpu.memory_space<vmem>> -> memref<512x128xbf16, #tpu.memory_space<vmem>>
    %543 = tpu.memref_slice %arg26[%c0_i32_97] : memref<2x!tpu.dma_semaphore, #tpu.memory_space<semaphore_mem>> -> memref<1x!tpu.dma_semaphore, #tpu.memory_space<semaphore_mem>>
    %544 = tpu.memref_squeeze %543 : memref<1x!tpu.dma_semaphore, #tpu.memory_space<semaphore_mem>> -> memref<!tpu.dma_semaphore, #tpu.memory_space<semaphore_mem>>
    tpu.wait_dma2 semaphore(%544 : memref<!tpu.dma_semaphore, #tpu.memory_space<semaphore_mem>>) src(%540 : memref<512x128xbf16, #tpu.memory_space<any>>) dst(%542 : memref<512x128xbf16, #tpu.memory_space<vmem>>)
    %c0_102 = arith.constant 0 : index
    %c0_103 = arith.constant 0 : index
    %c0_104 = arith.constant 0 : index
    %545 = vector.load %arg25[%c0_102, %c0_103, %c0_104] : memref<2x512x128xbf16, #tpu.memory_space<vmem>>, vector<1x512x128xbf16>
    %546 = vector.shape_cast %545 : vector<1x512x128xbf16> to vector<512x128xbf16>
    %cst_105 = arith.constant dense<0.000000e+00> : vector<1x128xf32>
    %547 = tpu.matmul %532, %546, %cst_105 {dimension_numbers = #tpu.dot_dimension_numbers<[1], [0], [0], [1], [0, 0, 1, 1], [], []>} : vector<1x512xbf16>, vector<512x128xbf16>, vector<1x128xf32> -> vector<1x128xf32>
    %c2_i32 = arith.constant 2 : i32
    %c0_i32_106 = arith.constant 0 : i32
    %c0_i32_107 = arith.constant 0 : i32
    %c0_i32_108 = arith.constant 0 : i32
    %c0_i32_109 = arith.constant 0 : i32
    %548 = tpu.memref_slice %arg13[%c2_i32, %c0_i32_108, %c0_i32_109] : memref<4x512x128xbf16, #tpu.memory_space<any>> -> memref<1x512x128xbf16, #tpu.memory_space<any>>
    %549 = tpu.memref_squeeze %548 : memref<1x512x128xbf16, #tpu.memory_space<any>> -> memref<512x128xbf16, #tpu.memory_space<any>>
    %c0_i32_110 = arith.constant 0 : i32
    %c0_i32_111 = arith.constant 0 : i32
    %550 = tpu.memref_slice %arg25[%c0_i32_106, %c0_i32_110, %c0_i32_111] : memref<2x512x128xbf16, #tpu.memory_space<vmem>> -> memref<1x512x128xbf16, #tpu.memory_space<vmem>>
    %551 = tpu.memref_squeeze %550 : memref<1x512x128xbf16, #tpu.memory_space<vmem>> -> memref<512x128xbf16, #tpu.memory_space<vmem>>
    %552 = tpu.memref_slice %arg26[%c0_i32_107] : memref<2x!tpu.dma_semaphore, #tpu.memory_space<semaphore_mem>> -> memref<1x!tpu.dma_semaphore, #tpu.memory_space<semaphore_mem>>
    %553 = tpu.memref_squeeze %552 : memref<1x!tpu.dma_semaphore, #tpu.memory_space<semaphore_mem>> -> memref<!tpu.dma_semaphore, #tpu.memory_space<semaphore_mem>>
    tpu.enqueue_dma source(%549 : memref<512x128xbf16, #tpu.memory_space<any>>) target(%551 : memref<512x128xbf16, #tpu.memory_space<vmem>>) target_semaphore(%553 : memref<!tpu.dma_semaphore, #tpu.memory_space<semaphore_mem>>)
    %c1_i32_112 = arith.constant 1 : i32
    %c1_i32_113 = arith.constant 1 : i32
    %c1_i32_114 = arith.constant 1 : i32
    %c0_i32_115 = arith.constant 0 : i32
    %c0_i32_116 = arith.constant 0 : i32
    %554 = tpu.memref_slice %arg13[%c1_i32_112, %c0_i32_115, %c0_i32_116] : memref<4x512x128xbf16, #tpu.memory_space<any>> -> memref<1x512x128xbf16, #tpu.memory_space<any>>
    %555 = tpu.memref_squeeze %554 : memref<1x512x128xbf16, #tpu.memory_space<any>> -> memref<512x128xbf16, #tpu.memory_space<any>>
    %c0_i32_117 = arith.constant 0 : i32
    %c0_i32_118 = arith.constant 0 : i32
    %556 = tpu.memref_slice %arg25[%c1_i32_113, %c0_i32_117, %c0_i32_118] : memref<2x512x128xbf16, #tpu.memory_space<vmem>> -> memref<1x512x128xbf16, #tpu.memory_space<vmem>>
    %557 = tpu.memref_squeeze %556 : memref<1x512x128xbf16, #tpu.memory_space<vmem>> -> memref<512x128xbf16, #tpu.memory_space<vmem>>
    %558 = tpu.memref_slice %arg26[%c1_i32_114] : memref<2x!tpu.dma_semaphore, #tpu.memory_space<semaphore_mem>> -> memref<1x!tpu.dma_semaphore, #tpu.memory_space<semaphore_mem>>
    %559 = tpu.memref_squeeze %558 : memref<1x!tpu.dma_semaphore, #tpu.memory_space<semaphore_mem>> -> memref<!tpu.dma_semaphore, #tpu.memory_space<semaphore_mem>>
    tpu.wait_dma2 semaphore(%559 : memref<!tpu.dma_semaphore, #tpu.memory_space<semaphore_mem>>) src(%555 : memref<512x128xbf16, #tpu.memory_space<any>>) dst(%557 : memref<512x128xbf16, #tpu.memory_space<vmem>>)
    %c1_119 = arith.constant 1 : index
    %c0_120 = arith.constant 0 : index
    %c0_121 = arith.constant 0 : index
    %560 = vector.load %arg25[%c1_119, %c0_120, %c0_121] : memref<2x512x128xbf16, #tpu.memory_space<vmem>>, vector<1x512x128xbf16>
    %561 = vector.shape_cast %560 : vector<1x512x128xbf16> to vector<512x128xbf16>
    %cst_122 = arith.constant dense<0.000000e+00> : vector<1x128xf32>
    %562 = tpu.matmul %532, %561, %cst_122 {dimension_numbers = #tpu.dot_dimension_numbers<[1], [0], [0], [1], [0, 0, 1, 1], [], []>} : vector<1x512xbf16>, vector<512x128xbf16>, vector<1x128xf32> -> vector<1x128xf32>
    %c3_i32 = arith.constant 3 : i32
    %c1_i32_123 = arith.constant 1 : i32
    %c1_i32_124 = arith.constant 1 : i32
    %c0_i32_125 = arith.constant 0 : i32
    %c0_i32_126 = arith.constant 0 : i32
    %563 = tpu.memref_slice %arg13[%c3_i32, %c0_i32_125, %c0_i32_126] : memref<4x512x128xbf16, #tpu.memory_space<any>> -> memref<1x512x128xbf16, #tpu.memory_space<any>>
    %564 = tpu.memref_squeeze %563 : memref<1x512x128xbf16, #tpu.memory_space<any>> -> memref<512x128xbf16, #tpu.memory_space<any>>
    %c0_i32_127 = arith.constant 0 : i32
    %c0_i32_128 = arith.constant 0 : i32
    %565 = tpu.memref_slice %arg25[%c1_i32_123, %c0_i32_127, %c0_i32_128] : memref<2x512x128xbf16, #tpu.memory_space<vmem>> -> memref<1x512x128xbf16, #tpu.memory_space<vmem>>
    %566 = tpu.memref_squeeze %565 : memref<1x512x128xbf16, #tpu.memory_space<vmem>> -> memref<512x128xbf16, #tpu.memory_space<vmem>>
    %567 = tpu.memref_slice %arg26[%c1_i32_124] : memref<2x!tpu.dma_semaphore, #tpu.memory_space<semaphore_mem>> -> memref<1x!tpu.dma_semaphore, #tpu.memory_space<semaphore_mem>>
    %568 = tpu.memref_squeeze %567 : memref<1x!tpu.dma_semaphore, #tpu.memory_space<semaphore_mem>> -> memref<!tpu.dma_semaphore, #tpu.memory_space<semaphore_mem>>
    tpu.enqueue_dma source(%564 : memref<512x128xbf16, #tpu.memory_space<any>>) target(%566 : memref<512x128xbf16, #tpu.memory_space<vmem>>) target_semaphore(%568 : memref<!tpu.dma_semaphore, #tpu.memory_space<semaphore_mem>>)
    %c2_i32_129 = arith.constant 2 : i32
    %c0_i32_130 = arith.constant 0 : i32
    %c0_i32_131 = arith.constant 0 : i32
    %c0_i32_132 = arith.constant 0 : i32
    %c0_i32_133 = arith.constant 0 : i32
    %569 = tpu.memref_slice %arg13[%c2_i32_129, %c0_i32_132, %c0_i32_133] : memref<4x512x128xbf16, #tpu.memory_space<any>> -> memref<1x512x128xbf16, #tpu.memory_space<any>>
    %570 = tpu.memref_squeeze %569 : memref<1x512x128xbf16, #tpu.memory_space<any>> -> memref<512x128xbf16, #tpu.memory_space<any>>
    %c0_i32_134 = arith.constant 0 : i32
    %c0_i32_135 = arith.constant 0 : i32
    %571 = tpu.memref_slice %arg25[%c0_i32_130, %c0_i32_134, %c0_i32_135] : memref<2x512x128xbf16, #tpu.memory_space<vmem>> -> memref<1x512x128xbf16, #tpu.memory_space<vmem>>
    %572 = tpu.memref_squeeze %571 : memref<1x512x128xbf16, #tpu.memory_space<vmem>> -> memref<512x128xbf16, #tpu.memory_space<vmem>>
    %573 = tpu.memref_slice %arg26[%c0_i32_131] : memref<2x!tpu.dma_semaphore, #tpu.memory_space<semaphore_mem>> -> memref<1x!tpu.dma_semaphore, #tpu.memory_space<semaphore_mem>>
    %574 = tpu.memref_squeeze %573 : memref<1x!tpu.dma_semaphore, #tpu.memory_space<semaphore_mem>> -> memref<!tpu.dma_semaphore, #tpu.memory_space<semaphore_mem>>
    tpu.wait_dma2 semaphore(%574 : memref<!tpu.dma_semaphore, #tpu.memory_space<semaphore_mem>>) src(%570 : memref<512x128xbf16, #tpu.memory_space<any>>) dst(%572 : memref<512x128xbf16, #tpu.memory_space<vmem>>)
    %c0_136 = arith.constant 0 : index
    %c0_137 = arith.constant 0 : index
    %c0_138 = arith.constant 0 : index
    %575 = vector.load %arg25[%c0_136, %c0_137, %c0_138] : memref<2x512x128xbf16, #tpu.memory_space<vmem>>, vector<1x512x128xbf16>
    %576 = vector.shape_cast %575 : vector<1x512x128xbf16> to vector<512x128xbf16>
    %cst_139 = arith.constant dense<0.000000e+00> : vector<1x128xf32>
    %577 = tpu.matmul %532, %576, %cst_139 {dimension_numbers = #tpu.dot_dimension_numbers<[1], [0], [0], [1], [0, 0, 1, 1], [], []>} : vector<1x512xbf16>, vector<512x128xbf16>, vector<1x128xf32> -> vector<1x128xf32>
    %c3_i32_140 = arith.constant 3 : i32
    %c1_i32_141 = arith.constant 1 : i32
    %c1_i32_142 = arith.constant 1 : i32
    %c0_i32_143 = arith.constant 0 : i32
    %c0_i32_144 = arith.constant 0 : i32
    %578 = tpu.memref_slice %arg13[%c3_i32_140, %c0_i32_143, %c0_i32_144] : memref<4x512x128xbf16, #tpu.memory_space<any>> -> memref<1x512x128xbf16, #tpu.memory_space<any>>
    %579 = tpu.memref_squeeze %578 : memref<1x512x128xbf16, #tpu.memory_space<any>> -> memref<512x128xbf16, #tpu.memory_space<any>>
    %c0_i32_145 = arith.constant 0 : i32
    %c0_i32_146 = arith.constant 0 : i32
    %580 = tpu.memref_slice %arg25[%c1_i32_141, %c0_i32_145, %c0_i32_146] : memref<2x512x128xbf16, #tpu.memory_space<vmem>> -> memref<1x512x128xbf16, #tpu.memory_space<vmem>>
    %581 = tpu.memref_squeeze %580 : memref<1x512x128xbf16, #tpu.memory_space<vmem>> -> memref<512x128xbf16, #tpu.memory_space<vmem>>
    %582 = tpu.memref_slice %arg26[%c1_i32_142] : memref<2x!tpu.dma_semaphore, #tpu.memory_space<semaphore_mem>> -> memref<1x!tpu.dma_semaphore, #tpu.memory_space<semaphore_mem>>
    %583 = tpu.memref_squeeze %582 : memref<1x!tpu.dma_semaphore, #tpu.memory_space<semaphore_mem>> -> memref<!tpu.dma_semaphore, #tpu.memory_space<semaphore_mem>>
    tpu.wait_dma2 semaphore(%583 : memref<!tpu.dma_semaphore, #tpu.memory_space<semaphore_mem>>) src(%579 : memref<512x128xbf16, #tpu.memory_space<any>>) dst(%581 : memref<512x128xbf16, #tpu.memory_space<vmem>>)
    %c1_147 = arith.constant 1 : index
    %c0_148 = arith.constant 0 : index
    %c0_149 = arith.constant 0 : index
    %584 = vector.load %arg25[%c1_147, %c0_148, %c0_149] : memref<2x512x128xbf16, #tpu.memory_space<vmem>>, vector<1x512x128xbf16>
    %585 = vector.shape_cast %584 : vector<1x512x128xbf16> to vector<512x128xbf16>
    %cst_150 = arith.constant dense<0.000000e+00> : vector<1x128xf32>
    %586 = tpu.matmul %532, %585, %cst_150 {dimension_numbers = #tpu.dot_dimension_numbers<[1], [0], [0], [1], [0, 0, 1, 1], [], []>} : vector<1x512xbf16>, vector<512x128xbf16>, vector<1x128xf32> -> vector<1x128xf32>
    %587 = tpu.concatenate %547, %562, %577, %586 in 1 : vector<1x128xf32>, vector<1x128xf32>, vector<1x128xf32>, vector<1x128xf32> -> vector<1x512xf32>
    %588 = arith.addf %538, %587 : vector<1x512xf32>
    %589 = vector.extract_strided_slice %588 {offsets = [0, 0], sizes = [1, 128], strides = [1, 1]} : vector<1x512xf32> to vector<1x128xf32>
    %cst_151 = arith.constant 0.000000e+00 : f32
    %590 = vector.broadcast %cst_151 : f32 to vector<1x128xf32>
    %591 = arith.subf %590, %589 : vector<1x128xf32>
    %592 = math.exp %591 : vector<1x128xf32>
    %cst_152 = arith.constant 1.000000e+00 : f32
    %593 = vector.broadcast %cst_152 : f32 to vector<1x128xf32>
    %594 = arith.addf %593, %592 : vector<1x128xf32>
    %595 = tpu.reciprocal %594 {approx = true} : vector<1x128xf32> -> vector<1x128xf32>
    %596 = vector.extract_strided_slice %588 {offsets = [0, 128], sizes = [1, 128], strides = [1, 1]} : vector<1x512xf32> to vector<1x128xf32>
    %cst_153 = arith.constant 0.000000e+00 : f32
    %597 = vector.broadcast %cst_153 : f32 to vector<1x128xf32>
    %598 = arith.subf %597, %596 : vector<1x128xf32>
    %599 = math.exp %598 : vector<1x128xf32>
    %cst_154 = arith.constant 1.000000e+00 : f32
    %600 = vector.broadcast %cst_154 : f32 to vector<1x128xf32>
    %601 = arith.addf %600, %599 : vector<1x128xf32>
    %602 = tpu.reciprocal %601 {approx = true} : vector<1x128xf32> -> vector<1x128xf32>
    %603 = vector.extract_strided_slice %588 {offsets = [0, 256], sizes = [1, 128], strides = [1, 1]} : vector<1x512xf32> to vector<1x128xf32>
    %604 = math.tanh %603 : vector<1x128xf32>
    %605 = vector.extract_strided_slice %588 {offsets = [0, 384], sizes = [1, 128], strides = [1, 1]} : vector<1x512xf32> to vector<1x128xf32>
    %cst_155 = arith.constant 0.000000e+00 : f32
    %606 = vector.broadcast %cst_155 : f32 to vector<1x128xf32>
    %607 = arith.subf %606, %605 : vector<1x128xf32>
    %608 = math.exp %607 : vector<1x128xf32>
    %cst_156 = arith.constant 1.000000e+00 : f32
    %609 = vector.broadcast %cst_156 : f32 to vector<1x128xf32>
    %610 = arith.addf %609, %608 : vector<1x128xf32>
    %611 = tpu.reciprocal %610 {approx = true} : vector<1x128xf32> -> vector<1x128xf32>
    %c0_157 = arith.constant 0 : index
    %c0_158 = arith.constant 0 : index
    %612 = vector.load %arg6[%c0_157, %c0_158] : memref<1x128xf32, #tpu.memory_space<vmem>>, vector<1x128xf32>
    %613 = arith.mulf %602, %612 : vector<1x128xf32>
    %614 = arith.mulf %595, %604 : vector<1x128xf32>
    %615 = arith.addf %613, %614 : vector<1x128xf32>
    %616 = math.tanh %615 : vector<1x128xf32>
    %617 = arith.mulf %611, %616 : vector<1x128xf32>
    %c0_159 = arith.constant 0 : index
    %c0_160 = arith.constant 0 : index
    %618 = vector.load %arg24[%c0_159, %c0_160] : memref<1x128xf32, #tpu.memory_space<vmem>>, vector<1x128xf32>
    tpu.vector_store %arg24[%c0_159, %c0_160], %615 {strides = array<i32>} : memref<1x128xf32, #tpu.memory_space<vmem>>, vector<1x128xf32>,
    %c0_161 = arith.constant 0 : index
    %c0_162 = arith.constant 0 : index
    %619 = vector.load %arg23[%c0_161, %c0_162] : memref<1x128xf32, #tpu.memory_space<vmem>>, vector<1x128xf32>
    tpu.vector_store %arg23[%c0_161, %c0_162], %617 {strides = array<i32>} : memref<1x128xf32, #tpu.memory_space<vmem>>, vector<1x128xf32>,
    %620 = arith.truncf %617 : vector<1x128xf32> to vector<1x128xbf16>
    %c0_163 = arith.constant 0 : index
    %c0_164 = arith.constant 0 : index
    %621 = vector.load %arg16[%c0_163, %c0_164] : memref<128x32xbf16, #tpu.memory_space<vmem>>, vector<128x32xbf16>
    %cst_165 = arith.constant dense<0.000000e+00> : vector<1x32xf32>
    %622 = tpu.matmul %620, %621, %cst_165 {dimension_numbers = #tpu.dot_dimension_numbers<[1], [0], [0], [1], [0, 0, 1, 1], [], []>} : vector<1x128xbf16>, vector<128x32xbf16>, vector<1x32xf32> -> vector<1x32xf32>
    %c0_166 = arith.constant 0 : index
    %c0_167 = arith.constant 0 : index
    %623 = vector.load %arg17[%c0_166, %c0_167] : memref<1x32xf32, #tpu.memory_space<vmem>>, vector<1x32xf32>
    %624 = arith.addf %622, %623 : vector<1x32xf32>
    %cst_168 = arith.constant 0.000000e+00 : f32
    %625 = vector.broadcast %cst_168 : f32 to vector<1x32xf32>
    %626 = arith.maximumf %624, %625 : vector<1x32xf32>
    %c0_169 = arith.constant 0 : index
    %c0_170 = arith.constant 0 : index
    %627 = vector.load %arg18[%c0_169, %c0_170] : memref<32x8xf32, #tpu.memory_space<vmem>>, vector<32x8xf32>
    %cst_171 = arith.constant dense<0.000000e+00> : vector<1x8xf32>
    %628 = tpu.matmul %626, %627, %cst_171 {dimension_numbers = #tpu.dot_dimension_numbers<[1], [0], [0], [1], [0, 0, 1, 1], [], []>} : vector<1x32xf32>, vector<32x8xf32>, vector<1x8xf32> -> vector<1x8xf32>
    %c0_172 = arith.constant 0 : index
    %c0_173 = arith.constant 0 : index
    %629 = vector.load %arg19[%c0_172, %c0_173] : memref<1x8xf32, #tpu.memory_space<vmem>>, vector<1x8xf32>
    %630 = arith.addf %628, %629 : vector<1x8xf32>
    %cst_174 = arith.constant 0.000000e+00 : f32
    %631 = vector.broadcast %cst_174 : f32 to vector<1x8xf32>
    %632 = arith.maximumf %630, %631 : vector<1x8xf32>
    %c0_175 = arith.constant 0 : index
    %c0_176 = arith.constant 0 : index
    %633 = vector.load %arg20[%c0_175, %c0_176] : memref<8x2xf32, #tpu.memory_space<vmem>>, vector<8x2xf32>
    %cst_177 = arith.constant dense<0.000000e+00> : vector<1x2xf32>
    %634 = tpu.matmul %632, %633, %cst_177 {dimension_numbers = #tpu.dot_dimension_numbers<[1], [0], [0], [1], [0, 0, 1, 1], [], []>} : vector<1x8xf32>, vector<8x2xf32>, vector<1x2xf32> -> vector<1x2xf32>
    %c0_178 = arith.constant 0 : index
    %c0_179 = arith.constant 0 : index
    %635 = vector.load %arg21[%c0_178, %c0_179] : memref<1x2xf32, #tpu.memory_space<vmem>>, vector<1x2xf32>
    %636 = arith.addf %634, %635 : vector<1x2xf32>
    %c0_180 = arith.constant 0 : index
    %c0_181 = arith.constant 0 : index
    %637 = vector.load %arg22[%c0_180, %c0_181] : memref<1x2xf32, #tpu.memory_space<vmem>>, vector<1x2xf32>
    tpu.vector_store %arg22[%c0_180, %c0_181], %636 {strides = array<i32>} : memref<1x2xf32, #tpu.memory_space<vmem>>, vector<1x2xf32>,
    return
  }
}

</mosaic_0001>

<bundles_post_ra>
// kernel: tpu_custom_call.1
= control target key start
LH: loop header
LB: loop body
LE: loop exit
PB: predicated region body
PF: predicated region fallthrough
CT: control target
= control target key end

     0   :  { %s7573_s0 = inlined_call_operand.hbm [shape: f32[18], index: 0, kind: input, shape index: {}]   ;;  %s7574_s1 = inlined_call_operand.hbm [shape: f32[2], index: 1, kind: input, shape index: {}]   ;;  %s7575_s2 = inlined_call_operand.hbm [shape: f32[72], index: 2, kind: input, shape index: {}]   ;;  %s7576_s3 = inlined_call_operand.hbm [shape: f32[4], index: 3, kind: input, shape index: {}]   ;;  %s7577_s4 = inlined_call_operand.vmem [shape: f32[32,64], index: 4, kind: input, shape index: {}]   ;;  %s7578_s5 = inlined_call_operand.hbm [shape: f32[1,128], index: 5, kind: input, shape index: {}]   ;;  %s7579_s6 = inlined_call_operand.hbm [shape: f32[1,128], index: 6, kind: input, shape index: {}]   ;;  %s7580_s7 = inlined_call_operand.vmem [shape: bf16[64,32], index: 7, kind: input, shape index: {}]   ;;  %s7581_s8 = inlined_call_operand.vmem [shape: bf16[32,64], index: 8, kind: input, shape index: {}]   ;;  %s7582_s9 = inlined_call_operand.vmem [shape: bf16[32,16], index: 9, kind: input, shape index: {}]   ;;  %s7583_s10 = inlined_call_operand.hbm [shape: bf16[32,64], index: 10, kind: input, shape index: {}]   ;;  %s7584_s11 = inlined_call_operand.vmem [shape: bf16[16,512], index: 11, kind: input, shape index: {}]   ;;  %s7585_s12 = inlined_call_operand.vmem [shape: f32[32,512], index: 12, kind: input, shape index: {}]   ;;  %s7586_s13 = inlined_call_operand.hbm [shape: bf16[4,512,128], index: 13, kind: input, shape index: {}]   ;;  %s7587_s14 = inlined_call_operand.hbm [shape: bf16[128,512], index: 14, kind: input, shape index: {}]   ;;  %s7588_s15 = inlined_call_operand.hbm [shape: f32[1,512], index: 15, kind: input, shape index: {}]   ;;  %s7589_s16 = inlined_call_operand.vmem [shape: bf16[128,32], index: 16, kind: input, shape index: {}]   ;;  %s7590_s17 = inlined_call_operand.hbm [shape: f32[1,32], index: 17, kind: input, shape index: {}]   ;;  %s7591_s18 = inlined_call_operand.vmem [shape: f32[32,8], index: 18, kind: input, shape index: {}]   ;;  %s7592_s19 = inlined_call_operand.hbm [shape: f32[1,8], index: 19, kind: input, shape index: {}]   ;;  %s7593_s20 = inlined_call_operand.vmem [shape: f32[8,2], index: 20, kind: input, shape index: {}]   ;;  %s7594_s21 = inlined_call_operand.vmem [shape: f32[1,2], index: 21, kind: input, shape index: {}]   ;;  %s7595_s22 = inlined_call_operand.hbm [shape: f32[1,2], index: 22, kind: output, shape index: {0}]   ;;  %s7596_s23 = inlined_call_operand.hbm [shape: f32[1,128], index: 23, kind: output, shape index: {1}]   ;;  %s7597_s24 = inlined_call_operand.hbm [shape: f32[1,128], index: 24, kind: output, shape index: {2}]  }
   0x1   :  { %7630 = sst [smem:[#allocation73_spill]] %s7573_s0 }
   0x2   :  { %7631 = sst [smem:[#allocation74_spill]] %s7574_s1 }
   0x3   :  { %7632 = sst [smem:[#allocation75_spill]] %s7575_s2 }
   0x4   :  { %7633 = sst [smem:[#allocation76_spill]] %s7576_s3 }
   0x5   :  { %7634 = sst [smem:[#allocation77_spill]] %s7577_s4 }
   0x6   :  { %7635 = sst [smem:[#allocation78_spill]] %s7578_s5 }
   0x7   :  { %7636 = sst [smem:[#allocation79_spill]] %s7579_s6 }
   0x8   :  { %7637 = sst [smem:[#allocation80_spill]] %s7580_s7 }
   0x9   :  { %7638 = sst [smem:[#allocation81_spill]] %s7581_s8 }
   0xa   :  { %7639 = sst [smem:[#allocation82_spill]] %s7582_s9 }
   0xb   :  { %7640 = sst [smem:[#allocation83_spill]] %s7584_s11 }
   0xc   :  { %7641 = sst [smem:[#allocation84_spill]] %s7585_s12 }
   0xd   :  { %7642 = sst [smem:[#allocation85_spill]] %s7586_s13 }
   0xe   :  { %7643 = sst [smem:[#allocation86_spill]] %s7589_s16 }
   0xf   :  { %7644 = sst [smem:[#allocation87_spill]] %s7591_s18 }
  0x10   :  { %7645 = sst [smem:[#allocation88_spill]] %s7593_s20 }
  0x11   :  { %7646 = sst [smem:[#allocation89_spill]] %s7594_s21 }
  0x12   :  { %7647 = sst [smem:[#allocation90_spill]] %s7595_s22 }
  0x13   :  { %7648 = sst [smem:[#allocation91_spill]] %s7596_s23 }
  0x14   :  { %7649 = sst [smem:[#allocation92_spill]] %s7597_s24 }
  0x15   :  { %30 = vsyncpa [#allocation7], 0 }
  0x16   :  { %31 = vsyncpa [#allocation9], 0 }
  0x17   :  { %32 = vsyncpa [#allocation12], 0 }
  0x18   :  { %33 = vsyncpa [#allocation5], 0 }
  0x19   :  { %34 = vsyncpa [#allocation15], 0 }
  0x1a   :  { %35 = vsyncpa [#allocation18], 0 }
  0x1b   :  { %36 = vsyncpa [#allocation21], 0 }
  0x1c   :  { %37 = vsyncpa [#allocation6], 0 }
  0x1d   :  { %38 = vsyncpa [#allocation25], 0  ;;  %s5633_s5 = smov [#allocation8]   ;;  %s7650_s28 = sld [smem:[#allocation74_spill]] }
  0x1e   :  { %s5634_s6 = smov [#allocation14]   ;;  %s5635_s29 = smov [#allocation17]  }
  0x1f   :  { %s89_s2 = sshll.u32 %s5634_s6, 4  ;;  %s120_s0 = sshll.u32 %s5635_s29, 4  ;;  %s90_s2 = int_to_ptr.vmem [resolvable:$true] %s89_s2  ;;  %s121_s0 = int_to_ptr.vmem [resolvable:$true] %s120_s0 }
  0x20   :  { %s5302_s7 = scalar_lea.vmem %s90_s2, 16  ;;  %s5306_s30 = scalar_lea.vmem %s90_s2, 32 }
  0x21   :  { %p5303_p0 = scmp.ne.s32.totalorder %s90_s2, %s5302_s7  ;;  %p5307_p1 = scmp.lt.s32.totalorder %s90_s2, %s90_s2 }
  0x22   :  { %p5308_p2 = scmp.lt.s32.totalorder %s5306_s30, %s5302_s7 }
  0x23   :  { %54 = dma.hbm_to_smem %s7650_s28, 16, %s5633_s5, [#allocation9]  }
  0x24   :  { %p5309_p3 = por %p5308_p2, %p5307_p1 }
  0x26   :  { %p5310_p4 = pnand %p5309_p3, %p5303_p0 }
  0x28   :  { %5313 = shalt.err (!%p5310_p4)
}
  0x29   :  { %s7651_s8 = sld [smem:[#allocation79_spill]]  ;;  %s5322_s4 = scalar_lea.vmem %s121_s0, 4096 }
  0x2a   :  { %p5323_p5 = scmp.ne.s32.totalorder %s121_s0, %s5322_s4  ;;  %p5327_p6 = scmp.lt.s32.totalorder %s121_s0, %s121_s0 }
  0x2b   :  { %p5328_p7 = scmp.lt.s32.totalorder %s5322_s4, %s5322_s4 }
  0x2d   :  { %p5329_p8 = por %p5328_p7, %p5327_p6 }
  0x2f   :  { %92 = dma.hbm_to_vmem [thread:$0]  %s7651_s8, 16, %s90_s2, [#allocation15]  }
  0x30   :  { %p5330_p9 = pnand %p5329_p8, %p5323_p5 }
  0x32   :  { %5333 = shalt.err (!%p5330_p9)
}
  0x33   :  { %s5636_s1 = smov 256   ;;  %s5637_s5 = smov 16  }
  0x34   :  { %126 = dma.hbm_to_vmem [thread:$0]  %s7587_s14, 4096, %s121_s0, [#allocation18], %s5636_s1, %s5636_s1, %s5637_s5  }
  0x35   :  { %s5638_s28 = smov [#allocation20]  }
  0x36   :  { %s145_s6 = sshll.u32 %s5638_s28, 4  ;;  %s146_s6 = int_to_ptr.vmem [resolvable:$true] %s145_s6 }
  0x37   :  { %s5342_s29 = scalar_lea.vmem %s146_s6, 16  ;;  %s5346_s2 = scalar_lea.vmem %s146_s6, 32 }
  0x38   :  { %p5343_p10 = scmp.ne.s32.totalorder %s146_s6, %s5342_s29  ;;  %p5347_p11 = scmp.lt.s32.totalorder %s146_s6, %s146_s6 }
  0x39   :  { %p5348_p12 = scmp.lt.s32.totalorder %s5346_s2, %s5342_s29 }
  0x3b   :  { %p5349_p13 = por %p5348_p12, %p5347_p11 }
  0x3d   :  { %p5350_p0 = pnand %p5349_p13, %p5343_p10 }
  0x3f   :  { %5353 = shalt.err (!%p5350_p0)
}
  0x40   :  { %148 = dma.hbm_to_vmem [thread:$0]  %s7590_s17, 16, %s146_s6, [#allocation21]  }
  0x41   :  { %s5639_s3 = smov [#allocation4]   ;;  %s7652_s4 = sld [smem:[#allocation73_spill]] }
  0x42   :  { %s5640_s14 = smov [#allocation10]   ;;  %s7653_s5 = sld [smem:[#allocation75_spill]] }
  0x43   :  { %s5641_s26 = smov [#allocation11]   ;;  %s7654_s29 = sld [smem:[#allocation76_spill]] }
  0x44   :  { %s5642_s2 = smov [#allocation13]   ;;  %s5643_s7 = smov [#allocation16]  }
  0x45   :  { %s79_s22 = sshll.u32 %s5642_s2, 4  ;;  %s104_s17 = sshll.u32 %s5643_s7, 4  ;;  %s80_s22 = int_to_ptr.vmem [resolvable:$true] %s79_s22  ;;  %s105_s17 = int_to_ptr.vmem [resolvable:$true] %s104_s17 }
  0x46   :  { %s5386_s6 = scalar_lea.vmem %s80_s22, 16  ;;  %s5390_s30 = scalar_lea.vmem %s80_s22, 32 }
  0x47   :  { %46 = dma.hbm_to_smem %s7652_s4, 16, %s5639_s3, [#allocation7]  }
  0x48   :  { %62 = dma.hbm_to_smem %s7653_s5, 16, %s5640_s14, [#allocation9]  }
  0x49   :  { %70 = dma.hbm_to_smem %s7654_s29, 16, %s5641_s26, [#allocation12]  }
  0x4a   :  { %p5387_p1 = scmp.ne.s32.totalorder %s80_s22, %s5386_s6  ;;  %p5391_p2 = scmp.lt.s32.totalorder %s80_s22, %s80_s22 }
  0x4b   :  { %p5392_p3 = scmp.lt.s32.totalorder %s5390_s30, %s5386_s6 }
  0x4d   :  { %p5393_p4 = por %p5392_p3, %p5391_p2 }
  0x4f   :  { %p5394_p5 = pnand %p5393_p4, %p5387_p1 }
  0x51   :  { %5397 = shalt.err (!%p5394_p5)
}
  0x52   :  { %s7655_s8 = sld [smem:[#allocation78_spill]]  ;;  %s5406_s4 = scalar_lea.vmem %s105_s17, 256 }
  0x53   :  { %p5407_p6 = scmp.ne.s32.totalorder %s105_s17, %s5406_s4  ;;  %p5411_p7 = scmp.lt.s32.totalorder %s105_s17, %s105_s17 }
  0x54   :  { %p5412_p8 = scmp.lt.s32.totalorder %s5406_s4, %s5406_s4 }
  0x56   :  { %p5413_p9 = por %p5412_p8, %p5411_p7 }
  0x58   :  { %82 = dma.hbm_to_vmem [thread:$0]  %s7655_s8, 16, %s80_s22, [#allocation5]  }
  0x59   :  { %p5414_p10 = pnand %p5413_p9, %p5407_p6 }
  0x5b   :  { %5417 = shalt.err (!%p5414_p10)
}
  0x5c   :  { %s5644_s14 = smov 64   ;;  %s5645_s0 = smov 4  }
  0x5d   :  { %110 = dma.hbm_to_vmem [thread:$0]  %s7583_s10, 256, %s105_s17, [#allocation15], %s5644_s14, %s5644_s14, %s5645_s0  }
  0x5e   :  { %s5646_s26 = smov [#allocation19]   ;;  %s5647_s22 = smov [#allocation22]  }
  0x5f   :  { %s133_s27 = sshll.u32 %s5646_s26, 4  ;;  %s157_s28 = sshll.u32 %s5647_s22, 4  ;;  %s134_s27 = int_to_ptr.vmem [resolvable:$true] %s133_s27  ;;  %s158_s28 = int_to_ptr.vmem [resolvable:$true] %s157_s28 }
  0x60   :  { %s5426_s29 = scalar_lea.vmem %s134_s27, 64  ;;  %p5431_p12 = scmp.lt.s32.totalorder %s134_s27, %s134_s27 }
  0x61   :  { %p5427_p11 = scmp.ne.s32.totalorder %s134_s27, %s5426_s29  ;;  %p5432_p13 = scmp.lt.s32.totalorder %s5426_s29, %s5426_s29 }
  0x63   :  { %p5433_p0 = por %p5432_p13, %p5431_p12 }
  0x65   :  { %p5434_p1 = pnand %p5433_p0, %p5427_p11 }
  0x67   :  { %5437 = shalt.err (!%p5434_p1)
}
  0x68   :  { %136 = dma.hbm_to_vmem [thread:$0]  %s7588_s15, 64, %s134_s27, [#allocation18]  }
  0x69   :  { %s5446_s6 = scalar_lea.vmem %s158_s28, 16  ;;  %s5450_s10 = scalar_lea.vmem %s158_s28, 32 }
  0x6a   :  { %p5447_p2 = scmp.ne.s32.totalorder %s158_s28, %s5446_s6  ;;  %p5451_p3 = scmp.lt.s32.totalorder %s158_s28, %s158_s28 }
  0x6b   :  { %p5452_p4 = scmp.lt.s32.totalorder %s5450_s10, %s5446_s6 }
  0x6d   :  { %p5453_p5 = por %p5452_p4, %p5451_p3 }
  0x6f   :  { %p5454_p6 = pnand %p5453_p5, %p5447_p2 }
  0x71   :  { %5457 = shalt.err (!%p5454_p6)
}
  0x72   :  { %160 = dma.hbm_to_vmem [thread:$0]  %s7592_s19, 16, %s158_s28, [#allocation21]  }
  0x73   :  { %5607 = dma.done.wait [#allocation7], 16  }
  0x74   :  { %5608 = vsyncadd [#allocation7], 4294967280 }
  0x75   :  { %5609 = dma.done.wait [#allocation9], 32  }
  0x76   :  { %5610 = vsyncadd [#allocation9], 4294967264 }
  0x77   :  { %5611 = dma.done.wait [#allocation12], 16  }
  0x78   :  { %5612 = vsyncadd [#allocation12], 4294967280 }
  0x79   :  { %5613 = dma.done.wait [#allocation5], 16  }
  0x7a   :  { %5614 = vsyncadd [#allocation5], 4294967280 }
  0x7b   :  { %5615 = dma.done.wait [#allocation15], 272  }
  0x7c   :  { %5616 = vsyncadd [#allocation15], 4294967024 }
  0x7d   :  { %5617 = dma.done.wait [#allocation18], 4160  }
  0x7e   :  { %5618 = vsyncadd [#allocation18], 4294963136 }
  0x7f   :  { %5619 = dma.done.wait [#allocation21], 32  }
  0x80   :  { %5620 = vsyncadd [#allocation21], 4294967264 }
  0x81   :  { %198 = sfence }
  0x82   :  { %s7656_s25 = sld [smem:[#allocation77_spill]]  ;;  %v229_v3 = vlaneseq  ;;  %v7601_v6 = vmov 0.0   ;;  %s5649_s26 = smov 63   ;;  %vm270_vm2 = vcmask 1048064   ;;  %vm797_vm7 = vcmask 523264  }
  0x83   :  { %s5650_s27 = smov 1   ;;  %s5651_s22 = smov 65   ;;  %vm1003_vm8 = vcmask 1047808   ;;  %vm1895_vm14 = vcmask 261120   ;;  %vm2096_vm15 = vcmask 130048  }
  0x84   :  { %v5849_v5 = vand.u32 127, %v229_v3  ;;  %s4316_s28 = sld [smem:[#allocation4 + $0x3]]  ;;  %s7608_s29 = smov 127   ;;  %v5908_v55 = vshrl.u32 %v229_v3, 7 }
  0x85   :  { %s4318_s2 = sld [smem:[#allocation4 + $0x5]] }
  0x86   :  { %7657 = vst [vmem:[#allocation50_spill] sm:$0xff] %v5849_v5  ;;  %vm231_vm0 = vcmp.ne.s32.totalorder %v5849_v5, 0  ;;  %vm234_vm1 = vcmp.ne.s32.totalorder %v5849_v5, 63  ;;  %s4325_s7 = sld [smem:[#allocation4 + $0xc]]  ;;  %7659 = vst [vmem:[#allocation52_spill] sm:$0xff] %v5908_v55  ;;  %v242_v56 = vand.u32 31, %v5908_v55 }
  0x87   :  { %v5858_v7 = vsel %vm231_vm0, 1.0, %v7601_v6  ;;  %v4311_v8 = vsel %vm234_vm1, 1.0, %v7601_v6  ;;  %s4327_s6 = sld [smem:[#allocation4 + $0xe]]  ;;  %v5912_v57 = vadd.s32 24, %v5908_v55  ;;  %vm331_vm3 = vcmp.lt.s32.totalorder %v5908_v55, 1 }
  0x88   :  { %v5827_v0 = vld [vmem:[%s7656_s25] sm:$0xff]  ;;  %v5832_v1 = vld [vmem:[%s7656_s25 + $0x8] sm:$0xff]  ;;  %v5837_v2 = vld [vmem:[%s7656_s25 + $0x18] sm:$0xff]  ;;  %7658 = vst [vmem:[#allocation51_spill] sm:$0xff] %v5858_v7  ;;  %s417_s10 = sld [smem:[#allocation4]]  ;;  %vm246_vm4 = vcmp.ne.s32.totalorder %v242_v56, 0 }
  0x89   :  { %271 = vrot.lane.b32.xlu0 %v5827_v0, %s5644_s14  ;;  %274 = vrot.lane.b32.xlu1 %v5832_v1, %s5644_s14  ;;  %v5846_v4 = vld [vmem:[%s7656_s25 + $0x10] sm:$0xff]  ;;  %7660 = vst [vmem:[#allocation53_spill] sm:$0xff] %v5912_v57  ;;  %v343_v58 = vrot.slane %v5837_v2, 7  ;;  %s4314_s17 = sld [smem:[#allocation4 + $0x1]]  ;;  %v340_v59 = vrot.slane %v5827_v0, 7  ;;  %v245_v60 = vand.u32 31, %v5912_v57 }
  0x8a   :  { %v436_v34 = vstv %s4316_s28  ;;  %s4319_s30 = sld [smem:[#allocation4 + $0x6]]  ;;  %v5921_v61 = vsel %vm246_vm4, 1.0, %v7601_v6  ;;  %v341_v63 = vrot.slane %v5832_v1, 7  ;;  %vm384_vm6 = vcmp.lt.s32.totalorder %v5908_v55, 7 }
  0x8b   :  { %v448_v37 = vstv %s4318_s2  ;;  %s5917_s15 = sld [smem:[#allocation4 + $0x7]]  ;;  %v347_v62 = vsel %vm331_vm3, %v343_v58, %v340_v59  ;;  %vm261_vm5 = vcmp.ne.s32.totalorder %v245_v60, 31 }
  0x8c   :  { %v564_v44 = vstv %s4325_s7  ;;  %s4321_s3 = sld [smem:[#allocation4 + $0x8]]  ;;  %v348_v3 = vmul.f32 %v5921_v61, %v347_v62 }
  0x8d   :  { %280 = vrot.lane.b32.xlu0 %v5837_v2, %s5644_s14  ;;  %277 = vrot.lane.b32.xlu1 %v5846_v4, %s5644_s14  ;;  %v576_v47 = vstv %s4327_s6  ;;  %s4317_s25 = sld [smem:[#allocation4 + $0x4]] }
  0x8e   :  { %s5925_s19 = sld [smem:[#allocation4 + $0x2]] }
  0x8f   :  { %s5928_s8 = sld [smem:[#allocation4 + $0x9]] }
  0x90   :  { %s5932_s4 = sld [smem:[#allocation4 + $0xa]] }
  0x91   :  { %296 = vrot.lane.b32.xlu0 %v5858_v7, %s5649_s26  ;;  %304 = vrot.lane.b32.xlu1 %v4311_v8, %s5650_s27  ;;  %v394_v8 = vrot.slane %v5832_v1, 1  ;;  %s5946_s0 = sld [smem:[#allocation4 + $0xb]] }
  0x92   :  { %s5956_s1 = sld [smem:[#allocation4 + $0xf]] }
  0x93   :  { %s5969_s5 = sld [smem:[#allocation4 + $0x10]] }
  0x94   :  { %s5978_s26 = sld [smem:[#allocation4 + $0x11]] }
  0x95   :  { %s6097_s28 = sld [smem:[#allocation4 + $0xd]] }
  0x96   :  { %s6202_s2 = sld [smem:[#allocation8 + $0x1]] }
  0x97   :  { %s4400_s7 = sld [smem:[#allocation10 + $0x33]] }
  0x98   :  { %s4419_s6 = sld [smem:[#allocation10 + $0x45]] }
  0x99   :  { %s6578_s21 = sld [smem:[#allocation10 + $0x12]] }
  0x9a   :  { %s6582_s24 = sld [smem:[#allocation10 + $0x24]] }
  0x9b   :  { %s6590_s23 = sld [smem:[#allocation10 + $0x36]] }
  0x9c   :  { %s6597_s20 = sld [smem:[#allocation10 + $0x9]] }
  0x9d   :  { %s6709_s18 = sld [smem:[#allocation10 + $0x38]] }
  0x9e   :  { %s6717_s16 = sld [smem:[#allocation10 + $0x8]] }
  0x9f   :  { %s6728_s12 = sld [smem:[#allocation10 + $0xb]] }
  0xa0   :  { %s6738_s13 = sld [smem:[#allocation10 + $0x11]] }
  0xa1   :  { %s6787_s11 = sld [smem:[#allocation10 + $0x23]] }
  0xa2   :  { %s6912_s9 = sld [smem:[#allocation11 + $0x2]] }
  0xfb   :  { %v272_v9 = vpop.permute.xlu0 %271  ;;  %v275_v10 = vpop.permute.xlu1 %274 }
  0xfc   :  { %v273_v11 = vsel %vm270_vm2, %v272_v9, %v5827_v0  ;;  %v276_v12 = vsel %vm270_vm2, %v275_v10, %v5832_v1  ;;  %v424_v10 = vstv %s4314_s17  ;;  %s4379_s17 = sld [smem:[#allocation10 + $0x1f]] }
  0xfd   :  { %283 = vrot.lane.b32.xlu0 %v273_v11, %s5644_s14  ;;  %v393_v11 = vrot.slane %v5827_v0, 1 }
  0xff   :  { %v281_v13 = vpop.permute.xlu0 %280  ;;  %v278_v14 = vpop.permute.xlu1 %277 }
 0x100   :  { %v282_v15 = vsel %vm270_vm2, %v281_v13, %v5837_v2  ;;  %v279_v16 = vsel %vm270_vm2, %v278_v14, %v5846_v4  ;;  %v395_v13 = vrot.slane %v5846_v4, 1  ;;  %v342_v14 = vrot.slane %v5846_v4, 7 }
 0x101   :  { %285 = vrot.lane.b32.xlu0 %v276_v12, %s5644_s14  ;;  %289 = vrot.lane.b32.xlu1 %v282_v15, %s5644_s14  ;;  %v346_v12 = vsel %vm331_vm3, %v340_v59, %v341_v63  ;;  %v396_v15 = vrot.slane %v5837_v2, 1 }
 0x103   :  { %v297_v17 = vpop.permute.xlu0 %296  ;;  %v305_v18 = vpop.permute.xlu1 %304 }
 0x105   :  { %287 = vrot.lane.b32.xlu1 %v279_v16, %s5644_s14  ;;  %v5943_v16 = vsel %vm261_vm5, 1.0, %v7601_v6 }
 0x16f   :  { %v284_v19 = vpop.permute.xlu0 %283 }
 0x170   :  { %v291_v20 = vsel %vm270_vm2, %v284_v19, %v5827_v0  ;;  %v5952_v19 = vstv %s4319_s30  ;;  %s4398_s30 = sld [smem:[#allocation10 + $0x31]] }
 0x171   :  { %v299_v21 = vmul.f32 %v297_v17, %v291_v20  ;;  %v307_v25 = vmul.f32 %v305_v18, %v291_v20  ;;  %v399_v20 = vsel %vm384_vm6, %v393_v11, %v394_v8 }
 0x173   :  { %v290_v22 = vpop.permute.xlu1 %289  ;;  %315 = vrot.lane.b32.xlu0 %v299_v21, %s5651_s22  ;;  %v286_v23 = vpop.permute.xlu0 %285  ;;  %v437_v36 = vmul.f32 %v436_v34, %v299_v21  ;;  %v449_v38 = vmul.f32 %v448_v37, %v307_v25  ;;  %v565_v45 = vmul.f32 %v564_v44, %v299_v21  ;;  %v577_v48 = vmul.f32 %v576_v47, %v307_v25 }
 0x174   :  { %v294_v24 = vsel %vm270_vm2, %v290_v22, %v5837_v2  ;;  %v292_v27 = vsel %vm270_vm2, %v286_v23, %v5832_v1  ;;  %v5962_v23 = vstv %s4321_s3  ;;  %s4380_s3 = sld [smem:[#allocation10 + $0x20]] }
 0x175   :  { %v302_v26 = vmul.f32 %v297_v17, %v294_v24  ;;  %v310_v29 = vmul.f32 %v305_v18, %v294_v24  ;;  %v300_v30 = vmul.f32 %v297_v17, %v292_v27  ;;  %v308_v32 = vmul.f32 %v305_v18, %v292_v27 }
 0x176   :  { %v5964_v24 = vmul.f32 %v424_v10, %v346_v12 }
 0x177   :  { %v288_v28 = vpop.permute.xlu1 %287  ;;  %321 = vrot.lane.b32.xlu1 %v302_v26, %s5651_s22  ;;  %356 = vrot.lane.b32.xlu0 %v307_v25, %s7608_s29  ;;  %v438_v39 = vmul.f32 %v436_v34, %v300_v30  ;;  %v450_v41 = vmul.f32 %v448_v37, %v308_v32  ;;  %v440_v43 = vmul.f32 %v436_v34, %v302_v26  ;;  %v5966_v25 = vstv %s4317_s25  ;;  %s4418_s25 = sld [smem:[#allocation10 + $0x44]] }
 0x178   :  { %v293_v31 = vsel %vm270_vm2, %v288_v28, %v5846_v4  ;;  %v452_v46 = vmul.f32 %v448_v37, %v310_v29  ;;  %v566_v49 = vmul.f32 %v564_v44, %v300_v30  ;;  %v578_v51 = vmul.f32 %v576_v47, %v308_v32 }
 0x179   :  { %v301_v33 = vmul.f32 %v297_v17, %v293_v31  ;;  %v309_v35 = vmul.f32 %v305_v18, %v293_v31  ;;  %v568_v53 = vmul.f32 %v564_v44, %v302_v26  ;;  %v580_v54 = vmul.f32 %v576_v47, %v310_v29 }
 0x17a   :  { %v5948_v17 = vstv %s417_s10  ;;  %v5950_v18 = vmul.f32 %v424_v10, %v348_v3  ;;  %v460_v26 = vstv %s5917_s15  ;;  %v398_v28 = vsel %vm384_vm6, %v394_v8, %v395_v13  ;;  %s7673_s10 = sld [smem:[#allocation80_spill]] }
 0x17b   :  { %362 = vrot.lane.b32.xlu1 %v310_v29, %s7608_s29  ;;  %317 = vrot.lane.b32.xlu0 %v300_v30, %s5651_s22  ;;  %v439_v40 = vmul.f32 %v436_v34, %v301_v33  ;;  %v451_v42 = vmul.f32 %v448_v37, %v309_v35  ;;  %v567_v50 = vmul.f32 %v564_v44, %v301_v33  ;;  %v5981_v31 = vstv %s5925_s19  ;;  %s4417_s15 = sld [smem:[#allocation10 + $0x43]]  ;;  %s5656_s19 = smov 30  }
 0x17c   :  { %v579_v52 = vmul.f32 %v576_v47, %v309_v35  ;;  %v345_v29 = vsel %vm331_vm3, %v341_v63, %v342_v14  ;;  %v400_v30 = vsel %vm384_vm6, %v396_v15, %v393_v11  ;;  %v5988_v34 = vstv %s5928_s8  ;;  %s4351_s8 = sld [smem:[#allocation10 + $0x3]] }
 0x17d   :  { %v397_v37 = vsel %vm384_vm6, %v395_v13, %v396_v15  ;;  %v404_v44 = vmul.f32 %v5943_v16, %v400_v30  ;;  %v6051_v13 = vstv %s5978_s26  ;;  %s5654_s26 = smov 31  }
 0x17f   :  { %319 = vrot.lane.b32.xlu1 %v301_v33, %s5651_s22  ;;  %358 = vrot.lane.b32.xlu0 %v308_v32, %s7608_s29  ;;  %v5983_v32 = vmul.f32 %v460_v26, %v399_v20  ;;  %v344_v33 = vsel %vm331_vm3, %v342_v14, %v343_v58  ;;  %v6037_v58 = vstv %s5956_s1  ;;  %v6046_v8 = vmul.f32 %v460_v26, %v404_v44  ;;  %s4371_s1 = sld [smem:[#allocation10 + $0x17]] }
 0x183   :  { %360 = vrot.lane.b32.xlu1 %v309_v35, %s7608_s29  ;;  %479 = vrot.lane.b32.xlu0 %v437_v36, %s5651_s22  ;;  %v5993_v36 = vmul.f32 %v5966_v25, %v5827_v0 }
 0x187   :  { %499 = vrot.lane.b32.xlu0 %v449_v38, %s7608_s29  ;;  %481 = vrot.lane.b32.xlu1 %v438_v39, %s5651_s22  ;;  %v552_v38 = vstv %s5932_s4  ;;  %s7674_s4 = sld [smem:[#allocation81_spill]] }
 0x188   :  { %v6034_v56 = vmul.f32 %v552_v38, %v346_v12  ;;  %v588_v12 = vstv %s5969_s5  ;;  %s7610_s5 = smov 32  }
 0x189   :  { %v6057_v15 = vmul.f32 %v588_v12, %v399_v20  ;;  %v6059_v30 = vmul.f32 %v588_v12, %v398_v28 }
 0x18a   :  { %7661 = vst [vmem:[#allocation54_spill] sm:$0xff] %v6034_v56 }
 0x18b   :  { %483 = vrot.lane.b32.xlu0 %v439_v40, %s5651_s22  ;;  %501 = vrot.lane.b32.xlu1 %v450_v41, %s7608_s29  ;;  %v6006_v41 = vmul.f32 %v5966_v25, %v5832_v1  ;;  %7662 = vst [vmem:[#allocation55_spill] sm:$0xff] %v6059_v30 }
 0x18f   :  { %503 = vrot.lane.b32.xlu0 %v451_v42, %s7608_s29  ;;  %485 = vrot.lane.b32.xlu1 %v440_v43, %s5651_s22  ;;  %v6008_v42 = vmul.f32 %v460_v26, %v398_v28  ;;  %v6010_v43 = vmul.f32 %v424_v10, %v345_v29  ;;  %v445_v28 = vmul.f32 %v5966_v25, %v5846_v4 }
 0x193   :  { %607 = vrot.lane.b32.xlu0 %v565_v45, %s5651_s22  ;;  %505 = vrot.lane.b32.xlu1 %v452_v46, %s7608_s29 }
 0x197   :  { %627 = vrot.lane.b32.xlu0 %v577_v48, %s7608_s29  ;;  %609 = vrot.lane.b32.xlu1 %v566_v49, %s5651_s22  ;;  %v6019_v48 = vmul.f32 %v424_v10, %v344_v33 }
 0x19b   :  { %611 = vrot.lane.b32.xlu0 %v567_v50, %s5651_s22  ;;  %629 = vrot.lane.b32.xlu1 %v578_v51, %s7608_s29  ;;  %v6022_v50 = vmul.f32 %v460_v26, %v397_v37  ;;  %v6025_v51 = vstv %s5946_s0  ;;  %s4369_s0 = sld [smem:[#allocation10 + $0x15]] }
 0x19f   :  { %631 = vrot.lane.b32.xlu0 %v579_v52, %s7608_s29  ;;  %613 = vrot.lane.b32.xlu1 %v568_v53, %s5651_s22  ;;  %s6002_s22 = sld [smem:[#allocation8]]  ;;  %v6027_v52 = vmul.f32 %v552_v38, %v348_v3 }
 0x1a3   :  { %633 = vrot.lane.b32.xlu1 %v580_v54, %s7608_s29 }
 0x1e5   :  { %v5934_v9 = vpop.permute.xlu0 %315 }
 0x1e6   :  { %v327_v35 = vrot.slane %v5934_v9, 7  ;;  %v380_v59 = vrot.slane %v5934_v9, 1 }
 0x1e9   :  { %v5958_v21 = vpop.permute.xlu1 %321  ;;  %v5960_v22 = vpop.permute.xlu0 %356 }
 0x1ea   :  { %v7604_v27 = vrot.slane %v5958_v21, 7  ;;  %v368_v46 = vrot.slane %v5960_v22, 7  ;;  %v383_v10 = vrot.slane %v5958_v21, 1 }
 0x1ec   :  { %v335_v45 = vsel %vm331_vm3, %v7604_v27, %v327_v35  ;;  %v388_v27 = vsel %vm384_vm6, %v383_v10, %v380_v59 }
 0x1ed   :  { %v5998_v39 = vpop.permute.xlu1 %362  ;;  %v6000_v40 = vpop.permute.xlu0 %317  ;;  %v6041_v63 = vmul.f32 %v5921_v61, %v335_v45  ;;  %v6069_v45 = vmul.f32 %v552_v38, %v344_v33 }
 0x1ee   :  { %v7603_v47 = vrot.slane %v5998_v39, 7  ;;  %v381_v49 = vrot.slane %v6000_v40, 1  ;;  %v328_v53 = vrot.slane %v6000_v40, 7  ;;  %v6067_v40 = vmul.f32 %v552_v38, %v345_v29 }
 0x1ef   :  { %7664 = vst [vmem:[#allocation57_spill] sm:$0xff] %v6069_v45  ;;  %v419_v6 = vmul.f32 %v5948_v17, %v6041_v63  ;;  %v6107_v45 = vmul.f32 %v5943_v16, %v388_v27 }
 0x1f0   :  { %v375_v54 = vsel %vm331_vm3, %v7603_v47, %v368_v46  ;;  %v6055_v9 = vsel %vm384_vm6, %v380_v59, %v381_v49  ;;  %7663 = vst [vmem:[#allocation56_spill] sm:$0xff] %v6067_v40  ;;  %v6076_v47 = vstv %s6002_s22  ;;  %v6099_v59 = vmul.f32 %v588_v12, %v397_v37  ;;  %s5655_s22 = smov 97  }
 0x1f1   :  { %v320_v60 = vpop.permute.xlu1 %319  ;;  %v359_v62 = vpop.permute.xlu0 %358  ;;  %v6044_v3 = vmul.f32 %v5921_v61, %v375_v54  ;;  %v6063_v61 = vsel %vm331_vm3, %v327_v35, %v328_v53  ;;  %v6080_v35 = vmul.f32 %v588_v12, %v404_v44  ;;  %v455_v38 = vmul.f32 %v5952_v19, %v6055_v9 }
 0x1f2   :  { %v382_v11 = vrot.slane %v320_v60, 1  ;;  %v369_v14 = vrot.slane %v359_v62, 7  ;;  %v329_v29 = vrot.slane %v320_v60, 7  ;;  %v420_v44 = vmul.f32 %v5948_v17, %v6063_v61 }
 0x1f3   :  { %v431_v26 = vmul.f32 %v5981_v31, %v6044_v3  ;;  %7665 = vst [vmem:[#allocation58_spill] sm:$0xff] %v6080_v35  ;;  %v405_v60 = vrot.slane %v5960_v22, 1  ;;  %v6104_v35 = vmul.f32 %v5966_v25, %v5837_v2  ;;  %v471_v40 = vadd.f32 %v5950_v18, %v419_v6 }
 0x1f4   :  { %v6086_v33 = vsel %vm384_vm6, %v381_v49, %v382_v11  ;;  %v6093_v5 = vsel %vm331_vm3, %v368_v46, %v369_v14  ;;  %v406_v49 = vrot.slane %v359_v62, 1  ;;  %v6115_v22 = vsel %vm331_vm3, %v328_v53, %v329_v29 }
 0x1f5   :  { %v6071_v54 = vpop.permute.xlu1 %360  ;;  %v480_v20 = vpop.permute.xlu0 %479  ;;  %v456_v37 = vmul.f32 %v5952_v19, %v6086_v33  ;;  %v432_v25 = vmul.f32 %v5981_v31, %v6093_v5  ;;  %v515_v27 = vadd.f32 %v5983_v32, %v455_v38  ;;  %v408_v12 = vrot.slane %v5998_v39, 1 }
 0x1f6   :  { %v370_v57 = vrot.slane %v6071_v54, 7  ;;  %v491_v7 = vadd.f32 %v480_v20, %v431_v26  ;;  %v407_v46 = vrot.slane %v6071_v54, 1  ;;  %v6124_v6 = vsel %vm384_vm6, %v382_v11, %v383_v10 }
 0x1f7   :  { %v472_v18 = vadd.f32 %v5964_v24, %v420_v44  ;;  %v6133_v53 = vsel %vm384_vm6, %v405_v60, %v406_v49  ;;  %v421_v20 = vmul.f32 %v5948_v17, %v6115_v22  ;;  %v7667_v44 = vrot.slane %v5998_v39, 7 }
 0x1f8   :  { %v6129_v26 = vsel %vm331_vm3, %v369_v14, %v370_v57  ;;  %v519_v54 = vadd.f32 %v491_v7, %v471_v40  ;;  %v6143_v24 = vsel %vm384_vm6, %v406_v49, %v407_v46  ;;  %v516_v14 = vadd.f32 %v6008_v42, %v456_v37 }
 0x1f9   :  { %v482_v30 = vpop.permute.xlu1 %481  ;;  %v500_v56 = vpop.permute.xlu0 %499  ;;  %v467_v38 = vmul.f32 %v5962_v23, %v6133_v53  ;;  %v6159_v42 = vsel %vm331_vm3, %v370_v57, %v7667_v44  ;;  %v458_v49 = vmul.f32 %v5952_v19, %v6107_v45  ;;  %v6164_v37 = vstv %s6097_s28  ;;  %s4363_s28 = sld [smem:[#allocation10 + $0xf]] }
 0x1fa   :  { %v511_v62 = vadd.f32 %v500_v56, %v5993_v36  ;;  %v492_v36 = vadd.f32 %v482_v30, %v432_v25  ;;  %v7666_v56 = vrot.slane %v5958_v21, 7  ;;  %v433_v21 = vmul.f32 %v5981_v31, %v6129_v26 }
 0x1fb   :  { %v473_v39 = vadd.f32 %v6010_v43, %v421_v20  ;;  %v434_v44 = vmul.f32 %v5981_v31, %v6159_v42  ;;  %v547_v43 = vmul.f32 %v5988_v34, %v6041_v63 }
 0x1fc   :  { %v523_v32 = vadd.f32 %v515_v27, %v511_v62  ;;  %v6139_v10 = vsel %vm331_vm3, %v329_v29, %v7666_v56  ;;  %v457_v29 = vmul.f32 %v5952_v19, %v6124_v6  ;;  %v520_v25 = vadd.f32 %v492_v36, %v472_v18 }
 0x1fd   :  { %v502_v11 = vpop.permute.xlu1 %501  ;;  %v484_v7 = vpop.permute.xlu0 %483  ;;  %v422_v57 = vmul.f32 %v5948_v17, %v6139_v10  ;;  %v571_v17 = vmul.f32 %v6164_v37, %v5827_v0 }
 0x1fe   :  { %v527_v40 = vadd.f32 %v523_v32, %v519_v54  ;;  %v512_v30 = vadd.f32 %v502_v11, %v6006_v41  ;;  %v412_v41 = vsel %vm384_vm6, %v408_v12, %v405_v60  ;;  %v493_v27 = vadd.f32 %v484_v7, %v433_v21 }
 0x1ff   :  { %v468_v54 = vmul.f32 %v5962_v23, %v6143_v24  ;;  %v517_v60 = vadd.f32 %v6022_v50, %v457_v29  ;;  %v6177_v36 = vmul.f32 %v5943_v16, %v412_v41  ;;  %v583_v29 = vmul.f32 %v6037_v58, %v6055_v9 }
 0x200   :  { %v524_v62 = vadd.f32 %v516_v14, %v512_v30  ;;  %v531_v32 = vadd.f32 %v527_v40, %v467_v38  ;;  %v6181_v14 = vsel %vm384_vm6, %v407_v46, %v408_v12  ;;  %v521_v7 = vadd.f32 %v493_v27, %v473_v39 }
 0x201   :  { %v486_v56 = vpop.permute.xlu1 %485  ;;  %v504_v11 = vpop.permute.xlu0 %503  ;;  %v518_v30 = vadd.f32 %v6046_v8, %v458_v49  ;;  %v559_v46 = vmul.f32 %v6025_v51, %v6044_v3  ;;  %v469_v38 = vmul.f32 %v5962_v23, %v6181_v14  ;;  %v548_v8 = vmul.f32 %v5988_v34, %v6063_v61 }
 0x202   :  { %v528_v19 = vadd.f32 %v524_v62, %v520_v25  ;;  %v513_v18 = vadd.f32 %v504_v11, %v445_v28  ;;  %v494_v40 = vadd.f32 %v486_v56, %v434_v44  ;;  %v537_v50 = vadd.f32 %v6076_v47, %v531_v32 }
 0x203   :  { %v474_v28 = vadd.f32 %v6019_v48, %v422_v57  ;;  %v470_v48 = vmul.f32 %v5962_v23, %v6177_v36  ;;  %v572_v3 = vmul.f32 %v6164_v37, %v5832_v1  ;;  %v560_v27 = vmul.f32 %v6025_v51, %v6093_v5 }
 0x204   :  { %v532_v20 = vadd.f32 %v528_v19, %v468_v54  ;;  %v525_v31 = vadd.f32 %v517_v60, %v513_v18  ;;  %v6210_v23 = vmax.f32 %v537_v50, 0.0  ;;  %v584_v61 = vmul.f32 %v6037_v58, %v6086_v33  ;;  %v7668_v33 = vld [vmem:[#allocation54_spill] sm:$0xff] }
 0x205   :  { %v506_v16 = vpop.permute.xlu1 %505  ;;  %v608_v12 = vpop.permute.xlu0 %607  ;;  %v522_v49 = vadd.f32 %v494_v40, %v474_v28  ;;  %v599_v39 = vadd.f32 %v6027_v52, %v547_v43  ;;  %v643_v57 = vadd.f32 %v6057_v15, %v583_v29  ;;  %v595_v11 = vmul.f32 %v6051_v13, %v6133_v53  ;;  %v7669_v43 = vld [vmem:[#allocation55_spill] sm:$0xff] }
 0x206   :  { %v538_v63 = vadd.f32 %v6076_v47, %v532_v20  ;;  %v529_v21 = vadd.f32 %v525_v31, %v521_v7  ;;  %v514_v0 = vadd.f32 %v506_v16, %v6104_v35  ;;  %v619_v35 = vadd.f32 %v608_v12, %v559_v46 }
 0x207   :  { %v573_v5 = vmul.f32 %v6164_v37, %v5846_v4  ;;  %v600_v18 = vadd.f32 %v7668_v33, %v548_v8  ;;  %v549_v53 = vmul.f32 %v5988_v34, %v6115_v22  ;;  %v561_v7 = vmul.f32 %v6025_v51, %v6129_v26 }
 0x208   :  { %v526_v41 = vadd.f32 %v518_v30, %v514_v0  ;;  %v6206_v25 = vmax.f32 %v538_v63, 0.0  ;;  %v533_v9 = vadd.f32 %v529_v21, %v469_v38  ;;  %v647_v60 = vadd.f32 %v619_v35, %v599_v39  ;;  %v7670_v0 = vld [vmem:[#allocation56_spill] sm:$0xff] }
 0x209   :  { %v610_v62 = vpop.permute.xlu1 %609  ;;  %v628_v54 = vpop.permute.xlu0 %627  ;;  %v585_v28 = vmul.f32 %v6037_v58, %v6124_v6  ;;  %v664_v30 = vstv %s6202_s2  ;;  %v574_v46 = vmul.f32 %v6164_v37, %v5837_v2  ;;  %v586_v12 = vmul.f32 %v6037_v58, %v6107_v45  ;;  %s4381_s2 = sld [smem:[#allocation10 + $0x21]] }
 0x20a   :  { %v530_v32 = vadd.f32 %v526_v41, %v522_v49  ;;  %v639_v1 = vadd.f32 %v628_v54, %v571_v17  ;;  %v620_v56 = vadd.f32 %v610_v62, %v560_v27  ;;  %v4950_v19 = vpack.i.bf16 %v6206_v25, %v6210_v23  ;;  %v7672_v54 = vld [vmem:[#allocation58_spill] sm:$0xff] }
 0x20b   :  { %v539_v52 = vadd.f32 %v6076_v47, %v533_v9  ;;  %v644_v17 = vadd.f32 %v7669_v43, %v584_v61  ;;  %v601_v29 = vadd.f32 %v7670_v0, %v549_v53  ;;  %v550_v6 = vmul.f32 %v5988_v34, %v6139_v10  ;;  %v7671_v34 = vld [vmem:[#allocation57_spill] sm:$0xff] }
 0x20c   :  { %v534_v44 = vadd.f32 %v530_v32, %v470_v48  ;;  %v651_v20 = vadd.f32 %v643_v57, %v639_v1  ;;  %4951 = vrot.lane.b32.xlu0 %v4950_v19, %s5644_s14  ;;  %v648_v16 = vadd.f32 %v620_v56, %v600_v18  ;;  %v562_v58 = vmul.f32 %v6025_v51, %v6159_v42 }
 0x20d   :  { %v630_v15 = vpop.permute.xlu1 %629  ;;  %v612_v4 = vpop.permute.xlu0 %611  ;;  %v6245_v8 = vmax.f32 %v539_v52, 0.0  ;;  %v645_v45 = vadd.f32 %v6099_v59, %v585_v28  ;;  %v602_v10 = vadd.f32 %v7671_v34, %v550_v6  ;;  %v597_v62 = vmul.f32 %v6051_v13, %v6181_v14 }
 0x20e   :  { %v540_v40 = vadd.f32 %v6076_v47, %v534_v44  ;;  %v655_v31 = vadd.f32 %v651_v20, %v647_v60  ;;  %v640_v50 = vadd.f32 %v630_v15, %v572_v3  ;;  %v621_v21 = vadd.f32 %v612_v4, %v561_v7 }
 0x20f   :  { %v596_v47 = vmul.f32 %v6051_v13, %v6143_v24  ;;  %v646_v61 = vadd.f32 %v7672_v54, %v586_v12 }
 0x210   :  { %v659_v22 = vadd.f32 %v655_v31, %v595_v11  ;;  %v652_v63 = vadd.f32 %v644_v17, %v640_v50  ;;  %v6238_v26 = vmax.f32 %v540_v40, 0.0  ;;  %v649_v41 = vadd.f32 %v621_v21, %v601_v29 }
 0x211   :  { %v614_v38 = vpop.permute.xlu1 %613  ;;  %v632_v48 = vpop.permute.xlu0 %631  ;;  %v598_v11 = vmul.f32 %v6051_v13, %v6177_v36 }
 0x212   :  { %v656_v2 = vadd.f32 %v652_v63, %v648_v16  ;;  %v641_v37 = vadd.f32 %v632_v48, %v573_v5  ;;  %v665_v3 = vadd.f32 %v664_v30, %v659_v22  ;;  %v4955_v24 = vpack.i.bf16 %v6238_v26, %v6245_v8  ;;  %v5070_v63 = vld [vmem:[%s7673_s10 + $0x18] sm:$0xff]   ;;  %v5071_v48 = vld [vmem:[%s7673_s10 + $0x10] sm:$0xff]  }
 0x213   :  { %v622_v35 = vadd.f32 %v614_v38, %v562_v58  ;;  %4831 = vmatprep.subr.bf16.mxu1 %v5070_v63 }
 0x214   :  { %v660_v49 = vadd.f32 %v656_v2, %v596_v47  ;;  %v653_v9 = vadd.f32 %v645_v45, %v641_v37  ;;  %4956 = vrot.lane.b32.xlu1 %v4955_v24, %s5644_s14  ;;  %v6257_v32 = vmax.f32 %v665_v3, 0.0  ;;  %4832 = vmatpush3.bf16.msra.mxu1 %v5070_v63  ;;  %v5072_v2 = vld [vmem:[%s7673_s10 + $0x8] sm:$0xff]  }
 0x215   :  { %v634_v27 = vpop.permute.xlu1 %633  ;;  %v650_v1 = vadd.f32 %v622_v35, %v602_v10  ;;  %4833 = vmatprep.subr.bf16.mxu1 %v5071_v48 }
 0x216   :  { %v666_v51 = vadd.f32 %v664_v30, %v660_v49  ;;  %v657_v42 = vadd.f32 %v653_v9, %v649_v41  ;;  %v642_v59 = vadd.f32 %v634_v27, %v574_v46  ;;  %v5073_v41 = vld [vmem:[%s7673_s10] sm:$0xff]   ;;  %s4361_s10 = sld [smem:[#allocation10 + $0xd]] }
 0x218   :  { %v6259_v39 = vmax.f32 %v666_v51, 0.0  ;;  %v661_v57 = vadd.f32 %v657_v42, %v597_v62  ;;  %v654_v56 = vadd.f32 %v646_v61, %v642_v59  ;;  %4834 = vmatpush3.bf16.msra.mxu1 %v5071_v48 }
 0x219   :  { %4835 = vmatprep.subr.bf16.mxu1 %v5072_v2 }
 0x21a   :  { %v658_v19 = vadd.f32 %v654_v56, %v650_v1  ;;  %v4960_v14 = vpack.i.bf16 %v6259_v39, %v6257_v32  ;;  %v667_v5 = vadd.f32 %v664_v30, %v661_v57 }
 0x21c   :  { %v662_v44 = vadd.f32 %v658_v19, %v598_v11  ;;  %4961 = vrot.lane.b32.xlu0 %v4960_v14, %s5644_s14  ;;  %v6266_v33 = vmax.f32 %v667_v5, 0.0  ;;  %4836 = vmatpush3.bf16.msra.mxu1 %v5072_v2 }
 0x21d   :  { %4837 = vmatprep.subr.bf16.mxu1 %v5073_v41 }
 0x21e   :  { %v668_v60 = vadd.f32 %v664_v30, %v662_v44 }
 0x220   :  { %v6268_v18 = vmax.f32 %v668_v60, 0.0  ;;  %4838 = vmatpush3.bf16.msra.mxu1 %v5073_v41 }
 0x222   :  { %v4965_v20 = vpack.i.bf16 %v6268_v18, %v6266_v33 }
 0x224   :  { %4966 = vrot.lane.b32.xlu1 %v4965_v20, %s5644_s14 }
 0x27e   :  { %v4952_v52 = vpop.permute.xlu0 %4951 }
 0x27f   :  { %v4954_v13 = vunpack.i.h.bf16 %v4952_v52  ;;  %v4953_v36 = vunpack.i.l.bf16 %v4952_v52 }
 0x281   :  { %v675_v15 = vsel %vm270_vm2, %v4953_v36, %v6210_v23  ;;  %v678_v43 = vsel %vm270_vm2, %v4954_v13, %v6206_v25 }
 0x282   :  { %v4970_v17 = vpack.i.bf16 %v678_v43, %v675_v15 }
 0x284   :  { %4971 = vrot.lane.b32.xlu0 %v4970_v17, %s5644_s14 }
 0x286   :  { %v4957_v53 = vpop.permute.xlu1 %4956 }
 0x287   :  { %v4959_v7 = vunpack.i.h.bf16 %v4957_v53  ;;  %v4958_v4 = vunpack.i.l.bf16 %v4957_v53 }
 0x289   :  { %v681_v40 = vsel %vm270_vm2, %v4958_v4, %v6245_v8  ;;  %v684_v31 = vsel %vm270_vm2, %v4959_v7, %v6238_v26 }
 0x28a   :  { %v4975_v50 = vpack.i.bf16 %v684_v31, %v681_v40 }
 0x28c   :  { %4976 = vrot.lane.b32.xlu1 %v4975_v50, %s5644_s14 }
 0x28e   :  { %v4962_v28 = vpop.permute.xlu0 %4961 }
 0x28f   :  { %v4964_v16 = vunpack.i.h.bf16 %v4962_v28  ;;  %v4963_v30 = vunpack.i.l.bf16 %v4962_v28 }
 0x291   :  { %v687_v46 = vsel %vm270_vm2, %v4963_v30, %v6257_v32  ;;  %v690_v12 = vsel %vm270_vm2, %v4964_v16, %v6259_v39 }
 0x292   :  { %v4980_v22 = vpack.i.bf16 %v690_v12, %v687_v46 }
 0x294   :  { %4981 = vrot.lane.b32.xlu0 %v4980_v22, %s5644_s14  ;;  %v5074_v22 = vld [vmem:[%s7674_s4] sm:$0xff]  }
 0x296   :  { %v4967_v21 = vpop.permute.xlu1 %4966 }
 0x297   :  { %v4969_v47 = vunpack.i.h.bf16 %v4967_v21  ;;  %v4968_v0 = vunpack.i.l.bf16 %v4967_v21 }
 0x299   :  { %v693_v29 = vsel %vm270_vm2, %v4968_v0, %v6266_v33  ;;  %v696_v6 = vsel %vm270_vm2, %v4969_v47, %v6268_v18 }
 0x29a   :  { %v4985_v38 = vpack.i.bf16 %v696_v6, %v693_v29 }
 0x29c   :  { %4986 = vrot.lane.b32.xlu1 %v4985_v38, %s5644_s14  ;;  %s4399_s14 = sld [smem:[#allocation10 + $0x32]] }
 0x2f6   :  { %v4972_v58 = vpop.permute.xlu0 %4971 }
 0x2f7   :  { %v4974_v45 = vunpack.i.h.bf16 %v4972_v58  ;;  %v4973_v37 = vunpack.i.l.bf16 %v4972_v58 }
 0x2f9   :  { %v713_v3 = vsel %vm270_vm2, %v4973_v37, %v6210_v23  ;;  %v714_v24 = vsel %vm270_vm2, %v4974_v45, %v6206_v25 }
 0x2fa   :  { %v4990_v49 = vpack.i.bf16 %v714_v24, %v713_v3 }
 0x2fc   :  { %4991 = vrot.lane.b32.xlu0 %v4990_v49, %s7608_s29 }
 0x2fe   :  { %v4977_v35 = vpop.permute.xlu1 %4976 }
 0x2ff   :  { %v4979_v9 = vunpack.i.h.bf16 %v4977_v35  ;;  %v4978_v34 = vunpack.i.l.bf16 %v4977_v35 }
 0x301   :  { %v715_v10 = vsel %vm270_vm2, %v4978_v34, %v6245_v8  ;;  %v716_v62 = vsel %vm270_vm2, %v4979_v9, %v6238_v26 }
 0x302   :  { %v4995_v27 = vpack.i.bf16 %v716_v62, %v715_v10 }
 0x304   :  { %4996 = vrot.lane.b32.xlu1 %v4995_v27, %s7608_s29 }
 0x306   :  { %v4982_v51 = vpop.permute.xlu0 %4981 }
 0x307   :  { %v4984_v42 = vunpack.i.h.bf16 %v4982_v51  ;;  %v4983_v59 = vunpack.i.l.bf16 %v4982_v51 }
 0x309   :  { %v717_v54 = vsel %vm270_vm2, %v4983_v59, %v6257_v32  ;;  %v718_v61 = vsel %vm270_vm2, %v4984_v42, %v6259_v39 }
 0x30a   :  { %v5000_v1 = vpack.i.bf16 %v718_v61, %v717_v54 }
 0x30c   :  { %5001 = vrot.lane.b32.xlu0 %v5000_v1, %s7608_s29 }
 0x30e   :  { %v4987_v57 = vpop.permute.xlu1 %4986 }
 0x30f   :  { %v4989_v56 = vunpack.i.h.bf16 %v4987_v57  ;;  %v4988_v11 = vunpack.i.l.bf16 %v4987_v57 }
 0x311   :  { %v719_v19 = vsel %vm270_vm2, %v4988_v11, %v6266_v33  ;;  %v720_v14 = vsel %vm270_vm2, %v4989_v56, %v6268_v18 }
 0x312   :  { %v5005_v5 = vpack.i.bf16 %v720_v14, %v719_v19  ;;  %v5075_v14 = vld [vmem:[%s7674_s4 + $0x8] sm:$0xff]   ;;  %s4353_s4 = sld [smem:[#allocation10 + $0x5]] }
 0x314   :  { %5006 = vrot.lane.b32.xlu1 %v5005_v5, %s7608_s29 }
 0x36e   :  { %v4992_v44 = vpop.permute.xlu0 %4991 }
 0x36f   :  { %v4994_v60 = vunpack.i.h.bf16 %v4992_v44  ;;  %v4993_v20 = vunpack.i.l.bf16 %v4992_v44 }
 0x371   :  { %v753_v52 = vmax.f32 %v6210_v23, %v4993_v20  ;;  %v754_v13 = vmax.f32 %v6206_v25, %v4994_v60 }
 0x373   :  { %v761_v36 = vpack.c.bf16 %v754_v13, %v753_v52 }
 0x375   :  { %4839 = vmatprep.mubr.msk.bf16.mxu1 %vm797_vm7, %v761_v36 }
 0x376   :  { %v4997_v15 = vpop.permute.xlu1 %4996 }
 0x377   :  { %v4999_v43 = vunpack.i.h.bf16 %v4997_v15  ;;  %v4998_v17 = vunpack.i.l.bf16 %v4997_v15 }
 0x379   :  { %v756_v53 = vmax.f32 %v6238_v26, %v4999_v43  ;;  %v755_v7 = vmax.f32 %v6245_v8, %v4998_v17  ;;  %v7675_v43 = vld [vmem:[#allocation51_spill] sm:$0xff] }
 0x37b   :  { %v762_v4 = vpack.c.bf16 %v756_v53, %v755_v7 }
 0x37d   :  { %4840 = vmatmul.mubr.msk.bf16.vlgmr.msra.gmra.mxu1 %vm797_vm7, %v762_v4 }
 0x37e   :  { %v5002_v40 = vpop.permute.xlu0 %5001 }
 0x37f   :  { %v5004_v31 = vunpack.i.h.bf16 %v5002_v40  ;;  %v5003_v50 = vunpack.i.l.bf16 %v5002_v40 }
 0x381   :  { %v758_v23 = vmax.f32 %v6259_v39, %v5004_v31  ;;  %v757_v25 = vmax.f32 %v6257_v32, %v5003_v50 }
 0x383   :  { %v763_v28 = vpack.c.bf16 %v758_v23, %v757_v25 }
 0x385   :  { %4843 = vmatprep.mubr.msk.bf16.mxu1 %vm797_vm7, %v763_v28 }
 0x386   :  { %v5007_v16 = vpop.permute.xlu1 %5006 }
 0x387   :  { %v5009_v30 = vunpack.i.h.bf16 %v5007_v16  ;;  %v5008_v46 = vunpack.i.l.bf16 %v5007_v16 }
 0x389   :  { %v760_v26 = vmax.f32 %v6268_v18, %v5009_v30  ;;  %v759_v8 = vmax.f32 %v6266_v33, %v5008_v46  ;;  %v7676_v30 = vld [vmem:[#allocation50_spill] sm:$0xff] }
 0x38a   :  { %vm972_vm9 = vcmp.ne.s32.totalorder %v7676_v30, 31  ;;  %v1364_v30 = vstv %s4380_s3  ;;  %s6537_s3 = sld [smem:[#allocation10 + $0x28]] }
 0x38b   :  { %v764_v12 = vpack.c.bf16 %v760_v26, %v759_v8  ;;  %v7677_v26 = vmov 0.0  }
 0x38c   :  { %v4344_v8 = vsel %vm972_vm9, 1.0, %v7677_v26 }
 0x38d   :  { %4844 = vmatmul.mubr.msk.bf16.gmra.mxu1 %vm797_vm7, %v764_v12  ;;  %v7678_v12 = vld [vmem:[#allocation53_spill] sm:$0xff] }
 0x38e   :  { %4855 = vmatprep.mubr.msk.bf16.mxu1 %vm797_vm7, %v5074_v22  ;;  %v978_v22 = vand.u32 15, %v7678_v12 }
 0x390   :  { %vm994_vm10 = vcmp.ne.s32.totalorder %v978_v22, 15 }
 0x43d   :  { %v4841_v32 = vpop.f32.mrf.mxu1 }
 0x43e   :  { %v877_v3 = vrot.slane %v4841_v32, 1 }
 0x43f   :  { %v844_v39 = vpop.f32.mrf.mxu1 }
 0x440   :  { %v875_v6 = vrot.slane %v844_v39, 1 }
 0x441   :  { %v4842_v63 = vpop.f32.mrf.mxu1 }
 0x442   :  { %v878_v2 = vrot.slane %v4842_v63, 1 }
 0x443   :  { %v847_v21 = vpop.f32.mrf.mxu1 }
 0x444   :  { %v876_v41 = vrot.slane %v847_v21, 1  ;;  %v887_v51 = vsel %vm384_vm6, %v877_v3, %v878_v2 }
 0x445   :  { %v893_v1 = vmax.f32 %v4841_v32, %v887_v51  ;;  %v1200_v51 = vstv %s4361_s10  ;;  %s4378_s10 = sld [smem:[#allocation10 + $0x1e]] }
 0x446   :  { %v888_v54 = vsel %vm384_vm6, %v876_v41, %v877_v3  ;;  %v889_v61 = vsel %vm384_vm6, %v875_v6, %v876_v41 }
 0x447   :  { %v891_v57 = vmax.f32 %v844_v39, %v889_v61  ;;  %v892_v56 = vmax.f32 %v847_v21, %v888_v54  ;;  %v1360_v61 = vstv %s4379_s17  ;;  %s4397_s17 = sld [smem:[#allocation10 + $0x30]] }
 0x449   :  { %v903_v19 = vpack.c.bf16 %v892_v56, %v891_v57  ;;  %v1520_v56 = vstv %s4398_s30  ;;  %s6515_s30 = sld [smem:[#allocation10 + $0x42]] }
 0x44d   :  { %v4845_v47 = vpop.f32.mrf.mxu1 }
 0x44e   :  { %v881_v18 = vrot.slane %v4845_v47, 1 }
 0x44f   :  { %v860_v0 = vpop.f32.mrf.mxu1 }
 0x450   :  { %v879_v38 = vrot.slane %v860_v0, 1 }
 0x451   :  { %v4846_v29 = vpop.f32.mrf.mxu1 }
 0x452   :  { %v882_v33 = vrot.slane %v4846_v29, 1  ;;  %v886_v35 = vsel %vm384_vm6, %v878_v2, %v879_v38 }
 0x453   :  { %v863_v48 = vpop.f32.mrf.mxu1  ;;  %v894_v59 = vmax.f32 %v4842_v63, %v886_v35  ;;  %v1528_v35 = vstv %s4400_s7  ;;  %s4409_s7 = sld [smem:[#allocation10 + $0x3b]] }
 0x454   :  { %v883_v58 = vsel %vm384_vm6, %v881_v18, %v882_v33  ;;  %v890_v45 = vsel %vm384_vm6, %v882_v33, %v875_v6  ;;  %v880_v37 = vrot.slane %v863_v48, 1 }
 0x455   :  { %v897_v24 = vmax.f32 %v4845_v47, %v883_v58  ;;  %v898_v49 = vmax.f32 %v4846_v29, %v890_v45  ;;  %v904_v11 = vpack.c.bf16 %v894_v59, %v893_v1  ;;  %v6429_v29 = vsel %vm994_vm10, 1.0, %v7677_v26 }
 0x456   :  { %v884_v9 = vsel %vm384_vm6, %v880_v37, %v881_v18  ;;  %v885_v34 = vsel %vm384_vm6, %v879_v38, %v880_v37  ;;  %v1208_v38 = vstv %s4363_s28  ;;  %s4390_s28 = sld [smem:[#allocation10 + $0x29]] }
 0x457   :  { %v906_v10 = vpack.c.bf16 %v898_v49, %v897_v24  ;;  %v895_v62 = vmax.f32 %v860_v0, %v885_v34  ;;  %v896_v27 = vmax.f32 %v863_v48, %v884_v9  ;;  %v1368_v24 = vstv %s4381_s2  ;;  %s4407_s2 = sld [smem:[#allocation10 + $0x39]] }
 0x459   :  { %v905_v42 = vpack.c.bf16 %v896_v27, %v895_v62  ;;  %4847 = vmatprep.subr.bf16.mxu1 %v906_v10 }
 0x45a   :  { %4848 = vmatpush3.bf16.msra.mxu1 %v906_v10  ;;  %v1688_v10 = vstv %s4419_s6  ;;  %s4360_s6 = sld [smem:[#allocation10 + $0xc]] }
 0x45b   :  { %4849 = vmatprep.subr.bf16.mxu1 %v905_v42 }
 0x45e   :  { %4850 = vmatpush3.bf16.msra.mxu1 %v905_v42 }
 0x45f   :  { %4851 = vmatprep.subr.bf16.mxu1 %v904_v11 }
 0x462   :  { %4852 = vmatpush3.bf16.msra.mxu1 %v904_v11 }
 0x463   :  { %4853 = vmatprep.subr.bf16.mxu1 %v903_v19 }
 0x466   :  { %4854 = vmatpush3.bf16.msra.mxu1 %v903_v19 }
 0x469   :  { %4856 = vmatmul.mubr.msk.bf16.vlgmr.msra.gmra.mxu1 %vm797_vm7, %v5075_v14  ;;  %v1680_v14 = vstv %s4417_s15  ;;  %s6533_s15 = sld [smem:[#allocation10 + $0x4]] }
 0x529   :  { %v6361_v5 = vpop.f32.mrf.mxu1 }
 0x52a   :  { %v1201_v54 = vmul.f32 %v6361_v5, %v1200_v51  ;;  %v1361_v57 = vmul.f32 %v6361_v5, %v1360_v61  ;;  %v1521_v19 = vmul.f32 %v6361_v5, %v1520_v56 }
 0x52b   :  { %v6363_v44 = vpop.f32.mrf.mxu1 }
 0x52c   :  { %1004 = vrot.lane.b32.xlu0 %v6363_v44, %s7610_s5 }
 0x52d   :  { %v6367_v60 = vpop.f32.mrf.mxu1 }
 0x52e   :  { %1013 = vrot.lane.b32.xlu1 %v6367_v60, %s7610_s5  ;;  %v1202_v11 = vmul.f32 %v6367_v60, %v1200_v51 }
 0x52f   :  { %v6415_v46 = vpop.f32.mrf.mxu1 }
 0x530   :  { %1010 = vrot.lane.b32.xlu0 %v6361_v5, %s7610_s5 }
 0x59e   :  { %v1005_v20 = vpop.permute.xlu0 %1004 }
 0x59f   :  { %v1006_v52 = vsel %vm1003_vm8, %v1005_v20, %v6363_v44  ;;  %v1362_v20 = vmul.f32 %v6367_v60, %v1360_v61 }
 0x5a0   :  { %1016 = vrot.lane.b32.xlu1 %v1006_v52, %s7610_s5  ;;  %v1014_v13 = vpop.permute.xlu1 %1013  ;;  %v1681_v52 = vmul.f32 %v6361_v5, %v1680_v14 }
 0x5a1   :  { %v1015_v36 = vsel %vm1003_vm8, %v1014_v13, %v6367_v60  ;;  %v1522_v13 = vmul.f32 %v6367_v60, %v1520_v56 }
 0x5a2   :  { %v1011_v15 = vpop.permute.xlu0 %1010  ;;  %1022 = vrot.lane.b32.xlu0 %v1015_v36, %s7610_s5  ;;  %v1682_v36 = vmul.f32 %v6367_v60, %v1680_v14  ;;  %v1320_v14 = vstv %s4369_s0  ;;  %s6549_s0 = sld [smem:[#allocation10 + $0x19]] }
 0x5a3   :  { %v1012_v17 = vsel %vm1003_vm8, %v1011_v15, %v6361_v5 }
 0x5a4   :  { %1028 = vrot.lane.b32.xlu1 %v7675_v43, %s5654_s26 }
 0x5a6   :  { %1020 = vrot.lane.b32.xlu0 %v1012_v17, %s7610_s5 }
 0x612   :  { %v1017_v53 = vpop.permute.xlu1 %1016 }
 0x613   :  { %v6390_v40 = vsel %vm1003_vm8, %v1017_v53, %v6363_v44 }
 0x614   :  { %v1023_v7 = vpop.permute.xlu0 %1022 }
 0x615   :  { %v6386_v4 = vsel %vm1003_vm8, %v1023_v7, %v6367_v60 }
 0x616   :  { %v6392_v31 = vpop.permute.xlu1 %1028 }
 0x617   :  { %v6396_v50 = vmul.f32 %v6392_v31, %v6390_v40  ;;  %v6400_v23 = vmul.f32 %v6392_v31, %v6386_v4 }
 0x618   :  { %v1021_v25 = vpop.permute.xlu0 %1020 }
 0x619   :  { %v6404_v28 = vsel %vm1003_vm8, %v1021_v25, %v6361_v5  ;;  %1053 = vrot.lane.b32.xlu0 %v6400_v23, %s5655_s22  ;;  %1047 = vrot.lane.b32.xlu1 %v6396_v50, %s5655_s22 }
 0x61a   :  { %v6412_v16 = vmul.f32 %v6392_v31, %v6404_v28 }
 0x61d   :  { %1051 = vrot.lane.b32.xlu1 %v6412_v16, %s5655_s22  ;;  %1007 = vrot.lane.b32.xlu0 %v6415_v46, %s7610_s5 }
 0x621   :  { %1036 = vrot.lane.b32.xlu1 %v4344_v8, %s5650_s27 }
 0x68b   :  { %v1054_v32 = vpop.permute.xlu0 %1053  ;;  %v6424_v39 = vpop.permute.xlu1 %1047 }
 0x68c   :  { %v1062_v63 = vrot.slane %v1054_v32, 7  ;;  %v1114_v21 = vrot.slane %v1054_v32, 1  ;;  %v7616_v47 = vrot.slane %v6424_v39, 7  ;;  %v7614_v0 = vrot.slane %v6424_v39, 1 }
 0x68e   :  { %v6435_v6 = vsel %vm331_vm3, %v1062_v63, %v7616_v47  ;;  %v1118_v18 = vsel %vm384_vm6, %v1114_v21, %v7614_v0 }
 0x68f   :  { %v1122_v33 = vmul.f32 %v6429_v29, %v1118_v18  ;;  %v6442_v48 = vpop.permute.xlu1 %1051  ;;  %v1008_v59 = vpop.permute.xlu0 %1007  ;;  %v1524_v18 = vstv %s4399_s14  ;;  %s6539_s14 = sld [smem:[#allocation10 + $0x3a]] }
 0x690   :  { %v7613_v2 = vrot.slane %v6442_v48, 7  ;;  %v7620_v58 = vrot.slane %v6442_v48, 1  ;;  %v1009_v1 = vsel %vm1003_vm8, %v1008_v59, %v6415_v46 }
 0x691   :  { %v1210_v45 = vmul.f32 %v1208_v38, %v1122_v33  ;;  %v1370_v41 = vmul.f32 %v1368_v24, %v1122_v33  ;;  %v1530_v34 = vmul.f32 %v1528_v35, %v1122_v33  ;;  %v1690_v27 = vmul.f32 %v1688_v10, %v1122_v33 }
 0x692   :  { %v6450_v37 = vsel %vm331_vm3, %v7613_v2, %v1062_v63  ;;  %v1115_v3 = vsel %vm384_vm6, %v7620_v58, %v1114_v21 }
 0x693   :  { %1261 = vrot.lane.b32.xlu1 %v1210_v45, %s5650_s27  ;;  %v1209_v49 = vmul.f32 %v1208_v38, %v1115_v3  ;;  %v1369_v9 = vmul.f32 %v1368_v24, %v1115_v3  ;;  %v1529_v62 = vmul.f32 %v1528_v35, %v1115_v3  ;;  %v1689_v42 = vmul.f32 %v1688_v10, %v1115_v3  ;;  %v1037_v15 = vpop.permute.xlu1 %1036 }
 0x694   :  { %v1042_v43 = vmul.f32 %v1037_v15, %v6386_v4  ;;  %v1041_v53 = vmul.f32 %v1037_v15, %v6404_v28  ;;  %v1684_v24 = vstv %s4418_s25  ;;  %v1039_v59 = vmul.f32 %v1037_v15, %v6390_v40  ;;  %s6541_s25 = sld [smem:[#allocation10 + $0xa]] }
 0x695   :  { %1259 = vrot.lane.b32.xlu0 %v1209_v49, %s5650_s27  ;;  %v1168_v40 = vstv %s4353_s4  ;;  %s6547_s4 = sld [smem:[#allocation10 + $0x13]] }
 0x696   :  { %v1366_v63 = vmul.f32 %v1364_v30, %v1042_v43  ;;  %v1365_v4 = vmul.f32 %v1364_v30, %v1041_v53  ;;  %v1526_v28 = vmul.f32 %v1524_v18, %v1042_v43  ;;  %v1640_v30 = vstv %s4407_s2  ;;  %s6560_s2 = sld [smem:[#allocation10 + $0x10]] }
 0x697   :  { %1421 = vrot.lane.b32.xlu1 %v1370_v41, %s5650_s27  ;;  %v1525_v41 = vmul.f32 %v1524_v18, %v1041_v53 }
 0x699   :  { %1419 = vrot.lane.b32.xlu0 %v1369_v9, %s5650_s27 }
 0x69b   :  { %1581 = vrot.lane.b32.xlu1 %v1530_v34, %s5650_s27  ;;  %v1686_v34 = vmul.f32 %v1684_v24, %v1042_v43 }
 0x69d   :  { %1579 = vrot.lane.b32.xlu0 %v1529_v62, %s5650_s27 }
 0x69f   :  { %1741 = vrot.lane.b32.xlu1 %v1690_v27, %s5650_s27  ;;  %v1685_v27 = vmul.f32 %v1684_v24, %v1041_v53 }
 0x6a1   :  { %1739 = vrot.lane.b32.xlu0 %v1689_v42, %s5650_s27  ;;  %s4362_s27 = sld [smem:[#allocation10 + $0xe]] }
 0x6a3   :  { %1249 = vrot.lane.b32.xlu1 %v1201_v54, %s5654_s26 }
 0x6a5   :  { %1018 = vrot.lane.b32.xlu0 %v1009_v1, %s7610_s5  ;;  %s6576_s5 = sld [smem:[#allocation10]] }
 0x6a7   :  { %1409 = vrot.lane.b32.xlu1 %v1361_v57, %s5654_s26  ;;  %v1204_v17 = vstv %s4362_s27  ;;  %v1160_v57 = vstv %s4351_s8  ;;  %s6535_s27 = sld [smem:[#allocation10 + $0x16]] }
 0x6a8   :  { %v1206_v7 = vmul.f32 %v1204_v17, %v1042_v43  ;;  %v1205_v12 = vmul.f32 %v1204_v17, %v1041_v53  ;;  %s6545_s8 = sld [smem:[#allocation10 + $0x1]] }
 0x6a9   :  { %1251 = vrot.lane.b32.xlu0 %v1202_v11, %s5654_s26  ;;  %v1161_v11 = vmul.f32 %v1160_v57, %v6396_v50 }
 0x6ab   :  { %1569 = vrot.lane.b32.xlu1 %v1521_v19, %s5654_s26  ;;  %v1169_v19 = vmul.f32 %v1168_v40, %v1039_v59 }
 0x6ad   :  { %1411 = vrot.lane.b32.xlu0 %v1362_v20, %s5654_s26  ;;  %v1321_v20 = vmul.f32 %v1320_v14, %v6396_v50 }
 0x6af   :  { %1729 = vrot.lane.b32.xlu1 %v1681_v52, %s5654_s26  ;;  %v1328_v52 = vstv %s4371_s1  ;;  %s6551_s1 = sld [smem:[#allocation10 + $0x25]] }
 0x6b1   :  { %1571 = vrot.lane.b32.xlu0 %v1522_v13, %s5654_s26 }
 0x6b5   :  { %1731 = vrot.lane.b32.xlu0 %v1682_v36, %s5654_s26  ;;  %s4388_s26 = sld [smem:[#allocation10 + $0x27]]  ;;  %v1329_v36 = vmul.f32 %v1328_v52, %v1039_v59 }
 0x705   :  { %v1262_v25 = vpop.permute.xlu1 %1261 }
 0x706   :  { %v1266_v8 = vadd.f32 %v1262_v25, %v1206_v7 }
 0x707   :  { %v1260_v22 = vpop.permute.xlu0 %1259 }
 0x708   :  { %v1265_v32 = vadd.f32 %v1260_v22, %v1205_v12  ;;  %1279 = vrot.lane.b32.xlu0 %v1266_v8, %s5656_s19  ;;  %v1641_v12 = vmul.f32 %v1640_v30, %v6396_v50  ;;  %v1648_v22 = vstv %s4409_s7  ;;  %s6563_s7 = sld [smem:[#allocation10 + $0x1c]] }
 0x709   :  { %v1422_v21 = vpop.permute.xlu1 %1421 }
 0x70a   :  { %v1426_v38 = vadd.f32 %v1422_v21, %v1366_v63  ;;  %1277 = vrot.lane.b32.xlu1 %v1265_v32, %s5656_s19  ;;  %v1649_v63 = vmul.f32 %v1648_v22, %v1039_v59 }
 0x70b   :  { %v1420_v33 = vpop.permute.xlu0 %1419 }
 0x70c   :  { %v1425_v45 = vadd.f32 %v1420_v33, %v1365_v4  ;;  %1439 = vrot.lane.b32.xlu0 %v1426_v38, %s5656_s19 }
 0x70d   :  { %v1582_v3 = vpop.permute.xlu1 %1581 }
 0x70e   :  { %v1586_v49 = vadd.f32 %v1582_v3, %v1526_v28  ;;  %1437 = vrot.lane.b32.xlu1 %v1425_v45, %s5656_s19  ;;  %v1196_v3 = vstv %s4360_s6  ;;  %s6565_s6 = sld [smem:[#allocation10 + $0x22]] }
 0x70f   :  { %v1580_v35 = vpop.permute.xlu0 %1579 }
 0x710   :  { %v1585_v9 = vadd.f32 %v1580_v35, %v1525_v41  ;;  %1599 = vrot.lane.b32.xlu0 %v1586_v49, %s5656_s19  ;;  %v1198_v49 = vmul.f32 %v1196_v3, %v6400_v23  ;;  %v1356_v41 = vstv %s4378_s10  ;;  %s6568_s10 = sld [smem:[#allocation10 + $0x2e]] }
 0x711   :  { %v1742_v10 = vpop.permute.xlu1 %1741 }
 0x712   :  { %v1746_v62 = vadd.f32 %v1742_v10, %v1686_v34  ;;  %1597 = vrot.lane.b32.xlu1 %v1585_v9, %s5656_s19  ;;  %v1197_v9 = vmul.f32 %v1196_v3, %v6412_v16 }
 0x713   :  { %v1740_v51 = vpop.permute.xlu0 %1739 }
 0x714   :  { %v1745_v42 = vadd.f32 %v1740_v51, %v1685_v27  ;;  %1759 = vrot.lane.b32.xlu0 %v1746_v62, %s5656_s19  ;;  %v1358_v27 = vmul.f32 %v1356_v41, %v6400_v23 }
 0x715   :  { %v1250_v4 = vpop.permute.xlu1 %1249 }
 0x716   :  { %1757 = vrot.lane.b32.xlu1 %v1745_v42, %s5656_s19  ;;  %v1255_v62 = vadd.f32 %v1250_v4, %v1197_v9  ;;  %v1516_v42 = vstv %s4397_s17  ;;  %s6543_s19 = sld [smem:[#allocation10 + $0x7]] }
 0x717   :  { %v1019_v54 = vpop.permute.xlu0 %1018  ;;  %s6570_s17 = sld [smem:[#allocation10 + $0x34]] }
 0x718   :  { %v1025_v61 = vsel %vm1003_vm8, %v1019_v54, %v6415_v46  ;;  %1087 = vrot.lane.b32.xlu0 %v1039_v59, %s7608_s29  ;;  %v1357_v54 = vmul.f32 %v1356_v41, %v6412_v16 }
 0x719   :  { %v1032_v1 = vmul.f32 %v6392_v31, %v1025_v61  ;;  %v1040_v56 = vmul.f32 %v1037_v15, %v1025_v61  ;;  %v1480_v15 = vstv %s4388_s26  ;;  %v1410_v33 = vpop.permute.xlu1 %1409  ;;  %s6555_s26 = sld [smem:[#allocation10 + $0x37]] }
 0x71a   :  { %v1481_v17 = vmul.f32 %v1480_v15, %v6396_v50 }
 0x71b   :  { %1049 = vrot.lane.b32.xlu1 %v1032_v1, %s5655_s22  ;;  %v1162_v31 = vmul.f32 %v1160_v57, %v1032_v1  ;;  %v1170_v13 = vmul.f32 %v1168_v40, %v1040_v56  ;;  %v1330_v7 = vmul.f32 %v1328_v52, %v1040_v56  ;;  %v1482_v8 = vmul.f32 %v1480_v15, %v1032_v1  ;;  %v1252_v38 = vpop.permute.xlu0 %1251 }
 0x71c   :  { %1091 = vrot.lane.b32.xlu0 %v1041_v53, %s7608_s29  ;;  %v1488_v53 = vstv %s4390_s28  ;;  %v1642_v21 = vmul.f32 %v1640_v30, %v1032_v1  ;;  %v1650_v18 = vmul.f32 %v1648_v22, %v1040_v56  ;;  %v1256_v34 = vadd.f32 %v1252_v38, %v1198_v49  ;;  %s6557_s28 = sld [smem:[#allocation10 + $0x3d]] }
 0x71d   :  { %v1489_v25 = vmul.f32 %v1488_v53, %v1039_v59  ;;  %v1490_v32 = vmul.f32 %v1488_v53, %v1040_v56  ;;  %v1570_v28 = vpop.permute.xlu1 %1569  ;;  %v1188_v49 = vstv %s6541_s25  ;;  %v1176_v9 = vstv %s6543_s19  ;;  %s6618_s19 = sld [smem:[#allocation10 + $0x3f]] }
 0x71e   :  { %s6807_s25 = sld [smem:[#allocation10 + $0x2c]] }
 0x71f   :  { %1089 = vrot.lane.b32.xlu1 %v1040_v56, %s7608_s29  ;;  %v1412_v50 = vpop.permute.xlu0 %1411  ;;  %v1415_v56 = vadd.f32 %v1410_v33, %v1357_v54  ;;  %v1324_v33 = vstv %s6535_s27  ;;  %s6612_s27 = sld [smem:[#allocation10 + $0x2d]]  ;;  %v1472_v54 = vstv %s6551_s1 }
 0x720   :  { %1223 = vrot.lane.b32.xlu0 %v1161_v11, %s5655_s22  ;;  %v1416_v61 = vadd.f32 %v1412_v50, %v1358_v27  ;;  %v1518_v11 = vmul.f32 %v1516_v42, %v6400_v23  ;;  %v1164_v50 = vstv %s6533_s15  ;;  %s6606_s15 = sld [smem:[#allocation10 + $0x1b]]  ;;  %v1312_v27 = vstv %s6547_s4 }
 0x721   :  { %v1730_v35 = vpop.permute.xlu1 %1729  ;;  %s6638_s4 = sld [smem:[#allocation10 + $0x2]] }
 0x722   :  { %s6656_s1 = sld [smem:[#allocation10 + $0x18]] }
 0x723   :  { %1093 = vrot.lane.b32.xlu1 %v1042_v43, %s7608_s29  ;;  %v1322_v43 = vmul.f32 %v1320_v14, %v1032_v1  ;;  %v1572_v45 = vpop.permute.xlu0 %1571 }
 0x724   :  { %1233 = vrot.lane.b32.xlu0 %v1169_v19, %s7608_s29  ;;  %v1676_v19 = vstv %s6515_s30  ;;  %s6572_s30 = sld [smem:[#allocation10 + $0x40]] }
 0x725   :  { %v1678_v15 = vmul.f32 %v1676_v19, %v6400_v23  ;;  %v1677_v53 = vmul.f32 %v1676_v19, %v6412_v16  ;;  %v240_v23 = vadd.s32 16, %v5908_v55 }
 0x727   :  { %1225 = vrot.lane.b32.xlu1 %v1162_v31, %s5655_s22  ;;  %v1732_v24 = vpop.permute.xlu0 %1731  ;;  %v1517_v31 = vmul.f32 %v1516_v42, %v6412_v16  ;;  %v239_v16 = vadd.s32 8, %v5908_v55  ;;  %v1125_v42 = vrot.slane %v6361_v5, 1 }
 0x728   :  { %1383 = vrot.lane.b32.xlu0 %v1321_v20, %s5655_s22  ;;  %v1576_v20 = vadd.f32 %v1572_v45, %v1518_v11  ;;  %v1484_v45 = vstv %s6537_s3  ;;  %v1632_v11 = vstv %s6555_s26  ;;  %s6684_s26 = sld [smem:[#allocation10 + $0x3c]] }
 0x729   :  { %s6757_s3 = sld [smem:[#allocation10 + $0x1a]] }
 0x72b   :  { %1235 = vrot.lane.b32.xlu1 %v1170_v13, %s7608_s29 }
 0x72c   :  { %1393 = vrot.lane.b32.xlu0 %v1329_v36, %s7608_s29  ;;  %v1575_v36 = vadd.f32 %v1570_v28, %v1517_v31  ;;  %v1074_v28 = vrot.slane %v6367_v60, 7 }
 0x72f   :  { %1385 = vrot.lane.b32.xlu1 %v1322_v43, %s5655_s22 }
 0x730   :  { %1543 = vrot.lane.b32.xlu0 %v1481_v17, %s5655_s22 }
 0x733   :  { %1395 = vrot.lane.b32.xlu1 %v1330_v7, %s7608_s29  ;;  %v1736_v7 = vadd.f32 %v1732_v24, %v1678_v15  ;;  %v1644_v24 = vstv %s6539_s14  ;;  %v7625_v15 = vstv %s6568_s10  ;;  %s6769_s14 = sld [smem:[#allocation10 + $0x1d]] }
 0x734   :  { %1553 = vrot.lane.b32.xlu0 %v1489_v25, %s7608_s29 }
 0x737   :  { %1545 = vrot.lane.b32.xlu1 %v1482_v8, %s5655_s22  ;;  %v1735_v8 = vadd.f32 %v1730_v35, %v1677_v53  ;;  %v1124_v35 = vrot.slane %v6415_v46, 1 }
 0x738   :  { %1703 = vrot.lane.b32.xlu0 %v1641_v12, %s5655_s22 }
 0x739   :  { %v1128_v31 = vsel %vm384_vm6, %v1124_v35, %v1125_v42 }
 0x73b   :  { %1555 = vrot.lane.b32.xlu1 %v1490_v32, %s7608_s29 }
 0x73c   :  { %1713 = vrot.lane.b32.xlu0 %v1649_v63, %s7608_s29  ;;  %v975_v63 = vand.u32 15, %v5908_v55 }
 0x73e   :  { %vm979_vm11 = vcmp.ne.s32.totalorder %v975_v63, 0  ;;  %v6682_v63 = vmul.f32 %v1644_v24, %v6363_v44 }
 0x73f   :  { %1705 = vrot.lane.b32.xlu1 %v1642_v21, %s5655_s22  ;;  %v977_v21 = vand.u32 15, %v240_v23  ;;  %v6585_v4 = vsel %vm979_vm11, 1.0, %v7677_v26  ;;  %v6672_v23 = vmul.f32 %v1324_v33, %v6363_v44 }
 0x740   :  { %7680 = vst [vmem:[#allocation55_spill] sm:$0xff] %v6682_v63  ;;  %v7693_v63 = vstv %s6568_s10  ;;  %s6885_s10 = sld [smem:[#allocation11]] }
 0x741   :  { %vm981_vm12 = vcmp.ne.s32.totalorder %v977_v21, 0 }
 0x742   :  { %v6594_v3 = vsel %vm981_vm12, 1.0, %v7677_v26 }
 0x743   :  { %1715 = vrot.lane.b32.xlu1 %v1650_v18, %s7608_s29  ;;  %v976_v18 = vand.u32 15, %v239_v16  ;;  %s6574_s29 = sld [smem:[#allocation10 + $0x46]]  ;;  %v6677_v16 = vmul.f32 %v1484_v45, %v6363_v44 }
 0x745   :  { %vm992_vm13 = vcmp.ne.s32.totalorder %v976_v18, 15  ;;  %7679 = vst [vmem:[#allocation54_spill] sm:$0xff] %v6677_v16 }
 0x746   :  { %v6601_v41 = vsel %vm992_vm13, 1.0, %v7677_v26  ;;  %v7689_v26 = vstv %s6570_s17  ;;  %s6851_s17 = sld [smem:[#allocation10 + $0x41]] }
 0x77a   :  { %v1280_v10 = vpop.permute.xlu0 %1279 }
 0x77b   :  { %v1284_v51 = vadd.f32 %v1280_v10, %v1256_v34  ;;  %v1152_v34 = vstv %s6545_s8  ;;  %v1071_v10 = vrot.slane %v6363_v44, 7  ;;  %s6627_s8 = sld [smem:[#allocation10 + $0x6]] }
 0x77c   :  { %v1278_v59 = vpop.permute.xlu1 %1277 }
 0x77d   :  { %v1283_v1 = vadd.f32 %v1278_v59, %v1255_v62  ;;  %1291 = vrot.lane.b32.xlu1 %v1284_v51, %s5655_s22  ;;  %v1126_v62 = vrot.slane %v6367_v60, 1  ;;  %v1336_v51 = vstv %s6549_s0  ;;  %v1072_v59 = vrot.slane %v6415_v46, 7  ;;  %s6646_s0 = sld [smem:[#allocation10 + $0x14]] }
 0x77e   :  { %v1440_v57 = vpop.permute.xlu0 %1439 }
 0x77f   :  { %v1444_v40 = vadd.f32 %v1440_v57, %v1416_v61  ;;  %1289 = vrot.lane.b32.xlu0 %v1283_v1, %s5655_s22  ;;  %v1123_v1 = vrot.slane %v6363_v44, 1  ;;  %v1078_v57 = vsel %vm331_vm3, %v1074_v28, %v1071_v10 }
 0x780   :  { %v1438_v14 = vpop.permute.xlu1 %1437 }
 0x781   :  { %v1443_v52 = vadd.f32 %v1438_v14, %v1415_v56  ;;  %1451 = vrot.lane.b32.xlu1 %v1444_v40, %s5655_s22  ;;  %v1656_v40 = vstv %s6557_s28  ;;  %v1073_v14 = vrot.slane %v6361_v5, 7  ;;  %s6696_s28 = sld [smem:[#allocation10 + $0x26]]  ;;  %v7624_v5 = vstv %s6576_s5 }
 0x782   :  { %v1600_v13 = vpop.permute.xlu0 %1599 }
 0x783   :  { %v1604_v43 = vadd.f32 %v1600_v13, %v1576_v20  ;;  %1449 = vrot.lane.b32.xlu0 %v1443_v52, %s5655_s22  ;;  %v1212_v20 = vstv %s6560_s2  ;;  %v1348_v52 = vstv %s6563_s7  ;;  %v1130_v13 = vsel %vm384_vm6, %v1126_v62, %v1123_v1  ;;  %s6819_s2 = sld [smem:[#allocation10 + $0x2f]] }
 0x784   :  { %v1598_v17 = vpop.permute.xlu1 %1597  ;;  %v1076_v53 = vsel %vm331_vm3, %v1072_v59, %v1073_v14  ;;  %s6829_s7 = sld [smem:[#allocation10 + $0x35]] }
 0x785   :  { %v1603_v25 = vadd.f32 %v1598_v17, %v1575_v36  ;;  %1611 = vrot.lane.b32.xlu1 %v1604_v43, %s5655_s22  ;;  %v1372_v36 = vstv %s6565_s6  ;;  %v1079_v17 = vmul.f32 %v6585_v4, %v1078_v57  ;;  %v6687_v21 = vmul.f32 %v6594_v3, %v1076_v53  ;;  %s6842_s6 = sld [smem:[#allocation10 + $0x3e]] }
 0x786   :  { %v1760_v30 = vpop.permute.xlu0 %1759 }
 0x787   :  { %v1764_v12 = vadd.f32 %v1760_v30, %v1736_v7  ;;  %1609 = vrot.lane.b32.xlu0 %v1603_v25, %s5655_s22  ;;  %v1129_v7 = vsel %vm384_vm6, %v1123_v1, %v1124_v35  ;;  %v1132_v30 = vmul.f32 %v6601_v41, %v1128_v31  ;;  %v6703_v1 = vmul.f32 %v1152_v34, %v1079_v17 }
 0x788   :  { %v1758_v22 = vpop.permute.xlu1 %1757  ;;  %v6691_v35 = vmul.f32 %v1176_v9, %v1129_v7  ;;  %v1313_v31 = vmul.f32 %v1312_v27, %v1079_v17  ;;  %v1473_v2 = vmul.f32 %v1472_v54, %v1079_v17  ;;  %v1633_v47 = vmul.f32 %v1632_v11, %v1079_v17 }
 0x789   :  { %v1763_v32 = vadd.f32 %v1758_v22, %v1735_v8  ;;  %1771 = vrot.lane.b32.xlu1 %v1764_v12, %s5655_s22  ;;  %v6661_v8 = vmul.f32 %v1164_v50, %v6363_v44  ;;  %v1077_v12 = vsel %vm331_vm3, %v1071_v10, %v1072_v59  ;;  %v6694_v10 = vmul.f32 %v1164_v50, %v6415_v46 }
 0x78a   :  { %v6631_v19 = vpop.permute.xlu0 %1087  ;;  %v6699_v59 = vmul.f32 %v1324_v33, %v6415_v46  ;;  %v6705_v57 = vmul.f32 %v1152_v34, %v1077_v12  ;;  %v6711_v53 = vmul.f32 %v1176_v9, %v1132_v30  ;;  %v6713_v50 = vmul.f32 %v1312_v27, %v1077_v12 }
 0x78b   :  { %1769 = vrot.lane.b32.xlu0 %v1763_v32, %s5655_s22  ;;  %s6553_s22 = sld [smem:[#allocation10 + $0x2b]]  ;;  %v6669_v32 = vmul.f32 %v6429_v29, %v1130_v13  ;;  %v6707_v13 = vmul.f32 %v1336_v51, %v1129_v7  ;;  %v6715_v0 = vmul.f32 %v1336_v51, %v1132_v30  ;;  %v6721_v34 = vmul.f32 %v1472_v54, %v1077_v12 }
 0x78c   :  { %v6726_v9 = vmul.f32 %v1484_v45, %v6415_v46  ;;  %v6732_v51 = vmul.f32 %v1656_v40, %v1129_v7  ;;  %v1075_v54 = vsel %vm331_vm3, %v1073_v14, %v1074_v28  ;;  %v1127_v45 = vsel %vm384_vm6, %v1125_v42, %v1126_v62 }
 0x78d   :  { %v6580_v38 = vpop.permute.xlu1 %1049  ;;  %v6748_v17 = vmul.f32 %v1632_v11, %v1077_v12  ;;  %v6753_v28 = vmul.f32 %v1644_v24, %v6415_v46  ;;  %v6755_v14 = vmul.f32 %v1656_v40, %v1132_v30  ;;  %v7622_v62 = vstv %s6578_s21 }
 0x78e   :  { %v6701_v44 = vpop.permute.xlu0 %1091  ;;  %7681 = vst [vmem:[#allocation56_spill] sm:$0xff] %v6726_v9  ;;  %v6767_v42 = vmul.f32 %v1212_v20, %v6669_v32  ;;  %v7626_v24 = vstv %s6590_s23  ;;  %v6776_v11 = vmul.f32 %v1188_v49, %v1075_v54  ;;  %v6780_v40 = vmul.f32 %v1212_v20, %v1127_v45 }
 0x78f   :  { %7682 = vst [vmem:[#allocation57_spill] sm:$0xff] %v6753_v28  ;;  %v6796_v12 = vmul.f32 %v1372_v36, %v6669_v32  ;;  %v6800_v20 = vmul.f32 %v1372_v36, %v1127_v45  ;;  %v6817_v43 = vmul.f32 %v7625_v15, %v1075_v54  ;;  %v6827_v28 = vmul.f32 %v7689_v26, %v6669_v32 }
 0x790   :  { %7683 = vst [vmem:[#allocation58_spill] sm:$0xff] %v6780_v40 }
 0x791   :  { %v1496_v61 = vstv %s6553_s22  ;;  %v6625_v56 = vpop.permute.xlu1 %1089  ;;  %s6665_s22 = sld [smem:[#allocation10 + $0x2a]]  ;;  %7685 = vst [vmem:[#allocation50_spill] sm:$0xff] %v6796_v12  ;;  %7686 = vst [vmem:[#allocation53_spill] sm:$0xff] %v6800_v20 }
 0x792   :  { %v6719_v33 = vmul.f32 %v1496_v61, %v1129_v7  ;;  %v6730_v27 = vmul.f32 %v1496_v61, %v1132_v30  ;;  %v1067_v61 = vmul.f32 %v6585_v4, %v6435_v6  ;;  %v7623_v6 = vstv %s6582_s24  ;;  %v6771_v46 = vpop.permute.xlu0 %1223  ;;  %7688 = vst [vmem:[#allocation60_spill] sm:$0xff] %v6817_v43  ;;  %7690 = vst [vmem:[#allocation61_spill] sm:$0xff] %v6827_v28 }
 0x793   :  { %v6785_v7 = vmul.f32 %v1188_v49, %v6687_v21  ;;  %v6791_v30 = vmul.f32 %v1348_v52, %v1075_v54  ;;  %v6805_v49 = vmul.f32 %v1348_v52, %v6687_v21  ;;  %v6840_v43 = vmul.f32 %v7693_v63, %v6687_v21 }
 0x794   :  { %v1149_v58 = vmul.f32 %v7624_v5, %v1067_v61  ;;  %v1309_v22 = vmul.f32 %v7622_v62, %v1067_v61  ;;  %v1469_v25 = vmul.f32 %v7623_v6, %v1067_v61  ;;  %v1629_v52 = vmul.f32 %v7626_v24, %v1067_v61 }
 0x795   :  { %v6689_v18 = vpop.permute.xlu1 %1093  ;;  %7684 = vst [vmem:[#allocation51_spill] sm:$0xff] %v6791_v30  ;;  %7687 = vst [vmem:[#allocation59_spill] sm:$0xff] %v6805_v49  ;;  %v7691_v62 = vmov %v7689_v26  ;;  %v7695_v26 = vstv %s6572_s30  ;;  %s6906_s30 = sld [smem:[#allocation11 + $0x1]]  ;;  %v1099_v28 = vrot.slane %v6631_v19, 7  ;;  %v1135_v49 = vrot.slane %v6631_v19, 1 }
 0x796   :  { %v6833_v6 = vmul.f32 %v7691_v62, %v1127_v45  ;;  %7694 = vst [vmem:[#allocation63_spill] sm:$0xff] %v6840_v43  ;;  %v6849_v36 = vmul.f32 %v7695_v26, %v1075_v54  ;;  %v7697_v62 = vstv %s6574_s29  ;;  %v7701_v61 = vmov %v7695_v26  ;;  %s6881_s29 = sld [smem:[#allocation10 + $0x47]] }
 0x797   :  { %v6856_v15 = vmul.f32 %v7697_v62, %v6669_v32  ;;  %v7699_v63 = vmov %v7697_v62  ;;  %v6865_v43 = vmul.f32 %v7701_v61, %v6687_v21  ;;  %v6869_v54 = vadd.f32 %v1313_v31, %v1309_v22 }
 0x798   :  { %7692 = vst [vmem:[#allocation62_spill] sm:$0xff] %v6833_v6  ;;  %7696 = vst [vmem:[#allocation64_spill] sm:$0xff] %v6849_v36  ;;  %v6860_v5 = vmul.f32 %v7699_v63, %v1127_v45  ;;  %v6867_v6 = vpop.permute.xlu0 %1233  ;;  %v6871_v26 = vadd.f32 %v1473_v2, %v1469_v25  ;;  %v7704_v36 = vstv %s6597_s20  ;;  %v6879_v45 = vadd.f32 %v6703_v1, %v1149_v58 }
 0x799   :  { %v6760_v60 = vpop.permute.xlu1 %1225  ;;  %7698 = vst [vmem:[#allocation65_spill] sm:$0xff] %v6856_v15  ;;  %7702 = vst [vmem:[#allocation67_spill] sm:$0xff] %v6865_v43  ;;  %v6876_v32 = vmul.f32 %v7704_v36, %v6450_v37  ;;  %v6883_v21 = vadd.f32 %v1633_v47, %v1629_v52  ;;  %v7706_v2 = vstv %s6606_s15  ;;  %v7708_v22 = vstv %s6612_s27 }
 0x79a   :  { %7700 = vst [vmem:[#allocation66_spill] sm:$0xff] %v6860_v5  ;;  %7703 = vst [vmem:[#allocation68_spill] sm:$0xff] %v6871_v26  ;;  %v6890_v25 = vmul.f32 %v7706_v2, %v6450_v37  ;;  %v6895_v31 = vmul.f32 %v7708_v22, %v6450_v37  ;;  %v7710_v58 = vstv %s6618_s19  ;;  %v1112_v47 = vrot.slane %v6580_v38, 1 }
 0x79b   :  { %7705 = vst [vmem:[#allocation69_spill] sm:$0xff] %v6883_v21  ;;  %v6900_v1 = vmul.f32 %v7710_v58, %v6450_v37  ;;  %v1172_v52 = vstv %s6627_s8  ;;  %v1060_v62 = vrot.slane %v6580_v38, 7  ;;  %v1332_v63 = vstv %s6656_s1  ;;  %s5658_s1 = smov [#allocation2]  }
 0x79c   :  { %7707 = vst [vmem:[#allocation70_spill] sm:$0xff] %v6890_v25  ;;  %7709 = vst [vmem:[#allocation71_spill] sm:$0xff] %v6895_v31  ;;  %v1102_v36 = vrot.slane %v6689_v18, 7  ;;  %v7712_v2 = vrot.slane %v6442_v48, 1  ;;  %v1384_v58 = vpop.permute.xlu0 %1383  ;;  %v7713_v31 = vrot.slane %v6424_v39, 7  ;;  %v1136_v5 = vrot.slane %v6625_v56, 1 }
 0x79d   :  { %v6845_v24 = vpop.permute.xlu1 %1235  ;;  %7711 = vst [vmem:[#allocation72_spill] sm:$0xff] %v6900_v1  ;;  %v7714_v1 = vrot.slane %v6424_v39, 1  ;;  %v1101_v39 = vrot.slane %v6701_v44, 7  ;;  %v7715_v21 = vstv %s6576_s5  ;;  %v7716_v25 = vrot.slane %v6442_v48, 7  ;;  %s7791_s5 = sld [smem:[#allocation83_spill]] }
 0x79e   :  { %v1116_v22 = vsel %vm384_vm6, %v1112_v47, %v7712_v2  ;;  %v1065_v15 = vsel %vm331_vm3, %v7713_v31, %v1060_v62  ;;  %v1100_v2 = vrot.slane %v6625_v56, 7  ;;  %v1106_v9 = vsel %vm331_vm3, %v1102_v36, %v1099_v28 }
 0x79f   :  { %v1117_v38 = vsel %vm384_vm6, %v7714_v1, %v1112_v47  ;;  %v1120_v20 = vmul.f32 %v6601_v41, %v1116_v22  ;;  %v1137_v1 = vrot.slane %v6701_v44, 1  ;;  %v1150_v12 = vmul.f32 %v7715_v21, %v1065_v15 }
 0x7a0   :  { %v1173_v47 = vmul.f32 %v1172_v52, %v1117_v38  ;;  %v1064_v56 = vsel %vm331_vm3, %v1060_v62, %v7716_v25  ;;  %v1138_v22 = vrot.slane %v6689_v18, 1  ;;  %v1104_v44 = vsel %vm331_vm3, %v1100_v2, %v1101_v39  ;;  %v1394_v21 = vpop.permute.xlu0 %1393 }
 0x7a1   :  { %v6919_v61 = vpop.permute.xlu1 %1385  ;;  %v1140_v30 = vsel %vm384_vm6, %v1136_v5, %v1137_v1  ;;  %v1107_v48 = vmul.f32 %v6585_v4, %v1106_v9  ;;  %v1105_v18 = vsel %vm331_vm3, %v1099_v28, %v1100_v2  ;;  %v1174_v25 = vmul.f32 %v1172_v52, %v1120_v20 }
 0x7a2   :  { %v1333_v62 = vmul.f32 %v1332_v63, %v1117_v38  ;;  %v7717_v31 = vstv %s6578_s21  ;;  %v6974_v43 = vmul.f32 %v6594_v3, %v1064_v56  ;;  %v1241_v40 = vadd.f32 %v6691_v35, %v1173_v47  ;;  %s7790_s21 = smov 127  }
 0x7a3   :  { %v1310_v19 = vmul.f32 %v7717_v31, %v1065_v15  ;;  %v1220_v26 = vadd.f32 %v6705_v57, %v1150_v12  ;;  %v1334_v16 = vmul.f32 %v1332_v63, %v1120_v20  ;;  %v6979_v4 = vmul.f32 %v6594_v3, %v1104_v44 }
 0x7a4   :  { %v6983_v9 = vsel %vm384_vm6, %v1135_v49, %v1136_v5  ;;  %v6986_v28 = vmul.f32 %v6601_v41, %v1140_v30  ;;  %v1142_v52 = vsel %vm384_vm6, %v1138_v22, %v1135_v49  ;;  %v1239_v35 = vadd.f32 %v6867_v6, %v6661_v8 }
 0x7a5   :  { %v6959_v37 = vpop.permute.xlu1 %1395  ;;  %v7718_v2 = vstv %s6638_s4  ;;  %v7719_v12 = vstv %s6646_s0  ;;  %v7720_v63 = vstv %s6665_s22  ;;  %v1242_v5 = vadd.f32 %v6711_v53, %v1174_v25  ;;  %v1544_v53 = vpop.permute.xlu0 %1543  ;;  %s207_s22 = sshll.u32 %s5658_s1, 4  ;;  %s7332_s22 = int_to_ptr.vmem [resolvable:$true] %s207_s22 }
 0x7a6   :  { %v1158_v57 = vmul.f32 %v7718_v2, %v1105_v18  ;;  %v1317_v3 = vmul.f32 %v7719_v12, %v1107_v48  ;;  %v1493_v31 = vmul.f32 %v7720_v63, %v1117_v38  ;;  %v1401_v41 = vadd.f32 %v6707_v13, %v1333_v62  ;;  %p5471_p8 = scmp.lt.s32.totalorder %s7332_s22, %s7332_s22 }
 0x7a7   :  { %v7721_v30 = vmov %v7719_v12  ;;  %v1380_v49 = vadd.f32 %v6713_v50, %v1310_v19  ;;  %v7007_v8 = vsel %vm331_vm3, %v1101_v39, %v1102_v36  ;;  %v7011_v6 = vsel %vm384_vm6, %v1137_v1, %v1138_v22 }
 0x7a8   :  { %v1318_v47 = vmul.f32 %v7721_v30, %v1105_v18  ;;  %v7014_v13 = vmul.f32 %v6429_v29, %v1142_v52  ;;  %v1402_v50 = vadd.f32 %v6715_v0, %v1334_v16  ;;  %v7722_v44 = vmov %v7718_v2 }
 0x7a9   :  { %v7003_v56 = vpop.permute.xlu1 %1545  ;;  %v1157_v25 = vmul.f32 %v7722_v44, %v1107_v48  ;;  %v1230_v36 = vadd.f32 %v6760_v60, %v1158_v57  ;;  %v7723_v39 = vstv %s6582_s24  ;;  %v7724_v19 = vmov %v7720_v63 }
 0x7aa   :  { %v1470_v62 = vmul.f32 %v7723_v39, %v1065_v15  ;;  %v1494_v2 = vmul.f32 %v7724_v19, %v1120_v20  ;;  %v1271_v1 = vadd.f32 %v1241_v40, %v1239_v35  ;;  %v1389_v22 = vadd.f32 %v1384_v58, %v1317_v3 }
 0x7ab   :  { %v1561_v12 = vadd.f32 %v6719_v33, %v1493_v31  ;;  %v7725_v29 = vstv %s6684_s26  ;;  %v1240_v63 = vadd.f32 %v6845_v24, %v6694_v10  ;;  %v7726_v30 = vstv %s6696_s28  ;;  %s5466_s26 = scalar_lea.vmem %s7332_s22, 4096 }
 0x7ac   :  { %v1653_v52 = vmul.f32 %v7725_v29, %v1117_v38  ;;  %v1477_v0 = vmul.f32 %v7726_v30, %v1107_v48  ;;  %v7727_v16 = vmov %v7726_v30  ;;  %v7728_v60 = vstv %s6590_s23  ;;  %p7336_p7 = scmp.ne.s32.totalorder %s7332_s22, %s5466_s26 }
 0x7ad   :  { %v1478_v44 = vmul.f32 %v7727_v16, %v1105_v18  ;;  %v1630_v57 = vmul.f32 %v7728_v60, %v1065_v15  ;;  %v7729_v39 = vstv %s6709_s18  ;;  %v7730_v19 = vmov %v7725_v29  ;;  %v1556_v31 = vpop.permute.xlu1 %1555 }
 0x7ae   :  { %v1637_v55 = vmul.f32 %v7729_v39, %v1107_v48  ;;  %v1654_v40 = vmul.f32 %v7730_v19, %v1120_v20  ;;  %v7731_v58 = vstv %s6717_s16  ;;  %v7732_v38 = vstv %s6728_s12  ;;  %v1554_v48 = vpop.permute.xlu0 %1553  ;;  %s7787_s12 = smov 32   ;;  %s7789_s16 = sld [smem:[#allocation82_spill]] }
 0x7af   :  { %v1182_v33 = vmul.f32 %v7731_v58, %v6986_v28  ;;  %v1194_v35 = vmul.f32 %v7732_v38, %v7007_v8  ;;  %v1229_v10 = vadd.f32 %v6771_v46, %v1157_v25  ;;  %v1270_v24 = vadd.f32 %v1230_v36, %v1220_v26 }
 0x7b0   :  { %v7047_v3 = vadd.f32 %v6721_v34, %v1470_v62  ;;  %v7050_v15 = vadd.f32 %v6730_v27, %v1494_v2  ;;  %v1429_v20 = vadd.f32 %v1389_v22, %v6869_v54  ;;  %v7054_v29 = vadd.f32 %v6732_v51, %v1653_v52 }
 0x7b1   :  { %v7733_v30 = vmov %v7729_v39  ;;  %v7734_v26 = vmov %v7732_v38  ;;  %v1272_v25 = vadd.f32 %v1242_v5, %v1240_v63  ;;  %v1399_v36 = vadd.f32 %v1394_v21, %v6672_v23  ;;  %v7743_v38 = vld [vmem:[#allocation68_spill] sm:$0xff] }
 0x7b2   :  { %v7058_v46 = vmul.f32 %v7733_v30, %v1105_v18  ;;  %v1193_v34 = vmul.f32 %v7734_v26, %v6979_v4  ;;  %v7065_v27 = vadd.f32 %v6748_v17, %v1630_v57  ;;  %v7735_v54 = vstv %s6738_s13 }
 0x7b3   :  { %v1218_v62 = vmul.f32 %v7735_v54, %v7014_v13  ;;  %v7071_v2 = vadd.f32 %v6755_v14, %v1654_v40  ;;  %v1244_v51 = vadd.f32 %v6876_v32, %v1182_v33  ;;  %v1246_v18 = vadd.f32 %v1194_v35, %v6776_v11  ;;  %v1704_v40 = vpop.permute.xlu0 %1703  ;;  %v7744_v35 = vld [vmem:[#allocation58_spill] sm:$0xff] }
 0x7b4   :  { %v7736_v22 = vmov %v7731_v58  ;;  %v1390_v5 = vadd.f32 %v6919_v61, %v1318_v47  ;;  %v1549_v23 = vadd.f32 %v1544_v53, %v1477_v0  ;;  %v7737_v17 = vmov %v7735_v54  ;;  %v7092_v61 = vpop.permute.xlu1 %1705  ;;  %v7747_v54 = vld [vmem:[#allocation70_spill] sm:$0xff] }
 0x7b5   :  { %v1181_v52 = vmul.f32 %v7736_v22, %v6983_v9  ;;  %v1217_v21 = vmul.f32 %v7737_v17, %v7011_v6  ;;  %v7738_v63 = vstv %s6769_s14  ;;  %v1400_v14 = vadd.f32 %v6959_v37, %v6699_v59  ;;  %v7741_v59 = vld [vmem:[#allocation54_spill] sm:$0xff] }
 0x7b6   :  { %v1354_v16 = vmul.f32 %v7738_v63, %v7007_v8  ;;  %v7739_v32 = vstv %s6597_s20  ;;  %v1269_v11 = vadd.f32 %v1229_v10, %v6879_v45  ;;  %v1245_v57 = vadd.f32 %v1193_v34, %v6785_v7 }
 0x7b7   :  { %v1185_v60 = vmul.f32 %v7739_v32, %v6974_v43  ;;  %v1431_v39 = vadd.f32 %v1401_v41, %v1399_v36  ;;  %v7095_v47 = vadd.f32 %v1218_v62, %v6767_v42  ;;  %v1286_v53 = vadd.f32 %v1272_v25, %v1270_v24  ;;  %v7745_v24 = vld [vmem:[#allocation51_spill] sm:$0xff] }
 0x7b8   :  { %v7740_v0 = vstv %s6757_s3  ;;  %v1559_v37 = vadd.f32 %v1554_v48, %v7741_v59  ;;  %v1274_v45 = vadd.f32 %v1246_v18, %v1244_v51  ;;  %v7742_v7 = vstv %s6787_s11  ;;  %s7186_s11 = sld [smem:[#allocation11 + $0x3]]  ;;  %s5470_s3 = scalar_lea.vmem %s7332_s22, 8192 }
 0x7b9   :  { %v1342_v19 = vmul.f32 %v7740_v0, %v6986_v28  ;;  %v1243_v58 = vadd.f32 %v1185_v60, %v1181_v52  ;;  %v1378_v41 = vmul.f32 %v7742_v7, %v7014_v13  ;;  %v1430_v33 = vadd.f32 %v1390_v5, %v1380_v49  ;;  %p5472_p9 = scmp.lt.s32.totalorder %s5470_s3, %s5466_s26 }
 0x7ba   :  { %v1589_v42 = vadd.f32 %v1549_v23, %v7743_v38  ;;  %v7106_v10 = vadd.f32 %v1217_v21, %v7744_v35  ;;  %v1406_v30 = vadd.f32 %v1354_v16, %v7745_v24  ;;  %v1432_v26 = vadd.f32 %v1402_v50, %v1400_v14  ;;  %v1716_v14 = vpop.permute.xlu1 %1715 }
 0x7bb   :  { %v1273_v34 = vadd.f32 %v1245_v57, %v1243_v58  ;;  %v1285_v48 = vadd.f32 %v1271_v1, %v1269_v11  ;;  %v7746_v25 = vmov %v7738_v63  ;;  %v1404_v62 = vadd.f32 %v7747_v54, %v1342_v19  ;;  %v7751_v1 = vld [vmem:[#allocation50_spill] sm:$0xff]  ;;  %v7754_v19 = vld [vmem:[#allocation59_spill] sm:$0xff]  ;;  %v7763_v54 = vld [vmem:[#allocation69_spill] sm:$0xff]  ;;  %p7343_p10 = por %p5472_p9, %p5471_p8 }
 0x7bc   :  { %v1353_v36 = vmul.f32 %v7746_v25, %v6979_v4  ;;  %v7748_v51 = vmov %v7740_v0  ;;  %v7749_v18 = vmov %v7742_v7  ;;  %v7750_v52 = vstv %s6819_s2  ;;  %v1714_v0 = vpop.permute.xlu0 %1713 }
 0x7bd   :  { %v1341_v49 = vmul.f32 %v7748_v51, %v6983_v9  ;;  %v1377_v22 = vmul.f32 %v7749_v18, %v7011_v6  ;;  %v1514_v5 = vmul.f32 %v7750_v52, %v7007_v8  ;;  %v1591_v50 = vadd.f32 %v1561_v12, %v1559_v37  ;;  %v7765_v18 = vld [vmem:[#allocation71_spill] sm:$0xff]  ;;  %p5474_p11 = pnand %p7343_p10, %p7336_p7 }
 0x7be   :  { %v1550_v23 = vadd.f32 %v7003_v56, %v1478_v44  ;;  %v7124_v17 = vadd.f32 %v1378_v41, %v7751_v1  ;;  %v7752_v21 = vstv %s6606_s15  ;;  %v1709_v16 = vadd.f32 %v1704_v40, %v1637_v55  ;;  %v7757_v55 = vld [vmem:[#allocation56_spill] sm:$0xff]  ;;  %v7758_v41 = vld [vmem:[#allocation53_spill] sm:$0xff] }
 0x7bf   :  { %v1345_v63 = vmul.f32 %v7752_v21, %v6974_v43  ;;  %v1434_v32 = vadd.f32 %v1406_v30, %v1404_v62  ;;  %v1445_v60 = vadd.f32 %v1431_v39, %v1429_v20  ;;  %v7753_v11 = vstv %s6807_s25  ;;  %v7759_v20 = vld [vmem:[#allocation60_spill] sm:$0xff]  ;;  %v7767_v1 = vld [vmem:[#allocation61_spill] sm:$0xff] }
 0x7c0   :  { %v1502_v57 = vmul.f32 %v7753_v11, %v6986_v28  ;;  %v1446_v12 = vadd.f32 %v1432_v26, %v1430_v33  ;;  %v1405_v56 = vadd.f32 %v1353_v36, %v7754_v19  ;;  %v7755_v44 = vstv %s6829_s7 }
 0x7c1   :  { %v1538_v59 = vmul.f32 %v7755_v44, %v7014_v13  ;;  %v7756_v37 = vmov %v7753_v11  ;;  %v1560_v40 = vadd.f32 %v1556_v31, %v7757_v55  ;;  %v1403_v7 = vadd.f32 %v1345_v63, %v1341_v49  ;;  %v7764_v31 = vld [vmem:[#allocation55_spill] sm:$0xff] }
 0x7c2   :  { %v1501_v58 = vmul.f32 %v7756_v37, %v6983_v9  ;;  %v1427_v38 = vadd.f32 %v1377_v22, %v7758_v41  ;;  %v1566_v39 = vadd.f32 %v1514_v5, %v7759_v20  ;;  %v1590_v35 = vadd.f32 %v1550_v23, %v7047_v3  ;;  %v7769_v41 = vld [vmem:[#allocation62_spill] sm:$0xff]  ;;  %v7770_v20 = vld [vmem:[#allocation63_spill] sm:$0xff] }
 0x7c3   :  { %v7760_v33 = vstv %s6612_s27  ;;  %v7761_v30 = vmov %v7750_v52  ;;  %v7762_v25 = vmov %v7755_v44  ;;  %v7153_v62 = vadd.f32 %v1709_v16, %v7763_v54 }
 0x7c4   :  { %v1505_v24 = vmul.f32 %v7760_v33, %v6974_v43  ;;  %v1513_v26 = vmul.f32 %v7761_v30, %v6979_v4  ;;  %v1537_v36 = vmul.f32 %v7762_v25, %v7011_v6  ;;  %v1719_v51 = vadd.f32 %v1714_v0, %v7764_v31 }
 0x7c5   :  { %v1564_v22 = vadd.f32 %v7765_v18, %v1502_v57  ;;  %v7766_v3 = vstv %s6842_s6  ;;  %v1433_v23 = vadd.f32 %v1405_v56, %v1403_v7  ;;  %v1588_v21 = vadd.f32 %v1538_v59, %v7767_v1 }
 0x7c6   :  { %v1662_v52 = vmul.f32 %v7766_v3, %v6986_v28  ;;  %v1563_v63 = vadd.f32 %v1505_v24, %v1501_v58  ;;  %v1592_v11 = vadd.f32 %v7050_v15, %v1560_v40  ;;  %v1605_v44 = vadd.f32 %v1591_v50, %v1589_v42  ;;  %v7772_v15 = vld [vmem:[#allocation72_spill] sm:$0xff] }
 0x7c7   :  { %v1594_v16 = vadd.f32 %v1566_v39, %v1564_v22  ;;  %v7768_v0 = vstv %s6851_s17  ;;  %v1587_v28 = vadd.f32 %v1537_v36, %v7769_v41  ;;  %v1751_v56 = vadd.f32 %v7054_v29, %v1719_v51 }
 0x7c8   :  { %v1674_v37 = vmul.f32 %v7768_v0, %v7007_v8  ;;  %v7771_v59 = vstv %s6881_s29  ;;  %v1724_v40 = vadd.f32 %v7772_v15, %v1662_v52  ;;  %v7773_v42 = vmov %v7768_v0  ;;  %v7774_v8 = vld [vmem:[#allocation57_spill] sm:$0xff] }
 0x7c9   :  { %v1698_v58 = vmul.f32 %v7771_v59, %v7014_v13  ;;  %v1673_v50 = vmul.f32 %v7773_v42, %v6979_v4  ;;  %v1710_v29 = vadd.f32 %v7092_v61, %v7058_v46  ;;  %v1606_v30 = vadd.f32 %v1592_v11, %v1590_v35  ;;  %v7775_v13 = vld [vmem:[#allocation64_spill] sm:$0xff]  ;;  %v7778_v46 = vld [vmem:[#allocation65_spill] sm:$0xff] }
 0x7ca   :  { %v7776_v25 = vmov %v7766_v3  ;;  %v1765_v15 = vadd.f32 %v1751_v56, %v7153_v62 }
 0x7cb   :  { %v1661_v36 = vmul.f32 %v7776_v25, %v6983_v9  ;;  %v1748_v61 = vadd.f32 %v1698_v58, %v7778_v46  ;;  %v1750_v52 = vadd.f32 %v1710_v29, %v7065_v27 }
 0x7ef   :  { %v1292_v49 = vpop.permute.xlu1 %1291 }
 0x7f0   :  { %v1296_v5 = vadd.f32 %v1292_v49, %v1274_v45  ;;  %v1565_v45 = vadd.f32 %v1513_v26, %v7770_v20  ;;  %v1726_v26 = vadd.f32 %v1674_v37, %v7775_v13  ;;  %v7780_v49 = vld [vmem:[#allocation67_spill] sm:$0xff] }
 0x7f1   :  { %v1290_v19 = vpop.permute.xlu0 %1289  ;;  %v1725_v18 = vadd.f32 %v1673_v50, %v7780_v49 }
 0x7f2   :  { %v1298_v55 = vadd.f32 %v1296_v5, %v1286_v53  ;;  %v1295_v57 = vadd.f32 %v1290_v19, %v1273_v34  ;;  %v1720_v53 = vadd.f32 %v1716_v14, %v7774_v8  ;;  %v1593_v31 = vadd.f32 %v1565_v45, %v1563_v63 }
 0x7f3   :  { %v1452_v7 = vpop.permute.xlu1 %1451  ;;  %v1754_v1 = vadd.f32 %v1726_v26, %v1724_v40 }
 0x7f4   :  { %v1300_v34 = vadd.f32 %v1298_v55, %v7095_v47  ;;  %v1297_v39 = vadd.f32 %v1295_v57, %v1285_v48  ;;  %v1456_v33 = vadd.f32 %v1452_v7, %v1434_v32  ;;  %v7777_v47 = vstv %s6885_s10 }
 0x7f5   :  { %v1450_v24 = vpop.permute.xlu0 %1449  ;;  %v7779_v32 = vstv %s6618_s19  ;;  %v1752_v9 = vadd.f32 %v7071_v2, %v1720_v53  ;;  %v7781_v22 = vmov %v7777_v47  ;;  %v7785_v53 = vstv %s6912_s9 }
 0x7f6   :  { %v1299_v4 = vadd.f32 %v1297_v39, %v7106_v10  ;;  %v1458_v54 = vadd.f32 %v1456_v33, %v1446_v12  ;;  %v1455_v14 = vadd.f32 %v1450_v24, %v1433_v23  ;;  %v1304_v51 = vadd.f32 %v7777_v47, %v1300_v34  ;;  %v7786_v39 = vld [vmem:[#allocation66_spill] sm:$0xff] }
 0x7f7   :  { %v1612_v48 = vpop.permute.xlu1 %1611  ;;  %v1665_v35 = vmul.f32 %v7779_v32, %v6974_v43  ;;  %v7782_v43 = vstv %s6906_s30  ;;  %v1766_v45 = vadd.f32 %v1752_v9, %v1750_v52  ;;  %v7788_v29 = vmov %v7785_v53 }
 0x7f8   :  { %v1303_v10 = vadd.f32 %v7781_v22, %v1299_v4  ;;  %v1460_v12 = vadd.f32 %v1458_v54, %v7124_v17  ;;  %v1457_v3 = vadd.f32 %v1455_v14, %v1445_v60  ;;  %v1616_v5 = vadd.f32 %v1612_v48, %v1594_v16 }
 0x7f9   :  { %v1610_v23 = vpop.permute.xlu0 %1609  ;;  %v1723_v63 = vadd.f32 %v1665_v35, %v1661_v36  ;;  %v7202_v2 = vmax.f32 %v1304_v51, 0.0  ;;  %v7783_v17 = vmov %v7771_v59  ;;  %v7784_v16 = vmov %v7782_v43 }
 0x7fa   :  { %v7198_v11 = vmax.f32 %v1303_v10, 0.0  ;;  %v1464_v19 = vadd.f32 %v7782_v43, %v1460_v12  ;;  %v1459_v0 = vadd.f32 %v1457_v3, %v1427_v38  ;;  %v1615_v37 = vadd.f32 %v1610_v23, %v1593_v31 }
 0x7fb   :  { %v1618_v55 = vadd.f32 %v1616_v5, %v1606_v30  ;;  %v1772_v57 = vpop.permute.xlu1 %1771  ;;  %v1697_v60 = vmul.f32 %v7783_v17, %v7011_v6  ;;  %v1753_v27 = vadd.f32 %v1725_v18, %v1723_v63  ;;  %v5077_v17 = vld [vmem:[%s7789_s16] sm:$0xff]  }
 0x7fc   :  { %v1463_v41 = vadd.f32 %v7784_v16, %v1459_v0  ;;  %v1617_v20 = vadd.f32 %v1615_v37, %v1605_v44  ;;  %v1776_v7 = vadd.f32 %v1772_v57, %v1754_v1  ;;  %v7209_v59 = vmax.f32 %v1464_v19, 0.0 }
 0x7fd   :  { %v1620_v38 = vadd.f32 %v1618_v55, %v1588_v21  ;;  %v1770_v58 = vpop.permute.xlu0 %1769  ;;  %v5010_v40 = vpack.i.bf16 %v7202_v2, %v7198_v11  ;;  %v1782_v44 = vstv %s7186_s11  ;;  %v1747_v33 = vadd.f32 %v1697_v60, %v7786_v39  ;;  %v5076_v55 = vld [vmem:[%s7789_s16 + $0x8] sm:$0xff]  }
 0x7fe   :  { %v7214_v42 = vmax.f32 %v1463_v41, 0.0  ;;  %v1619_v6 = vadd.f32 %v1617_v20, %v1587_v28  ;;  %v1778_v50 = vadd.f32 %v1776_v7, %v1766_v45  ;;  %v1775_v8 = vadd.f32 %v1770_v58, %v1753_v27  ;;  %4859 = vmatprep.subr.bf16.mxu1 %v5076_v55 }
 0x7ff   :  { %v1624_v34 = vadd.f32 %v7785_v53, %v1620_v38  ;;  %5011 = vrot.lane.b32.xlu0 %v5010_v40, %s7787_s12  ;;  %4860 = vmatpush3.bf16.msra.mxu1 %v5076_v55 }
 0x800   :  { %v1623_v21 = vadd.f32 %v7788_v29, %v1619_v6  ;;  %v1780_v24 = vadd.f32 %v1778_v50, %v1748_v61  ;;  %v1777_v30 = vadd.f32 %v1775_v8, %v1765_v15  ;;  %v5015_v62 = vpack.i.bf16 %v7209_v59, %v7214_v42  ;;  %4861 = vmatprep.subr.bf16.mxu1 %v5077_v17 }
 0x801   :  { %v7225_v56 = vmax.f32 %v1624_v34, 0.0 }
 0x802   :  { %v7227_v13 = vmax.f32 %v1623_v21, 0.0  ;;  %v1784_v28 = vadd.f32 %v1782_v44, %v1780_v24  ;;  %v1779_v26 = vadd.f32 %v1777_v30, %v1747_v33  ;;  %5016 = vrot.lane.b32.xlu1 %v5015_v62, %s7787_s12 }
 0x803   :  { %4862 = vmatpush3.bf16.msra.mxu1 %v5077_v17  ;;  %v7792_v17 = vld [vmem:[#allocation52_spill] sm:$0xff] }
 0x804   :  { %v1783_v25 = vadd.f32 %v1782_v44, %v1779_v26  ;;  %v5020_v36 = vpack.i.bf16 %v7225_v56, %v7227_v13  ;;  %v7232_v4 = vmax.f32 %v1784_v28, 0.0 }
 0x806   :  { %v7234_v54 = vmax.f32 %v1783_v25, 0.0  ;;  %5021 = vrot.lane.b32.xlu0 %v5020_v36, %s7787_s12 }
 0x808   :  { %v5025_v14 = vpack.i.bf16 %v7232_v4, %v7234_v54 }
 0x80a   :  { %5026 = vrot.lane.b32.xlu1 %v5025_v14, %s7787_s12 }
 0x871   :  { %v5012_v31 = vpop.permute.xlu0 %5011 }
 0x872   :  { %v5014_v47 = vunpack.i.h.bf16 %v5012_v31  ;;  %v5013_v51 = vunpack.i.l.bf16 %v5012_v31 }
 0x874   :  { %v1792_v48 = vsel %vm1003_vm8, %v5014_v47, %v7202_v2  ;;  %v1789_v46 = vsel %vm1003_vm8, %v5013_v51, %v7198_v11  ;;  %v5017_v61 = vpop.permute.xlu1 %5016 }
 0x875   :  { %v5030_v32 = vpack.i.bf16 %v1792_v48, %v1789_v46  ;;  %v5019_v35 = vunpack.i.h.bf16 %v5017_v61  ;;  %v5018_v49 = vunpack.i.l.bf16 %v5017_v61 }
 0x877   :  { %v1798_v18 = vsel %vm1003_vm8, %v5019_v35, %v7209_v59  ;;  %v1795_v9 = vsel %vm1003_vm8, %v5018_v49, %v7214_v42  ;;  %5031 = vrot.lane.b32.xlu0 %v5030_v32, %s7787_s12 }
 0x878   :  { %v5035_v22 = vpack.i.bf16 %v1798_v18, %v1795_v9  ;;  %v5022_v10 = vpop.permute.xlu0 %5021 }
 0x879   :  { %v5024_v12 = vunpack.i.h.bf16 %v5022_v10  ;;  %v5023_v3 = vunpack.i.l.bf16 %v5022_v10 }
 0x87a   :  { %5036 = vrot.lane.b32.xlu1 %v5035_v22, %s7787_s12 }
 0x87b   :  { %v1804_v52 = vsel %vm1003_vm8, %v5024_v12, %v7225_v56  ;;  %v1801_v5 = vsel %vm1003_vm8, %v5023_v3, %v7227_v13  ;;  %v5078_v3 = vld [vmem:[#allocation16] sm:$0xff]  }
 0x87c   :  { %v5040_v23 = vpack.i.bf16 %v1804_v52, %v1801_v5  ;;  %v5027_v1 = vpop.permute.xlu1 %5026  ;;  %4879 = vmatprep.mubr.msk.bf16.mxu0 %vm797_vm7, %v5078_v3  ;;  %v5104_v3 = vld [vmem:[#allocation17 + $0x80] ss:$16 sps:$4 sm:$0xff]  }
 0x87d   :  { %v5029_v63 = vunpack.i.h.bf16 %v5027_v1  ;;  %v5028_v43 = vunpack.i.l.bf16 %v5027_v1 }
 0x87e   :  { %5041 = vrot.lane.b32.xlu0 %v5040_v23, %s7787_s12 }
 0x87f   :  { %v1810_v19 = vsel %vm1003_vm8, %v5029_v63, %v7232_v4  ;;  %v1807_v0 = vsel %vm1003_vm8, %v5028_v43, %v7234_v54 }
 0x880   :  { %v5045_v37 = vpack.i.bf16 %v1810_v19, %v1807_v0 }
 0x882   :  { %5046 = vrot.lane.b32.xlu1 %v5045_v37, %s7787_s12 }
 0x8e9   :  { %v5032_v57 = vpop.permute.xlu0 %5031 }
 0x8ea   :  { %v5034_v60 = vunpack.i.h.bf16 %v5032_v57  ;;  %v5033_v27 = vunpack.i.l.bf16 %v5032_v57 }
 0x8ec   :  { %v1828_v16 = vsel %vm1003_vm8, %v5034_v60, %v7202_v2  ;;  %v1827_v41 = vsel %vm1003_vm8, %v5033_v27, %v7198_v11  ;;  %v5037_v20 = vpop.permute.xlu1 %5036 }
 0x8ed   :  { %v5050_v45 = vpack.i.bf16 %v1828_v16, %v1827_v41  ;;  %v5039_v7 = vunpack.i.h.bf16 %v5037_v20  ;;  %v5038_v38 = vunpack.i.l.bf16 %v5037_v20 }
 0x8ef   :  { %v1830_v58 = vsel %vm1003_vm8, %v5039_v7, %v7209_v59  ;;  %v1829_v15 = vsel %vm1003_vm8, %v5038_v38, %v7214_v42  ;;  %5051 = vrot.lane.b32.xlu0 %v5050_v45, %s7790_s21 }
 0x8f0   :  { %v5055_v40 = vpack.i.bf16 %v1830_v58, %v1829_v15  ;;  %v5042_v6 = vpop.permute.xlu0 %5041 }
 0x8f1   :  { %v5044_v50 = vunpack.i.h.bf16 %v5042_v6  ;;  %v5043_v8 = vunpack.i.l.bf16 %v5042_v6 }
 0x8f2   :  { %5056 = vrot.lane.b32.xlu1 %v5055_v40, %s7790_s21 }
 0x8f3   :  { %v1832_v53 = vsel %vm1003_vm8, %v5044_v50, %v7225_v56  ;;  %v1831_v34 = vsel %vm1003_vm8, %v5043_v8, %v7227_v13 }
 0x8f4   :  { %v5060_v44 = vpack.i.bf16 %v1832_v53, %v1831_v34  ;;  %v5047_v39 = vpop.permute.xlu1 %5046 }
 0x8f5   :  { %v5049_v33 = vunpack.i.h.bf16 %v5047_v39  ;;  %v5048_v29 = vunpack.i.l.bf16 %v5047_v39 }
 0x8f6   :  { %5061 = vrot.lane.b32.xlu0 %v5060_v44, %s7790_s21 }
 0x8f7   :  { %v1834_v21 = vsel %vm1003_vm8, %v5049_v33, %v7232_v4  ;;  %v1833_v24 = vsel %vm1003_vm8, %v5048_v29, %v7234_v54 }
 0x8f8   :  { %v5065_v30 = vpack.i.bf16 %v1834_v21, %v1833_v24 }
 0x8fa   :  { %5066 = vrot.lane.b32.xlu1 %v5065_v30, %s7790_s21 }
 0x961   :  { %v5052_v62 = vpop.permute.xlu0 %5051 }
 0x962   :  { %v5054_v28 = vunpack.i.h.bf16 %v5052_v62  ;;  %v5053_v26 = vunpack.i.l.bf16 %v5052_v62  ;;  %v5079_v62 = vld [vmem:[#allocation16 + $0x8] sm:$0xff]  }
 0x964   :  { %v1868_v25 = vmax.f32 %v7202_v2, %v5054_v28  ;;  %v1867_v36 = vmax.f32 %v7198_v11, %v5053_v26  ;;  %v5057_v14 = vpop.permute.xlu1 %5056  ;;  %v5083_v28 = vld [vmem:[%s7791_s5] ss:$16 sps:$4 sm:$0xff]   ;;  %v5085_v26 = vld [vmem:[%s7791_s5 + $0x4] ss:$16 sps:$4 sm:$0xff]  }
 0x965   :  { %v5059_v31 = vunpack.i.h.bf16 %v5057_v14  ;;  %v5058_v47 = vunpack.i.l.bf16 %v5057_v14  ;;  %v5091_v14 = vld [vmem:[#allocation17 + $0xec] ss:$16 sps:$4 sm:$0xff]  }
 0x966   :  { %v1875_v51 = vpack.c.bf16 %v1868_v25, %v1867_v36  ;;  %v5088_v25 = vld [vmem:[#allocation17 + $0xe4] ss:$16 sps:$4 sm:$0xff]   ;;  %v5657_v36 = vmov 0  }
 0x967   :  { %v1870_v48 = vmax.f32 %v7209_v59, %v5059_v31  ;;  %v1869_v46 = vmax.f32 %v7214_v42, %v5058_v47 }
 0x968   :  { %4863 = vmatprep.mubr.msk.bf16.mxu1 %vm1895_vm14, %v1875_v51  ;;  %v5062_v61 = vpop.permute.xlu0 %5061 }
 0x969   :  { %v1876_v32 = vpack.c.bf16 %v1870_v48, %v1869_v46  ;;  %v5064_v35 = vunpack.i.h.bf16 %v5062_v61  ;;  %v5063_v49 = vunpack.i.l.bf16 %v5062_v61  ;;  %v5086_v46 = vld [vmem:[#allocation17 + $0xe0] ss:$16 sps:$4 sm:$0xff]   ;;  %v5089_v61 = vld [vmem:[#allocation17 + $0xe8] ss:$16 sps:$4 sm:$0xff]  }
 0x96b   :  { %v1872_v18 = vmax.f32 %v7225_v56, %v5064_v35  ;;  %v1871_v2 = vmax.f32 %v7227_v13, %v5063_v49  ;;  %4864 = vmatmul.mubr.msk.bf16.vlgmr.msra.gmra.mxu1 %vm1895_vm14, %v1876_v32  ;;  %v5080_v56 = vld [vmem:[%s7791_s5 + $0x8] ss:$16 sps:$4 sm:$0xff]   ;;  %v5082_v13 = vld [vmem:[%s7791_s5 + $0xc] ss:$16 sps:$4 sm:$0xff]   ;;  %v5097_v49 = vld [vmem:[#allocation17 + $0xcc] ss:$16 sps:$4 sm:$0xff]  }
 0x96c   :  { %v5067_v11 = vpop.permute.xlu1 %5066  ;;  %2170 = vmatprep.subr.bf16.mxu1 %v5082_v13  ;;  %v5094_v35 = vld [vmem:[#allocation17 + $0xc4] ss:$16 sps:$4 sm:$0xff]  }
 0x96d   :  { %v1877_v9 = vpack.c.bf16 %v1872_v18, %v1871_v2  ;;  %v5069_v22 = vunpack.i.h.bf16 %v5067_v11  ;;  %v5068_v10 = vunpack.i.l.bf16 %v5067_v11  ;;  %2171 = vmatpush1.bf16.msra.mxu1 %v5080_v56  ;;  %v5092_v18 = vld [vmem:[#allocation17 + $0xc0] ss:$16 sps:$4 sm:$0xff]   ;;  %v5095_v2 = vld [vmem:[#allocation17 + $0xc8] ss:$16 sps:$4 sm:$0xff]   ;;  %v5100_v11 = vld [vmem:[#allocation17 + $0xa4] ss:$16 sps:$4 sm:$0xff]  }
 0x96e   :  { %2538 = vmatprep.subr.bf16.mxu1 %v5091_v14  ;;  %v5107_v56 = vld [vmem:[#allocation17 + $0x88] ss:$16 sps:$4 sm:$0xff]   ;;  %v5112_v13 = vld [vmem:[#allocation17 + $0x64] ss:$16 sps:$4 sm:$0xff]  }
 0x96f   :  { %v1874_v59 = vmax.f32 %v7232_v4, %v5069_v22  ;;  %v1873_v42 = vmax.f32 %v7234_v54, %v5068_v10  ;;  %4867 = vmatprep.mubr.msk.bf16.mxu1 %vm1895_vm14, %v1877_v9  ;;  %v5103_v9 = vld [vmem:[#allocation17 + $0xac] ss:$16 sps:$4 sm:$0xff]   ;;  %v5098_v22 = vld [vmem:[#allocation17 + $0xa0] ss:$16 sps:$4 sm:$0xff]   ;;  %v5101_v10 = vld [vmem:[#allocation17 + $0xa8] ss:$16 sps:$4 sm:$0xff]  }
 0x971   :  { %v1878_v12 = vpack.c.bf16 %v1874_v59, %v1873_v42  ;;  %v5106_v42 = vld [vmem:[#allocation17 + $0x84] ss:$16 sps:$4 sm:$0xff]  }
 0x973   :  { %4868 = vmatmul.mubr.msk.bf16.gmra.mxu1 %vm1895_vm14, %v1878_v12  ;;  %v5109_v12 = vld [vmem:[#allocation17 + $0x8c] ss:$16 sps:$4 sm:$0xff]  }
 0x974   :  { %2188 = vmatprep.mubr.bf16.mxu1 %v5657_v36 }
 0xa2b   :  { %v4865_v4 = vpop.f32.mrf.mxu1 }
 0xa2c   :  { %v1975_v41 = vrot.slane %v4865_v4, 1 }
 0xa2d   :  { %v1942_v54 = vpop.f32.mrf.mxu1 }
 0xa2e   :  { %v1973_v43 = vrot.slane %v1942_v54, 1 }
 0xa2f   :  { %v4866_v52 = vpop.f32.mrf.mxu1 }
 0xa30   :  { %v1976_v57 = vrot.slane %v4866_v52, 1 }
 0xa31   :  { %v1945_v5 = vpop.f32.mrf.mxu1 }
 0xa32   :  { %v1974_v7 = vrot.slane %v1945_v5, 1  ;;  %v1985_v8 = vsel %vm384_vm6, %v1975_v41, %v1976_v57 }
 0xa33   :  { %v4869_v23 = vpop.f32.mrf.mxu1  ;;  %v1991_v33 = vmax.f32 %v4865_v4, %v1985_v8  ;;  %v5115_v4 = vld [vmem:[#allocation17 + $0x6c] ss:$16 sps:$4 sm:$0xff]  }
 0xa34   :  { %v1979_v19 = vrot.slane %v4869_v23, 1  ;;  %v1986_v44 = vsel %vm384_vm6, %v1974_v7, %v1975_v41  ;;  %v1987_v39 = vsel %vm384_vm6, %v1973_v43, %v1974_v7 }
 0xa35   :  { %v1958_v1 = vpop.f32.mrf.mxu1  ;;  %v1989_v29 = vmax.f32 %v1942_v54, %v1987_v39  ;;  %v1990_v21 = vmax.f32 %v1945_v5, %v1986_v44  ;;  %v5110_v54 = vld [vmem:[#allocation17 + $0x60] ss:$16 sps:$4 sm:$0xff]   ;;  %v5118_v5 = vld [vmem:[#allocation17 + $0x44] ss:$16 sps:$4 sm:$0xff]  }
 0xa36   :  { %v1977_v0 = vrot.slane %v1958_v1, 1 }
 0xa37   :  { %v4870_v63 = vpop.f32.mrf.mxu1  ;;  %v2001_v30 = vpack.c.bf16 %v1990_v21, %v1989_v29 }
 0xa38   :  { %v1980_v37 = vrot.slane %v4870_v63, 1  ;;  %v1984_v38 = vsel %vm384_vm6, %v1976_v57, %v1977_v0  ;;  %v5133_v57 = vld [vmem:[#allocation17 + $0xc] ss:$16 sps:$4 sm:$0xff]  }
 0xa39   :  { %v1961_v55 = vpop.f32.mrf.mxu1  ;;  %v1992_v34 = vmax.f32 %v4866_v52, %v1984_v38  ;;  %v5113_v52 = vld [vmem:[#allocation17 + $0x68] ss:$16 sps:$4 sm:$0xff]  }
 0xa3a   :  { %v1988_v60 = vsel %vm384_vm6, %v1980_v37, %v1973_v43  ;;  %v1978_v27 = vrot.slane %v1961_v55, 1  ;;  %v1981_v16 = vsel %vm384_vm6, %v1979_v19, %v1980_v37  ;;  %v5124_v43 = vld [vmem:[#allocation17 + $0x24] ss:$16 sps:$4 sm:$0xff]   ;;  %v5125_v37 = vld [vmem:[#allocation17 + $0x28] ss:$16 sps:$4 sm:$0xff]  }
 0xa3b   :  { %v1996_v20 = vmax.f32 %v4870_v63, %v1988_v60  ;;  %v1995_v45 = vmax.f32 %v4869_v23, %v1981_v16  ;;  %v2002_v24 = vpack.c.bf16 %v1992_v34, %v1991_v33  ;;  %v5121_v23 = vld [vmem:[#allocation17 + $0x4c] ss:$16 sps:$4 sm:$0xff]   ;;  %v5119_v63 = vld [vmem:[#allocation17 + $0x48] ss:$16 sps:$4 sm:$0xff]   ;;  %v5128_v60 = vld [vmem:[#allocation17] ss:$16 sps:$4 sm:$0xff]  }
 0xa3c   :  { %v1982_v58 = vsel %vm384_vm6, %v1978_v27, %v1979_v19  ;;  %v1983_v15 = vsel %vm384_vm6, %v1977_v0, %v1978_v27  ;;  %v5127_v19 = vld [vmem:[#allocation17 + $0x2c] ss:$16 sps:$4 sm:$0xff]   ;;  %v5122_v0 = vld [vmem:[#allocation17 + $0x20] ss:$16 sps:$4 sm:$0xff]   ;;  %v5131_v27 = vld [vmem:[#allocation17 + $0x8] ss:$16 sps:$4 sm:$0xff]  }
 0xa3d   :  { %v1993_v40 = vmax.f32 %v1958_v1, %v1983_v15  ;;  %v1994_v6 = vmax.f32 %v1961_v55, %v1982_v58  ;;  %v2004_v50 = vpack.c.bf16 %v1996_v20, %v1995_v45  ;;  %v5116_v1 = vld [vmem:[#allocation17 + $0x40] ss:$16 sps:$4 sm:$0xff]   ;;  %v5130_v55 = vld [vmem:[#allocation17 + $0x4] ss:$16 sps:$4 sm:$0xff]   ;;  %v2281_v16 = vld [vmem:[#allocation13] sm:$0x1] }
 0xa3e   :  { %v2282_v41 = vpack.c.bf16 %v2281_v16, %v2281_v16 }
 0xa3f   :  { %v2003_v53 = vpack.c.bf16 %v1994_v6, %v1993_v40  ;;  %4871 = vmatprep.subr.bf16.mxu0 %v2004_v50 }
 0xa40   :  { %4872 = vmatpush3.bf16.msra.mxu0 %v2004_v50 }
 0xa41   :  { %4873 = vmatprep.subr.bf16.mxu0 %v2003_v53 }
 0xa44   :  { %4874 = vmatpush3.bf16.msra.mxu0 %v2003_v53 }
 0xa45   :  { %4875 = vmatprep.subr.bf16.mxu0 %v2002_v24 }
 0xa48   :  { %4876 = vmatpush3.bf16.msra.mxu0 %v2002_v24 }
 0xa49   :  { %4877 = vmatprep.subr.bf16.mxu0 %v2001_v30 }
 0xa4c   :  { %4878 = vmatpush3.bf16.msra.mxu0 %v2001_v30 }
 0xa4d   :  { %2117 = vmatprep.subr.bf16.mxu0 %v5085_v26 }
 0xa4f   :  { %4880 = vmatmul.mubr.msk.bf16.vlgmr.msra.gmra.mxu0 %vm797_vm7, %v5079_v62 }
 0xa50   :  { %2118 = vmatpush1.bf16.msra.mxu0 %v5083_v28  ;;  %2135 = vmatprep.mubr.bf16.mxu0 %v5657_v36 }
 0xa51   :  { %2497 = vmatprep.subr.bf16.mxu0 %v5088_v25 }
 0xb0f   :  { %v4881_v31 = vpop.f32.mrf.mxu0 }
 0xb11   :  { %v2055_v47 = vpop.f32.mrf.mxu0 }
 0xb13   :  { %v4882_v51 = vpop.f32.mrf.mxu0 }
 0xb14   :  { %v2071_v59 = vpack.c.bf16 %v4882_v51, %v4881_v31 }
 0xb15   :  { %v2058_v48 = vpop.f32.mrf.mxu0 }
 0xb16   :  { %v2070_v32 = vpack.c.bf16 %v2058_v48, %v2055_v47 }
 0xb18   :  { %4437 = vmatmul.mubr.msk.bf16.vlgmr.msra.gmra.mxu0 %vm2096_vm15, %v2070_v32  ;;  %4439 = vmatmul.mubr.msk.bf16.vlgmr.msra.gmra.mxu1 %vm2096_vm15, %v2070_v32 }
 0xb19   :  { %2498 = vmatpush1.bf16.msra.mxu0 %v5086_v46  ;;  %2539 = vmatpush1.bf16.msra.mxu1 %v5089_v61 }
 0xb1a   :  { %2499 = vmatprep.subr.bf16.mxu0 %v5094_v35  ;;  %2540 = vmatprep.subr.bf16.mxu1 %v5097_v49 }
 0xb1b   :  { %2145 = vmatprep.mubr.bf16.mxu0 %v5657_v36  ;;  %2198 = vmatprep.mubr.bf16.mxu1 %v5657_v36 }
 0xb1d   :  { %2500 = vmatpush1.bf16.msra.mxu0 %v5092_v18  ;;  %2541 = vmatpush1.bf16.msra.mxu1 %v5095_v2 }
 0xb1e   :  { %2501 = vmatprep.subr.bf16.mxu0 %v5100_v11  ;;  %2542 = vmatprep.subr.bf16.mxu1 %v5103_v9 }
 0xb20   :  { %4438 = vmatmul.mubr.msk.bf16.gmra.mxu0 %vm2096_vm15, %v2071_v59  ;;  %4440 = vmatmul.mubr.msk.bf16.gmra.mxu1 %vm2096_vm15, %v2071_v59 }
 0xb21   :  { %2502 = vmatpush1.bf16.msra.mxu0 %v5098_v22  ;;  %2543 = vmatpush1.bf16.msra.mxu1 %v5101_v10 }
 0xb22   :  { %2503 = vmatprep.subr.bf16.mxu0 %v5106_v42  ;;  %2544 = vmatprep.subr.bf16.mxu1 %v5109_v12 }
 0xb23   :  { %2529 = vmatprep.mubr.bf16.mxu0 %v5657_v36  ;;  %2570 = vmatprep.mubr.bf16.mxu1 %v5657_v36 }
 0xb25   :  { %2504 = vmatpush1.bf16.msra.mxu0 %v5104_v3  ;;  %2545 = vmatpush1.bf16.msra.mxu1 %v5107_v56 }
 0xb26   :  { %2505 = vmatprep.subr.bf16.mxu0 %v5112_v13  ;;  %2546 = vmatprep.subr.bf16.mxu1 %v5115_v4 }
 0xb29   :  { %2506 = vmatpush1.bf16.msra.mxu0 %v5110_v54  ;;  %2547 = vmatpush1.bf16.msra.mxu1 %v5113_v52 }
 0xb2a   :  { %2507 = vmatprep.subr.bf16.mxu0 %v5118_v5  ;;  %2548 = vmatprep.subr.bf16.mxu1 %v5121_v23 }
 0xb2d   :  { %2508 = vmatpush1.bf16.msra.mxu0 %v5116_v1  ;;  %2549 = vmatpush1.bf16.msra.mxu1 %v5119_v63 }
 0xb2e   :  { %2509 = vmatprep.subr.bf16.mxu0 %v5124_v43  ;;  %2550 = vmatprep.subr.bf16.mxu1 %v5127_v19 }
 0xb31   :  { %2510 = vmatpush1.bf16.msra.mxu0 %v5122_v0  ;;  %2551 = vmatpush1.bf16.msra.mxu1 %v5125_v37 }
 0xb32   :  { %2511 = vmatprep.subr.bf16.mxu0 %v5130_v55  ;;  %2552 = vmatprep.subr.bf16.mxu1 %v5133_v57 }
 0xb35   :  { %2512 = vmatpush1.bf16.msra.mxu0 %v5128_v60  ;;  %2553 = vmatpush1.bf16.msra.mxu1 %v5131_v27 }
 0xb38   :  { %2530 = vmatmul.mubr.bf16.vlgmr.msra.gmra.mxu0 %v2282_v41  ;;  %2571 = vmatmul.mubr.bf16.vlgmr.msra.gmra.mxu1 %v2282_v41 }
 0xb39   :  { %5477 = shalt.err (!%p5474_p11)  }
 0xb3a   :  { %s7795_s7 = sld [smem:[#allocation85_spill]]  ;;  %s5659_s10 = smov [#allocation2 + $0x100]  }
 0xb3b   :  { %s221_s30 = sshll.u32 %s5659_s10, 4  ;;  %s7363_s30 = int_to_ptr.vmem [resolvable:$true] %s221_s30 }
 0xb3c   :  { %s5488_s11 = scalar_lea.vmem %s7363_s30, 4096  ;;  %p5493_p13 = scmp.lt.s32.totalorder %s7363_s30, %s7332_s22 }
 0xb3d   :  { %p7367_p12 = scmp.ne.s32.totalorder %s7363_s30, %s5488_s11  ;;  %p5494_p0 = scmp.lt.s32.totalorder %s5470_s3, %s5488_s11 }
 0xb3f   :  { %p7373_p1 = por %p5494_p0, %p5493_p13 }
 0xb40   :  { %210 = dma.hbm_to_vmem [thread:$0]  %s7795_s7, 4096, %s7332_s22, [#allocation3] }
 0xb41   :  { %s211_s29 = scalar_lea.hbm %s7795_s7, 4096  ;;  %p5496_p2 = pnand %p7373_p1, %p7367_p12 }
 0xb43   :  { %5499 = shalt.err (!%p5496_p2)  }
 0xb44   :  { %224 = dma.hbm_to_vmem [thread:$0]  %s211_s29, 4096, %s7363_s30, [#allocation3 + $0x1] }
 0xb45   :  { %s7798_s18 = sld [smem:[#allocation84_spill]] }
 0xb4b   :  { %v2213_v15 = vld [vmem:[%s7798_s18 + $0x20] sm:$0xff]  ;;  %v2215_v6 = vld [vmem:[%s7798_s18 + $0x30] sm:$0xff]  ;;  %v2214_v8 = vld [vmem:[%s7798_s18 + $0x28] sm:$0xff] }
 0xb4c   :  { %v2209_v50 = vld [vmem:[%s7798_s18] sm:$0xff]  ;;  %v2216_v53 = vld [vmem:[%s7798_s18 + $0x38] sm:$0xff]  ;;  %v2211_v34 = vld [vmem:[%s7798_s18 + $0x10] sm:$0xff] }
 0xb4d   :  { %v2217_v33 = vld [vmem:[%s7798_s18 + $0x40] sm:$0xff]  ;;  %v2219_v29 = vld [vmem:[%s7798_s18 + $0x50] sm:$0xff]  ;;  %v2210_v21 = vld [vmem:[%s7798_s18 + $0x8] sm:$0xff] }
 0xb4e   :  { %v2212_v24 = vld [vmem:[%s7798_s18 + $0x18] sm:$0xff]  ;;  %v2218_v14 = vld [vmem:[%s7798_s18 + $0x48] sm:$0xff]  ;;  %v2221_v18 = vld [vmem:[%s7798_s18 + $0x60] sm:$0xff] }
 0xb4f   :  { %v2220_v31 = vld [vmem:[%s7798_s18 + $0x58] sm:$0xff]  ;;  %v2223_v2 = vld [vmem:[%s7798_s18 + $0x70] sm:$0xff]  ;;  %v2222_v56 = vld [vmem:[%s7798_s18 + $0x68] sm:$0xff] }
 0xb50   :  { %v2224_v13 = vld [vmem:[%s7798_s18 + $0x78] sm:$0xff] }
 0xbd8   :  { %v2137_v20 = vpop.f32.mrf.mxu0  ;;  %v2190_v45 = vpop.f32.mrf.mxu1 }
 0xbd9   :  { %v2225_v47 = vmul.f32 %v2209_v50, %v2137_v20  ;;  %v2227_v51 = vmul.f32 %v2211_v34, %v2190_v45  ;;  %v2479_v34 = vsub.s32 0, %v7792_v17 }
 0xbda   :  { %v2139_v7 = vpop.f32.mrf.mxu0  ;;  %v2192_v38 = vpop.f32.mrf.mxu1 }
 0xbdb   :  { %v2226_v61 = vmul.f32 %v2210_v21, %v2139_v7  ;;  %v2228_v32 = vmul.f32 %v2212_v24, %v2192_v38  ;;  %v2315_v24 = vld [vmem:[#allocation19] sm:$0xf] }
 0xbdc   :  { %v2141_v58 = vpop.f32.mrf.mxu0  ;;  %v2194_v40 = vpop.f32.mrf.mxu1 }
 0xbdd   :  { %v2229_v30 = vmul.f32 %v2213_v15, %v2141_v58  ;;  %v2231_v62 = vmul.f32 %v2215_v6, %v2194_v40 }
 0xbde   :  { %v2143_v44 = vpop.f32.mrf.mxu0  ;;  %v2196_v39 = vpop.f32.mrf.mxu1 }
 0xbdf   :  { %v2230_v28 = vmul.f32 %v2214_v8, %v2143_v44  ;;  %v2232_v26 = vmul.f32 %v2216_v53, %v2196_v39  ;;  %v2241_v11 = vadd.f32 %v2229_v30, %v2225_v47  ;;  %v2259_v9 = vadd.f32 %v2231_v62, %v2227_v51 }
 0xbe0   :  { %v2147_v25 = vpop.f32.mrf.mxu0  ;;  %v2200_v36 = vpop.f32.mrf.mxu1  ;;  %v2487_v44 = vsub.s32 2, %v7792_v17  ;;  %v2483_v30 = vsub.s32 1, %v7792_v17  ;;  %v2491_v62 = vsub.s32 3, %v7792_v17 }
 0xbe1   :  { %v2233_v48 = vmul.f32 %v2217_v33, %v2147_v25  ;;  %v2235_v46 = vmul.f32 %v2219_v29, %v2200_v36  ;;  %v2250_v59 = vadd.f32 %v2230_v28, %v2226_v61  ;;  %v2268_v42 = vadd.f32 %v2232_v26, %v2228_v32 }
 0xbe2   :  { %v2149_v35 = vpop.f32.mrf.mxu0  ;;  %v2202_v49 = vpop.f32.mrf.mxu1 }
 0xbe3   :  { %v2234_v22 = vmul.f32 %v2218_v14, %v2149_v35  ;;  %v2236_v10 = vmul.f32 %v2220_v31, %v2202_v49  ;;  %v2242_v4 = vadd.f32 %v2241_v11, %v2233_v48  ;;  %v2260_v54 = vadd.f32 %v2259_v9, %v2235_v46 }
 0xbe4   :  { %v2151_v12 = vpop.f32.mrf.mxu0  ;;  %v2204_v3 = vpop.f32.mrf.mxu1  ;;  %v2480_v14 = vrot.slane %v2315_v24, %v2479_v34  ;;  %v2488_v31 = vrot.slane %v2315_v24, %v2487_v44  ;;  %v2484_v35 = vrot.slane %v2315_v24, %v2483_v30  ;;  %v2492_v49 = vrot.slane %v2315_v24, %v2491_v62 }
 0xbe5   :  { %v2237_v52 = vmul.f32 %v2221_v18, %v2151_v12  ;;  %v2239_v5 = vmul.f32 %v2223_v2, %v2204_v3  ;;  %v2251_v23 = vadd.f32 %v2250_v59, %v2234_v22  ;;  %v2269_v1 = vadd.f32 %v2268_v42, %v2236_v10 }
 0xbe6   :  { %v2153_v63 = vpop.f32.mrf.mxu0  ;;  %v2206_v43 = vpop.f32.mrf.mxu1 }
 0xbe7   :  { %v2243_v19 = vadd.f32 %v2242_v4, %v2237_v52  ;;  %v2261_v0 = vadd.f32 %v2260_v54, %v2239_v5  ;;  %v2238_v37 = vmul.f32 %v2222_v56, %v2153_v63  ;;  %v2240_v55 = vmul.f32 %v2224_v13, %v2206_v43 }
 0xbe9   :  { %v2244_v57 = vrot.slane %v2243_v19, 4  ;;  %v2262_v60 = vrot.slane %v2261_v0, 4  ;;  %v2252_v27 = vadd.f32 %v2251_v23, %v2238_v37  ;;  %v2270_v16 = vadd.f32 %v2269_v1, %v2240_v55 }
 0xbeb   :  { %v2245_v41 = vadd.f32 %v2244_v57, %v2243_v19  ;;  %v2263_v20 = vadd.f32 %v2262_v60, %v2261_v0  ;;  %v2253_v45 = vrot.slane %v2252_v27, 4  ;;  %v2271_v7 = vrot.slane %v2270_v16, 4 }
 0xbed   :  { %v2246_v38 = vrot.slane %v2245_v41, 2  ;;  %v2264_v58 = vrot.slane %v2263_v20, 2  ;;  %v2254_v15 = vadd.f32 %v2253_v45, %v2252_v27  ;;  %v2272_v40 = vadd.f32 %v2271_v7, %v2270_v16 }
 0xbef   :  { %v2247_v6 = vadd.f32 %v2246_v38, %v2245_v41  ;;  %v2265_v50 = vadd.f32 %v2264_v58, %v2263_v20  ;;  %v2255_v8 = vrot.slane %v2254_v15, 2  ;;  %v2273_v53 = vrot.slane %v2272_v40, 2 }
 0xbf1   :  { %v2248_v39 = vrot.slane %v2247_v6, 1  ;;  %v2266_v33 = vrot.slane %v2265_v50, 1  ;;  %v2256_v29 = vadd.f32 %v2255_v8, %v2254_v15  ;;  %v2274_v21 = vadd.f32 %v2273_v53, %v2272_v40 }
 0xbf3   :  { %v2249_v28 = vadd.f32 %v2248_v39, %v2247_v6  ;;  %v2267_v26 = vadd.f32 %v2266_v33, %v2265_v50  ;;  %v2257_v25 = vrot.slane %v2256_v29, 1  ;;  %v2275_v36 = vrot.slane %v2274_v21, 1 }
 0xbf5   :  { %v7439_v47 = vpack.c.bf16 %v2249_v28, %v2249_v28  ;;  %v7441_v51 = vpack.c.bf16 %v2267_v26, %v2267_v26  ;;  %v2258_v48 = vadd.f32 %v2257_v25, %v2256_v29  ;;  %v2276_v46 = vadd.f32 %v2275_v36, %v2274_v21 }
 0xbf7   :  { %v7443_v61 = vpack.c.bf16 %v2258_v48, %v2258_v48  ;;  %v7445_v32 = vpack.c.bf16 %v2276_v46, %v2276_v46 }
 0xbf8   :  { %v2531_v18 = vpop.f32.mrf.mxu0  ;;  %v2572_v17 = vpop.f32.mrf.mxu1 }
 0xbf9   :  { %v7447_v2 = vadd.f32 %v2531_v18, %v2480_v14  ;;  %v7449_v11 = vadd.f32 %v2572_v17, %v2488_v31 }
 0xbfa   :  { %v2533_v9 = vpop.f32.mrf.mxu0  ;;  %v2574_v22 = vpop.f32.mrf.mxu1 }
 0xbfb   :  { %v7451_v10 = vadd.f32 %v2533_v9, %v2484_v35  ;;  %v7453_v59 = vadd.f32 %v2574_v22, %v2492_v49 }
 0xbfc   :  { %v2535_v42 = vpop.f32.mrf.mxu0  ;;  %v2576_v12 = vpop.f32.mrf.mxu1 }
 0xbfe   :  { %v2536_v3 = vpop.f32.mrf.mxu0  ;;  %v2577_v56 = vpop.f32.mrf.mxu1 }
 0xbff   :  { %5621 = dma.done.wait [#allocation3], 4096 }
 0xc00   :  { %5622 = vsyncadd [#allocation3], 4294963200  ;;  %2871 = vmatprep.mubr.bf16.mxu0 %v7443_v61  ;;  %2911 = vmatprep.mubr.bf16.mxu1 %v7445_v32  ;;  %v5134_v13 = vld [vmem:[#allocation2 + $0x78] sm:$0xff]   ;;  %v5138_v5 = vld [vmem:[#allocation2 + $0x70] sm:$0xff]   ;;  %s2919_s8 = scalar_lea.hbm %s7795_s7, 8192 }
 0xc01   :  { %v5135_v4 = vld [vmem:[#allocation2 + $0xf8] sm:$0xff]   ;;  %4639 = vmatprep.subr.bf16.mxu0 %v5134_v13  ;;  %v5139_v23 = vld [vmem:[#allocation2 + $0xf0] sm:$0xff]   ;;  %v5142_v43 = vld [vmem:[#allocation2 + $0x68] sm:$0xff]  }
 0xc02   :  { %v5136_v54 = vld [vmem:[#allocation2 + $0x38] sm:$0xff]   ;;  %4661 = vmatprep.subr.bf16.mxu1 %v5135_v4  ;;  %v5140_v1 = vld [vmem:[#allocation2 + $0x30] sm:$0xff]   ;;  %v5143_v19 = vld [vmem:[#allocation2 + $0xe8] sm:$0xff]  }
 0xc03   :  { %v5137_v52 = vld [vmem:[#allocation2 + $0xb8] sm:$0xff]   ;;  %4640 = vmatpush3.bf16.msra.mxu0 %v5136_v54  ;;  %v5141_v63 = vld [vmem:[#allocation2 + $0xb0] sm:$0xff]   ;;  %v5144_v0 = vld [vmem:[#allocation2 + $0x28] sm:$0xff]  }
 0xc04   :  { %4662 = vmatpush3.bf16.msra.mxu1 %v5137_v52  ;;  %4641 = vmatprep.subr.bf16.mxu0 %v5138_v5  ;;  %v5145_v37 = vld [vmem:[#allocation2 + $0xa8] sm:$0xff]   ;;  %v5146_v55 = vld [vmem:[#allocation2 + $0x60] sm:$0xff]   ;;  %v5150_v16 = vld [vmem:[#allocation2 + $0x58] sm:$0xff]  }
 0xc05   :  { %4663 = vmatprep.subr.bf16.mxu1 %v5139_v23  ;;  %v5147_v57 = vld [vmem:[#allocation2 + $0xe0] sm:$0xff]   ;;  %v5151_v41 = vld [vmem:[#allocation2 + $0xd8] sm:$0xff]   ;;  %v5154_v7 = vld [vmem:[#allocation2 + $0x50] sm:$0xff]  }
 0xc06   :  { %v5148_v60 = vld [vmem:[#allocation2 + $0x20] sm:$0xff]   ;;  %v5152_v20 = vld [vmem:[#allocation2 + $0x18] sm:$0xff]   ;;  %v5155_v38 = vld [vmem:[#allocation2 + $0xd0] sm:$0xff]  }
 0xc07   :  { %4642 = vmatpush3.bf16.msra.mxu0 %v5140_v1  ;;  %v5149_v27 = vld [vmem:[#allocation2 + $0xa0] sm:$0xff]   ;;  %v5153_v45 = vld [vmem:[#allocation2 + $0x98] sm:$0xff]   ;;  %v5156_v58 = vld [vmem:[#allocation2 + $0x10] sm:$0xff]  }
 0xc08   :  { %4664 = vmatpush3.bf16.msra.mxu1 %v5141_v63  ;;  %4643 = vmatprep.subr.bf16.mxu0 %v5142_v43  ;;  %v5157_v15 = vld [vmem:[#allocation2 + $0x90] sm:$0xff]   ;;  %v5158_v40 = vld [vmem:[#allocation2 + $0x48] sm:$0xff]   ;;  %v5162_v53 = vld [vmem:[#allocation2 + $0x40] sm:$0xff]  }
 0xc09   :  { %4665 = vmatprep.subr.bf16.mxu1 %v5143_v19  ;;  %v5159_v6 = vld [vmem:[#allocation2 + $0xc8] sm:$0xff]   ;;  %v5163_v34 = vld [vmem:[#allocation2 + $0xc0] sm:$0xff]  }
 0xc0a   :  { %v5160_v50 = vld [vmem:[#allocation2 + $0x8] sm:$0xff]   ;;  %v5164_v44 = vld [vmem:[#allocation2] sm:$0xff]  }
 0xc0b   :  { %4644 = vmatpush3.bf16.msra.mxu0 %v5144_v0  ;;  %v5161_v8 = vld [vmem:[#allocation2 + $0x88] sm:$0xff]   ;;  %v5165_v39 = vld [vmem:[#allocation2 + $0x80] sm:$0xff]  }
 0xc0c   :  { %4666 = vmatpush3.bf16.msra.mxu1 %v5145_v37  ;;  %4645 = vmatprep.subr.bf16.mxu0 %v5146_v55 }
 0xc0d   :  { %4667 = vmatprep.subr.bf16.mxu1 %v5147_v57 }
 0xc0f   :  { %4646 = vmatpush3.bf16.msra.mxu0 %v5148_v60 }
 0xc10   :  { %4668 = vmatpush3.bf16.msra.mxu1 %v5149_v27  ;;  %4647 = vmatprep.subr.bf16.mxu0 %v5150_v16 }
 0xc11   :  { %4669 = vmatprep.subr.bf16.mxu1 %v5151_v41 }
 0xc13   :  { %4648 = vmatpush3.bf16.msra.mxu0 %v5152_v20 }
 0xc14   :  { %4670 = vmatpush3.bf16.msra.mxu1 %v5153_v45  ;;  %4649 = vmatprep.subr.bf16.mxu0 %v5154_v7 }
 0xc15   :  { %4671 = vmatprep.subr.bf16.mxu1 %v5155_v38 }
 0xc17   :  { %4650 = vmatpush3.bf16.msra.mxu0 %v5156_v58 }
 0xc18   :  { %4672 = vmatpush3.bf16.msra.mxu1 %v5157_v15  ;;  %4651 = vmatprep.subr.bf16.mxu0 %v5158_v40 }
 0xc19   :  { %4673 = vmatprep.subr.bf16.mxu1 %v5159_v6 }
 0xc1b   :  { %4652 = vmatpush3.bf16.msra.mxu0 %v5160_v50 }
 0xc1c   :  { %4674 = vmatpush3.bf16.msra.mxu1 %v5161_v8  ;;  %4653 = vmatprep.subr.bf16.mxu0 %v5162_v53 }
 0xc1d   :  { %4675 = vmatprep.subr.bf16.mxu1 %v5163_v34 }
 0xc1f   :  { %4654 = vmatpush3.bf16.msra.mxu0 %v5164_v44 }
 0xc20   :  { %4676 = vmatpush3.bf16.msra.mxu1 %v5165_v39 }
 0xc22   :  { %2872 = vmatmul.mubr.bf16.vlgmr.msra.gmra.mxu0 %v7439_v47 }
 0xc23   :  { %2912 = vmatmul.mubr.bf16.vlgmr.msra.gmra.mxu1 %v7441_v51 }
 0xc24   :  { %5522 = shalt.err (!%p5474_p11)  }
 0xc25   :  { %2930 = dma.hbm_to_vmem [thread:$0]  %s2919_s8, 4096, %s7332_s22, [#allocation3] }
 0xce2   :  { %v4655_v33 = vpop.f32.mrf.mxu0 }
 0xce3   :  { %v4677_v29 = vpop.f32.mrf.mxu1 }
 0xce4   :  { %v4656_v21 = vpop.f32.mrf.mxu0 }
 0xce5   :  { %v4657_v24 = vadd.f32 %v4656_v21, %v4655_v33  ;;  %v4678_v30 = vpop.f32.mrf.mxu1 }
 0xce6   :  { %v4679_v62 = vadd.f32 %v4678_v30, %v4677_v29  ;;  %v4658_v28 = vpop.f32.mrf.mxu0 }
 0xce7   :  { %v4680_v26 = vpop.f32.mrf.mxu1 }
 0xce8   :  { %v7468_v25 = vadd.f32 %v4679_v62, %v4657_v24  ;;  %v4659_v36 = vpop.f32.mrf.mxu0 }
 0xce9   :  { %v4681_v14 = vpop.f32.mrf.mxu1 }
 0xcea   :  { %5623 = dma.done.wait [#allocation3 + $0x1], 4096 }
 0xceb   :  { %5624 = vsyncadd [#allocation3 + $0x1], 4294963200  ;;  %3221 = vmatprep.mubr.bf16.mxu0 %v7443_v61  ;;  %3261 = vmatprep.mubr.bf16.mxu1 %v7445_v32  ;;  %v5166_v31 = vld [vmem:[#allocation2 + $0x178] sm:$0xff]   ;;  %v5170_v49 = vld [vmem:[#allocation2 + $0x170] sm:$0xff]   ;;  %s3269_s14 = scalar_lea.hbm %s7795_s7, 12288 }
 0xcec   :  { %v5167_v48 = vld [vmem:[#allocation2 + $0x1f8] sm:$0xff]   ;;  %4683 = vmatprep.subr.bf16.mxu0 %v5166_v31  ;;  %v5171_v18 = vld [vmem:[#allocation2 + $0x1f0] sm:$0xff]   ;;  %v5174_v22 = vld [vmem:[#allocation2 + $0x168] sm:$0xff]  }
 0xced   :  { %v5168_v46 = vld [vmem:[#allocation2 + $0x138] sm:$0xff]   ;;  %4705 = vmatprep.subr.bf16.mxu1 %v5167_v48  ;;  %v5172_v17 = vld [vmem:[#allocation2 + $0x130] sm:$0xff]   ;;  %v5175_v42 = vld [vmem:[#allocation2 + $0x1e8] sm:$0xff]  }
 0xcee   :  { %v5169_v35 = vld [vmem:[#allocation2 + $0x1b8] sm:$0xff]   ;;  %4684 = vmatpush3.bf16.msra.mxu0 %v5168_v46  ;;  %v5173_v9 = vld [vmem:[#allocation2 + $0x1b0] sm:$0xff]   ;;  %v5176_v12 = vld [vmem:[#allocation2 + $0x128] sm:$0xff]  }
 0xcef   :  { %4706 = vmatpush3.bf16.msra.mxu1 %v5169_v35  ;;  %4685 = vmatprep.subr.bf16.mxu0 %v5170_v49  ;;  %v5177_v3 = vld [vmem:[#allocation2 + $0x1a8] sm:$0xff]   ;;  %v5178_v56 = vld [vmem:[#allocation2 + $0x160] sm:$0xff]   ;;  %v5182_v52 = vld [vmem:[#allocation2 + $0x158] sm:$0xff]  }
 0xcf0   :  { %4707 = vmatprep.subr.bf16.mxu1 %v5171_v18  ;;  %v5179_v13 = vld [vmem:[#allocation2 + $0x1e0] sm:$0xff]   ;;  %v5183_v5 = vld [vmem:[#allocation2 + $0x1d8] sm:$0xff]   ;;  %v5186_v63 = vld [vmem:[#allocation2 + $0x150] sm:$0xff]  }
 0xcf1   :  { %v5180_v4 = vld [vmem:[#allocation2 + $0x120] sm:$0xff]   ;;  %v5184_v23 = vld [vmem:[#allocation2 + $0x118] sm:$0xff]   ;;  %v5187_v43 = vld [vmem:[#allocation2 + $0x1d0] sm:$0xff]  }
 0xcf2   :  { %4686 = vmatpush3.bf16.msra.mxu0 %v5172_v17  ;;  %v5181_v54 = vld [vmem:[#allocation2 + $0x1a0] sm:$0xff]   ;;  %v5185_v1 = vld [vmem:[#allocation2 + $0x198] sm:$0xff]   ;;  %v5188_v19 = vld [vmem:[#allocation2 + $0x110] sm:$0xff]  }
 0xcf3   :  { %4708 = vmatpush3.bf16.msra.mxu1 %v5173_v9  ;;  %4687 = vmatprep.subr.bf16.mxu0 %v5174_v22  ;;  %v5189_v0 = vld [vmem:[#allocation2 + $0x190] sm:$0xff]   ;;  %v5190_v37 = vld [vmem:[#allocation2 + $0x148] sm:$0xff]   ;;  %v5194_v27 = vld [vmem:[#allocation2 + $0x140] sm:$0xff]  }
 0xcf4   :  { %4709 = vmatprep.subr.bf16.mxu1 %v5175_v42  ;;  %v5191_v55 = vld [vmem:[#allocation2 + $0x1c8] sm:$0xff]   ;;  %v5195_v16 = vld [vmem:[#allocation2 + $0x1c0] sm:$0xff]  }
 0xcf5   :  { %v5192_v57 = vld [vmem:[#allocation2 + $0x108] sm:$0xff]   ;;  %v5196_v41 = vld [vmem:[#allocation2 + $0x100] sm:$0xff]  }
 0xcf6   :  { %4688 = vmatpush3.bf16.msra.mxu0 %v5176_v12  ;;  %v5193_v60 = vld [vmem:[#allocation2 + $0x188] sm:$0xff]   ;;  %v5197_v20 = vld [vmem:[#allocation2 + $0x180] sm:$0xff]  }
 0xcf7   :  { %4710 = vmatpush3.bf16.msra.mxu1 %v5177_v3  ;;  %4689 = vmatprep.subr.bf16.mxu0 %v5178_v56 }
 0xcf8   :  { %4711 = vmatprep.subr.bf16.mxu1 %v5179_v13 }
 0xcfa   :  { %4690 = vmatpush3.bf16.msra.mxu0 %v5180_v4 }
 0xcfb   :  { %4712 = vmatpush3.bf16.msra.mxu1 %v5181_v54  ;;  %4691 = vmatprep.subr.bf16.mxu0 %v5182_v52 }
 0xcfc   :  { %4713 = vmatprep.subr.bf16.mxu1 %v5183_v5 }
 0xcfe   :  { %4692 = vmatpush3.bf16.msra.mxu0 %v5184_v23 }
 0xcff   :  { %4714 = vmatpush3.bf16.msra.mxu1 %v5185_v1  ;;  %4693 = vmatprep.subr.bf16.mxu0 %v5186_v63 }
 0xd00   :  { %4715 = vmatprep.subr.bf16.mxu1 %v5187_v43 }
 0xd02   :  { %4694 = vmatpush3.bf16.msra.mxu0 %v5188_v19 }
 0xd03   :  { %4716 = vmatpush3.bf16.msra.mxu1 %v5189_v0  ;;  %4695 = vmatprep.subr.bf16.mxu0 %v5190_v37 }
 0xd04   :  { %4717 = vmatprep.subr.bf16.mxu1 %v5191_v55 }
 0xd06   :  { %4696 = vmatpush3.bf16.msra.mxu0 %v5192_v57 }
 0xd07   :  { %4718 = vmatpush3.bf16.msra.mxu1 %v5193_v60  ;;  %4697 = vmatprep.subr.bf16.mxu0 %v5194_v27 }
 0xd08   :  { %4719 = vmatprep.subr.bf16.mxu1 %v5195_v16 }
 0xd0a   :  { %4698 = vmatpush3.bf16.msra.mxu0 %v5196_v41 }
 0xd0b   :  { %4720 = vmatpush3.bf16.msra.mxu1 %v5197_v20 }
 0xd0d   :  { %3222 = vmatmul.mubr.bf16.vlgmr.msra.gmra.mxu0 %v7439_v47 }
 0xd0e   :  { %3262 = vmatmul.mubr.bf16.vlgmr.msra.gmra.mxu1 %v7441_v51 }
 0xd0f   :  { %5545 = shalt.err (!%p5496_p2)  }
 0xd10   :  { %3280 = dma.hbm_to_vmem [thread:$0]  %s3269_s14, 4096, %s7363_s30, [#allocation3 + $0x1] }
 0xdcd   :  { %v4699_v45 = vpop.f32.mrf.mxu0 }
 0xdce   :  { %v4721_v7 = vpop.f32.mrf.mxu1 }
 0xdcf   :  { %v4700_v38 = vpop.f32.mrf.mxu0 }
 0xdd0   :  { %v4701_v58 = vadd.f32 %v4700_v38, %v4699_v45  ;;  %v4722_v15 = vpop.f32.mrf.mxu1 }
 0xdd1   :  { %v4723_v40 = vadd.f32 %v4722_v15, %v4721_v7  ;;  %v4702_v6 = vpop.f32.mrf.mxu0 }
 0xdd2   :  { %v4724_v50 = vpop.f32.mrf.mxu1 }
 0xdd3   :  { %v7483_v8 = vadd.f32 %v4723_v40, %v4701_v58  ;;  %v4703_v53 = vpop.f32.mrf.mxu0 }
 0xdd4   :  { %v4725_v34 = vpop.f32.mrf.mxu1 }
 0xdd5   :  { %5625 = dma.done.wait [#allocation3], 4096 }
 0xdd6   :  { %5626 = vsyncadd [#allocation3], 4294963200  ;;  %3571 = vmatprep.mubr.bf16.mxu0 %v7443_v61  ;;  %3611 = vmatprep.mubr.bf16.mxu1 %v7445_v32  ;;  %v5198_v44 = vld [vmem:[#allocation2 + $0x78] sm:$0xff]   ;;  %v5202_v21 = vld [vmem:[#allocation2 + $0x70] sm:$0xff]  }
 0xdd7   :  { %v5199_v39 = vld [vmem:[#allocation2 + $0xf8] sm:$0xff]   ;;  %4727 = vmatprep.subr.bf16.mxu0 %v5198_v44  ;;  %v5203_v24 = vld [vmem:[#allocation2 + $0xf0] sm:$0xff]   ;;  %v5206_v28 = vld [vmem:[#allocation2 + $0x68] sm:$0xff]  }
 0xdd8   :  { %v5200_v33 = vld [vmem:[#allocation2 + $0x38] sm:$0xff]   ;;  %4749 = vmatprep.subr.bf16.mxu1 %v5199_v39  ;;  %v5204_v30 = vld [vmem:[#allocation2 + $0x30] sm:$0xff]   ;;  %v5207_v26 = vld [vmem:[#allocation2 + $0xe8] sm:$0xff]  }
 0xdd9   :  { %v5201_v29 = vld [vmem:[#allocation2 + $0xb8] sm:$0xff]   ;;  %4728 = vmatpush3.bf16.msra.mxu0 %v5200_v33  ;;  %v5205_v62 = vld [vmem:[#allocation2 + $0xb0] sm:$0xff]   ;;  %v5208_v36 = vld [vmem:[#allocation2 + $0x28] sm:$0xff]  }
 0xdda   :  { %4750 = vmatpush3.bf16.msra.mxu1 %v5201_v29  ;;  %4729 = vmatprep.subr.bf16.mxu0 %v5202_v21  ;;  %v5209_v14 = vld [vmem:[#allocation2 + $0xa8] sm:$0xff]   ;;  %v5210_v31 = vld [vmem:[#allocation2 + $0x60] sm:$0xff]   ;;  %v5214_v49 = vld [vmem:[#allocation2 + $0x58] sm:$0xff]  }
 0xddb   :  { %4751 = vmatprep.subr.bf16.mxu1 %v5203_v24  ;;  %v5211_v48 = vld [vmem:[#allocation2 + $0xe0] sm:$0xff]   ;;  %v5215_v18 = vld [vmem:[#allocation2 + $0xd8] sm:$0xff]   ;;  %v5218_v22 = vld [vmem:[#allocation2 + $0x50] sm:$0xff]  }
 0xddc   :  { %v5212_v46 = vld [vmem:[#allocation2 + $0x20] sm:$0xff]   ;;  %v5216_v17 = vld [vmem:[#allocation2 + $0x18] sm:$0xff]   ;;  %v5219_v42 = vld [vmem:[#allocation2 + $0xd0] sm:$0xff]  }
 0xddd   :  { %4730 = vmatpush3.bf16.msra.mxu0 %v5204_v30  ;;  %v5213_v35 = vld [vmem:[#allocation2 + $0xa0] sm:$0xff]   ;;  %v5217_v9 = vld [vmem:[#allocation2 + $0x98] sm:$0xff]   ;;  %v5220_v12 = vld [vmem:[#allocation2 + $0x10] sm:$0xff]  }
 0xdde   :  { %4752 = vmatpush3.bf16.msra.mxu1 %v5205_v62  ;;  %4731 = vmatprep.subr.bf16.mxu0 %v5206_v28  ;;  %v5221_v3 = vld [vmem:[#allocation2 + $0x90] sm:$0xff]   ;;  %v5222_v56 = vld [vmem:[#allocation2 + $0x48] sm:$0xff]   ;;  %v5226_v52 = vld [vmem:[#allocation2 + $0x40] sm:$0xff]  }
 0xddf   :  { %4753 = vmatprep.subr.bf16.mxu1 %v5207_v26  ;;  %v5223_v13 = vld [vmem:[#allocation2 + $0xc8] sm:$0xff]   ;;  %v5227_v5 = vld [vmem:[#allocation2 + $0xc0] sm:$0xff]  }
 0xde0   :  { %v5224_v4 = vld [vmem:[#allocation2 + $0x8] sm:$0xff]   ;;  %v5228_v23 = vld [vmem:[#allocation2] sm:$0xff]  }
 0xde1   :  { %4732 = vmatpush3.bf16.msra.mxu0 %v5208_v36  ;;  %v5225_v54 = vld [vmem:[#allocation2 + $0x88] sm:$0xff]   ;;  %v5229_v1 = vld [vmem:[#allocation2 + $0x80] sm:$0xff]  }
 0xde2   :  { %4754 = vmatpush3.bf16.msra.mxu1 %v5209_v14  ;;  %4733 = vmatprep.subr.bf16.mxu0 %v5210_v31 }
 0xde3   :  { %4755 = vmatprep.subr.bf16.mxu1 %v5211_v48 }
 0xde5   :  { %4734 = vmatpush3.bf16.msra.mxu0 %v5212_v46 }
 0xde6   :  { %4756 = vmatpush3.bf16.msra.mxu1 %v5213_v35  ;;  %4735 = vmatprep.subr.bf16.mxu0 %v5214_v49 }
 0xde7   :  { %4757 = vmatprep.subr.bf16.mxu1 %v5215_v18 }
 0xde9   :  { %4736 = vmatpush3.bf16.msra.mxu0 %v5216_v17 }
 0xdea   :  { %4758 = vmatpush3.bf16.msra.mxu1 %v5217_v9  ;;  %4737 = vmatprep.subr.bf16.mxu0 %v5218_v22 }
 0xdeb   :  { %4759 = vmatprep.subr.bf16.mxu1 %v5219_v42 }
 0xded   :  { %4738 = vmatpush3.bf16.msra.mxu0 %v5220_v12 }
 0xdee   :  { %4760 = vmatpush3.bf16.msra.mxu1 %v5221_v3  ;;  %4739 = vmatprep.subr.bf16.mxu0 %v5222_v56 }
 0xdef   :  { %4761 = vmatprep.subr.bf16.mxu1 %v5223_v13 }
 0xdf1   :  { %4740 = vmatpush3.bf16.msra.mxu0 %v5224_v4 }
 0xdf2   :  { %4762 = vmatpush3.bf16.msra.mxu1 %v5225_v54  ;;  %4741 = vmatprep.subr.bf16.mxu0 %v5226_v52 }
 0xdf3   :  { %4763 = vmatprep.subr.bf16.mxu1 %v5227_v5 }
 0xdf5   :  { %4742 = vmatpush3.bf16.msra.mxu0 %v5228_v23 }
 0xdf6   :  { %4764 = vmatpush3.bf16.msra.mxu1 %v5229_v1 }
 0xdf8   :  { %3572 = vmatmul.mubr.bf16.vlgmr.msra.gmra.mxu0 %v7439_v47 }
 0xdf9   :  { %3612 = vmatmul.mubr.bf16.vlgmr.msra.gmra.mxu1 %v7441_v51 }
 0xeb8   :  { %v4743_v63 = vpop.f32.mrf.mxu0 }
 0xeb9   :  { %v4765_v43 = vpop.f32.mrf.mxu1 }
 0xeba   :  { %v4744_v19 = vpop.f32.mrf.mxu0 }
 0xebb   :  { %v4745_v0 = vadd.f32 %v4744_v19, %v4743_v63  ;;  %v4766_v37 = vpop.f32.mrf.mxu1 }
 0xebc   :  { %v4767_v55 = vadd.f32 %v4766_v37, %v4765_v43  ;;  %v4746_v57 = vpop.f32.mrf.mxu0 }
 0xebd   :  { %v4768_v60 = vpop.f32.mrf.mxu1 }
 0xebe   :  { %v7489_v27 = vadd.f32 %v4767_v55, %v4745_v0  ;;  %v4747_v16 = vpop.f32.mrf.mxu0 }
 0xebf   :  { %v4769_v41 = vpop.f32.mrf.mxu1 }
 0xec0   :  { %5627 = dma.done.wait [#allocation3 + $0x1], 4096 }
 0xec1   :  { %5628 = vsyncadd [#allocation3 + $0x1], 4294963200  ;;  %3909 = vmatprep.mubr.bf16.mxu0 %v7443_v61  ;;  %3949 = vmatprep.mubr.bf16.mxu1 %v7445_v32  ;;  %v5230_v20 = vld [vmem:[#allocation2 + $0x178] sm:$0xff]   ;;  %v5234_v58 = vld [vmem:[#allocation2 + $0x170] sm:$0xff]   ;;  %v7799_v9 = vmov 0.0   ;;  %v3957_v22 = vadd.f32 %v7468_v25, %v7447_v2  ;;  %v3958_v42 = vadd.f32 %v7483_v8, %v7451_v10  ;;  %v3959_v52 = vadd.f32 %v7489_v27, %v7449_v11  ;;  %s7800_s12 = sld [smem:[#allocation86_spill]] }
 0xec2   :  { %v5231_v45 = vld [vmem:[#allocation2 + $0x1f8] sm:$0xff]   ;;  %4771 = vmatprep.subr.bf16.mxu0 %v5230_v20  ;;  %v5235_v15 = vld [vmem:[#allocation2 + $0x1f0] sm:$0xff]   ;;  %v5238_v50 = vld [vmem:[#allocation2 + $0x168] sm:$0xff]   ;;  %vm5660_vm0 = vmmov 0   ;;  %s7801_s21 = sld [smem:[#allocation87_spill]]  ;;  %vm4173_vm1 = vcmask 64512  }
 0xec3   :  { %v5232_v7 = vld [vmem:[#allocation2 + $0x138] sm:$0xff]   ;;  %4793 = vmatprep.subr.bf16.mxu1 %v5231_v45  ;;  %v5236_v40 = vld [vmem:[#allocation2 + $0x130] sm:$0xff]   ;;  %v5239_v61 = vld [vmem:[#allocation2 + $0x1e8] sm:$0xff]   ;;  %v3961_v12 = vsub.f32 0.0, %v3957_v22  ;;  %v3966_v3 = vsub.f32 0.0, %v3958_v42  ;;  %s7802_s22 = sld [smem:[#allocation88_spill]] }
 0xec4   :  { %v5233_v38 = vld [vmem:[#allocation2 + $0x1b8] sm:$0xff]   ;;  %4772 = vmatpush3.bf16.msra.mxu0 %v5232_v7  ;;  %v5237_v6 = vld [vmem:[#allocation2 + $0x1b0] sm:$0xff]   ;;  %v5240_v32 = vld [vmem:[#allocation2 + $0x128] sm:$0xff]   ;;  %s5661_s28 = smov [#allocation24]  }
 0xec5   :  { %4794 = vmatpush3.bf16.msra.mxu1 %v5233_v38  ;;  %4773 = vmatprep.subr.bf16.mxu0 %v5234_v58  ;;  %v5241_v53 = vld [vmem:[#allocation2 + $0x1a8] sm:$0xff]   ;;  %v5242_v34 = vld [vmem:[#allocation2 + $0x160] sm:$0xff]   ;;  %v5246_v29 = vld [vmem:[#allocation2 + $0x158] sm:$0xff]   ;;  %v3962_v56 = vmul.f32 1.442695, %v3961_v12  ;;  %s4265_s14 = sshll.u32 %s5661_s28, 4  ;;  %s4266_s14 = int_to_ptr.vmem [resolvable:$true] %s4265_s14 }
 0xec6   :  { %4795 = vmatprep.subr.bf16.mxu1 %v5235_v15  ;;  %v5243_v44 = vld [vmem:[#allocation2 + $0x1e0] sm:$0xff]   ;;  %v5247_v21 = vld [vmem:[#allocation2 + $0x1d8] sm:$0xff]   ;;  %v5250_v62 = vld [vmem:[#allocation2 + $0x150] sm:$0xff]   ;;  %v3967_v13 = vmul.f32 1.442695, %v3966_v3  ;;  %s5547_s7 = scalar_lea.vmem %s4266_s14, 16  ;;  %p5552_p4 = scmp.lt.s32.totalorder %s4266_s14, %s4266_s14 }
 0xec7   :  { %v5244_v39 = vld [vmem:[#allocation2 + $0x120] sm:$0xff]   ;;  %v5248_v24 = vld [vmem:[#allocation2 + $0x118] sm:$0xff]   ;;  %v5251_v28 = vld [vmem:[#allocation2 + $0x1d0] sm:$0xff]   ;;  %5270 = vpow2.f32 %v3962_v56  ;;  %p5548_p3 = scmp.ne.s32.totalorder %s4266_s14, %s5547_s7  ;;  %s5551_s30 = scalar_lea.vmem %s4266_s14, 32 }
 0xec8   :  { %4774 = vmatpush3.bf16.msra.mxu0 %v5236_v40  ;;  %v5245_v33 = vld [vmem:[#allocation2 + $0x1a0] sm:$0xff]   ;;  %v5249_v30 = vld [vmem:[#allocation2 + $0x198] sm:$0xff]   ;;  %v5252_v26 = vld [vmem:[#allocation2 + $0x110] sm:$0xff]   ;;  %5272 = vpow2.f32 %v3967_v13  ;;  %p5553_p5 = scmp.lt.s32.totalorder %s5551_s30, %s5547_s7 }
 0xec9   :  { %4796 = vmatpush3.bf16.msra.mxu1 %v5237_v6  ;;  %4775 = vmatprep.subr.bf16.mxu0 %v5238_v50  ;;  %v5253_v36 = vld [vmem:[#allocation2 + $0x190] sm:$0xff]   ;;  %v5254_v14 = vld [vmem:[#allocation2 + $0x148] sm:$0xff]   ;;  %v5258_v35 = vld [vmem:[#allocation2 + $0x140] sm:$0xff]  }
 0xeca   :  { %4797 = vmatprep.subr.bf16.mxu1 %v5239_v61  ;;  %v5255_v31 = vld [vmem:[#allocation2 + $0x1c8] sm:$0xff]   ;;  %v5259_v49 = vld [vmem:[#allocation2 + $0x1c0] sm:$0xff]   ;;  %v5263_v2 = vld [vmem:[%s7800_s12 + $0x30] sm:$0xff]   ;;  %p5554_p6 = por %p5553_p5, %p5552_p4 }
 0xecb   :  { %v5256_v48 = vld [vmem:[#allocation2 + $0x108] sm:$0xff]   ;;  %v5260_v18 = vld [vmem:[#allocation2 + $0x100] sm:$0xff]   ;;  %v5266_v19 = vld [vmem:[%s7800_s12 + $0x18] sm:$0xff]  }
 0xecc   :  { %4776 = vmatpush3.bf16.msra.mxu0 %v5240_v32  ;;  %v5257_v46 = vld [vmem:[#allocation2 + $0x188] sm:$0xff]   ;;  %v5261_v17 = vld [vmem:[#allocation2 + $0x180] sm:$0xff]   ;;  %v5267_v37 = vld [vmem:[%s7800_s12 + $0x10] sm:$0xff]   ;;  %p5555_p7 = pnand %p5554_p6, %p5548_p3 }
 0xecd   :  { %4798 = vmatpush3.bf16.msra.mxu1 %v5241_v53  ;;  %4777 = vmatprep.subr.bf16.mxu0 %v5242_v34  ;;  %v5264_v11 = vld [vmem:[%s7800_s12 + $0x28] sm:$0xff]   ;;  %v3977_v25 = vld [vmem:[#allocation14] sm:$0x1] }
 0xece   :  { %4799 = vmatprep.subr.bf16.mxu1 %v5243_v44  ;;  %v5265_v1 = vld [vmem:[%s7800_s12 + $0x20] sm:$0xff]   ;;  %v5268_v55 = vld [vmem:[%s7800_s12 + $0x8] sm:$0xff]  }
 0xecf   :  { %v5269_v57 = vld [vmem:[%s7800_s12] sm:$0xff]  }
 0xed0   :  { %4778 = vmatpush3.bf16.msra.mxu0 %v5244_v39 }
 0xed1   :  { %4800 = vmatpush3.bf16.msra.mxu1 %v5245_v33  ;;  %4779 = vmatprep.subr.bf16.mxu0 %v5246_v29  ;;  %v4095_v29 = vld [vmem:[%s7801_s21 + $0x18] sm:$0xff] }
 0xed2   :  { %4801 = vmatprep.subr.bf16.mxu1 %v5247_v21  ;;  %v4093_v21 = vld [vmem:[%s7801_s21 + $0x8] sm:$0xff] }
 0xed4   :  { %4780 = vmatpush3.bf16.msra.mxu0 %v5248_v24  ;;  %v5271_v4 = vpop.eup %5270  ;;  %v4092_v24 = vld [vmem:[%s7801_s21] sm:$0xff] }
 0xed5   :  { %4802 = vmatpush3.bf16.msra.mxu1 %v5249_v30  ;;  %4781 = vmatprep.subr.bf16.mxu0 %v5250_v62  ;;  %v5273_v54 = vpop.eup %5272  ;;  %v4171_v30 = vld [vmem:[%s7802_s22] sm:$0xff]  ;;  %v4002_v62 = vld [vmem:[#allocation20] sm:$0x1] }
 0xed6   :  { %4803 = vmatprep.subr.bf16.mxu1 %v5251_v28  ;;  %v3969_v5 = vadd.f32 1.0, %v5273_v54 }
 0xed8   :  { %4782 = vmatpush3.bf16.msra.mxu0 %v5252_v26 }
 0xed9   :  { %4804 = vmatpush3.bf16.msra.mxu1 %v5253_v36  ;;  %4783 = vmatprep.subr.bf16.mxu0 %v5254_v14 }
 0xeda   :  { %4805 = vmatprep.subr.bf16.mxu1 %v5255_v31 }
 0xedc   :  { %4784 = vmatpush3.bf16.msra.mxu0 %v5256_v48 }
 0xedd   :  { %4806 = vmatpush3.bf16.msra.mxu1 %v5257_v46  ;;  %4785 = vmatprep.subr.bf16.mxu0 %v5258_v35  ;;  %v4096_v46 = vld [vmem:[#allocation22] sm:$0x1] }
 0xede   :  { %4807 = vmatprep.subr.bf16.mxu1 %v5259_v49 }
 0xee0   :  { %4786 = vmatpush3.bf16.msra.mxu0 %v5260_v18 }
 0xee1   :  { %4808 = vmatpush3.bf16.msra.mxu1 %v5261_v17  ;;  %4883 = vmatprep.subr.bf16.mxu0 %v7799_v9 }
 0xee2   :  { %4914 = vmatprep.subr.mxu1 %v7799_v9 }
 0xee3   :  { %3910 = vmatmul.mubr.bf16.vlgmr.msra.gmra.mxu0 %v7439_v47  ;;  %v3964_v47 = vadd.f32 1.0, %v5271_v4 }
 0xee4   :  { %3950 = vmatmul.mubr.bf16.vlgmr.msra.gmra.mxu1 %v7441_v51  ;;  %v5262_v51 = vld [vmem:[%s7800_s12 + $0x38] sm:$0xff]   ;;  %4899 = vmatprep.mubr.msk.bf16.mxu0 %vm5660_vm0, %v7799_v9 }
 0xee5   :  { %5274 = vrcp.f32 %v3964_v47  ;;  %4884 = vmatpush3.bf16.msra.mxu0 %v5262_v51  ;;  %4916 = vmatprep.mubr.msk.f32.mxu1 %vm5660_vm0, %v7799_v9 }
 0xee6   :  { %5276 = vrcp.f32 %v3969_v5  ;;  %4885 = vmatprep.subr.bf16.mxu0 %v7799_v9  ;;  %4915 = vmatpush3.msra.mxu1 %v4171_v30 }
 0xee7   :  { %5278 = vtanh.f32 %v3959_v52 }
 0xee9   :  { %4886 = vmatpush3.bf16.msra.mxu0 %v5263_v2 }
 0xeea   :  { %4887 = vmatprep.subr.bf16.mxu0 %v7799_v9 }
 0xeed   :  { %4888 = vmatpush3.bf16.msra.mxu0 %v5264_v11 }
 0xeee   :  { %4889 = vmatprep.subr.bf16.mxu0 %v7799_v9 }
 0xef1   :  { %4890 = vmatpush3.bf16.msra.mxu0 %v5265_v1 }
 0xef2   :  { %v5275_v10 = vpop.eup %5274  ;;  %4891 = vmatprep.subr.bf16.mxu0 %v7799_v9 }
 0xef3   :  { %v5277_v8 = vpop.eup %5276 }
 0xef4   :  { %v5279_v23 = vpop.eup %5278  ;;  %v3978_v63 = vmul.f32 %v5277_v8, %v3977_v25 }
 0xef5   :  { %v3979_v43 = vmul.f32 %v5279_v23, %v5275_v10  ;;  %4892 = vmatpush3.bf16.msra.mxu0 %v5266_v19 }
 0xef6   :  { %4893 = vmatprep.subr.bf16.mxu0 %v7799_v9 }
 0xef7   :  { %v3980_v0 = vadd.f32 %v3979_v43, %v3978_v63 }
 0xef9   :  { %3983 = vst [vmem:[#allocation26] sm:$0x1] %v3980_v0  ;;  %4894 = vmatpush3.bf16.msra.mxu0 %v5267_v37 }
 0xefa   :  { %4895 = vmatprep.subr.bf16.mxu0 %v7799_v9 }
 0xefd   :  { %4896 = vmatpush3.bf16.msra.mxu0 %v5268_v55 }
 0xefe   :  { %4897 = vmatprep.subr.bf16.mxu0 %v7799_v9 }
 0xf01   :  { %4898 = vmatpush3.bf16.msra.mxu0 %v5269_v57 }
 0xf02   :  { %4903 = vmatprep.subr.mxu0 %v7799_v9 }
 0xfa3   :  { %v4787_v60 = vpop.f32.mrf.mxu0 }
 0xfa4   :  { %v4809_v27 = vpop.f32.mrf.mxu1 }
 0xfa5   :  { %v4788_v16 = vpop.f32.mrf.mxu0 }
 0xfa6   :  { %v4789_v41 = vadd.f32 %v4788_v16, %v4787_v60  ;;  %v4810_v20 = vpop.f32.mrf.mxu1 }
 0xfa7   :  { %v4811_v45 = vadd.f32 %v4810_v20, %v4809_v27  ;;  %v4790_v7 = vpop.f32.mrf.mxu0 }
 0xfa8   :  { %v4812_v38 = vpop.f32.mrf.mxu1 }
 0xfa9   :  { %v3952_v58 = vadd.f32 %v4811_v45, %v4789_v41  ;;  %v4791_v15 = vpop.f32.mrf.mxu0 }
 0xfaa   :  { %v4813_v40 = vpop.f32.mrf.mxu1 }
 0xfab   :  { %v3960_v6 = vadd.f32 %v3952_v58, %v7453_v59  ;;  %v4094_v59 = vld [vmem:[%s7801_s21 + $0x10] sm:$0xff] }
 0xfad   :  { %v3972_v50 = vsub.f32 0.0, %v3960_v6 }
 0xfaf   :  { %v3973_v61 = vmul.f32 1.442695, %v3972_v50 }
 0xfb1   :  { %5280 = vpow2.f32 %v3973_v61 }
 0xfb2   :  { %5282 = vtanh.f32 %v3980_v0 }
 0xfbe   :  { %v5281_v32 = vpop.eup %5280 }
 0xfbf   :  { %v3975_v53 = vadd.f32 1.0, %v5281_v32  ;;  %v5283_v34 = vpop.eup %5282 }
 0xfc1   :  { %5284 = vrcp.f32 %v3975_v53 }
 0xfce   :  { %v5285_v44 = vpop.eup %5284 }
 0xfcf   :  { %v3982_v39 = vmul.f32 %v5285_v44, %v5283_v34 }
 0xfd1   :  { %v3985_v33 = vpack.c.bf16 %v3982_v39, %v3982_v39  ;;  %3984 = vst [vmem:[#allocation24] sm:$0x1] %v3982_v39 }
 0xfd3   :  { %4900 = vmatmul.mubr.bf16.vlgmr.msra.gmra.mxu0 %v3985_v33 }
 0xfd4   :  { %4904 = vmatpush3.msra.mxu0 %v4095_v29  ;;  %4911 = vmatprep.mubr.msk.f32.mxu0 %vm5660_vm0, %v7799_v9 }
 0xfd5   :  { %4905 = vmatprep.subr.mxu0 %v7799_v9 }
 0xfd6   :  { %4906 = vmatpush3.msra.mxu0 %v4094_v59 }
 0xfd7   :  { %4907 = vmatprep.subr.mxu0 %v7799_v9 }
 0xfd8   :  { %4908 = vmatpush3.msra.mxu0 %v4093_v21 }
 0xfd9   :  { %4909 = vmatprep.subr.mxu0 %v7799_v9 }
 0xfda   :  { %4910 = vmatpush3.msra.mxu0 %v4092_v24 }
0x1093   :  { %v4085_v28 = vpop.f32.mrf.mxu0 }
0x1094   :  { %v4086_v26 = vadd.f32 %v4085_v28, %v4002_v62 }
0x1095   :  { %v4901_v36 = vpop.f32.mrf.mxu0 }
0x1096   :  { %v4091_v14 = vmax.f32 %v4086_v26, 0.0 }
0x1097   :  { %v4088_v31 = vpop.f32.mrf.mxu0 }
0x1098   :  { %4912 = vmatmul.mubr.msk.f32.vlgmr.msra.gmra.mxu0 %vm1895_vm14, %v4091_v14 }
0x1099   :  { %v4902_v48 = vpop.f32.mrf.mxu0 }
0x1158   :  { %v4166_v35 = vpop.f32.mrf.mxu0 }
0x1159   :  { %v4167_v49 = vadd.f32 %v4166_v35, %v4096_v46 }
0x115a   :  { %v4913_v18 = vpop.f32.mrf.mxu0 }
0x115b   :  { %v4170_v17 = vmax.f32 %v4167_v49, 0.0 }
0x115d   :  { %4917 = vmatmul.mubr.msk.f32.vlgmr.msra.gmra.mxu1 %vm4173_vm1, %v4170_v17 }
0x115e   :  { %5558 = shalt.err (!%p5555_p7)
}
0x115f   :  { %s7803_s4 = sld [smem:[#allocation91_spill]]  ;;  %s5662_s0 = smov [#allocation26]  }
0x1160   :  { %s4275_s1 = sshll.u32 %s5662_s0, 4  ;;  %s4276_s1 = int_to_ptr.vmem [resolvable:$true] %s4275_s1 }
0x1161   :  { %s5567_s26 = scalar_lea.vmem %s4276_s1, 16  ;;  %s5571_s3 = scalar_lea.vmem %s4276_s1, 32 }
0x1162   :  { %p5568_p8 = scmp.ne.s32.totalorder %s4276_s1, %s5567_s26  ;;  %p5572_p9 = scmp.lt.s32.totalorder %s4276_s1, %s4276_s1 }
0x1163   :  { %p5573_p10 = scmp.lt.s32.totalorder %s5571_s3, %s5567_s26 }
0x1165   :  { %4268 = dma.vmem_to_hbm [thread:$0]  %s4266_s14, 16, %s7803_s4, [#allocation25]  }
0x1166   :  { %p5574_p11 = por %p5573_p10, %p5572_p9 }
0x1168   :  { %p5575_p12 = pnand %p5574_p11, %p5568_p8 }
0x116a   :  { %5578 = shalt.err (!%p5575_p12)
}
0x116b   :  { %s7804_s6 = sld [smem:[#allocation92_spill]]  ;;  %s5663_s11 = smov [#allocation23]   ;;  %vm4247_vm2 = vcmask 8192  }
0x116c   :  { %s7805_s10 = sld [smem:[#allocation89_spill]]  ;;  %s4255_s13 = sshll.u32 %s5663_s11, 4  ;;  %s4256_s13 = int_to_ptr.vmem [resolvable:$true] %s4255_s13 }
0x116d   :  { %s5587_s16 = scalar_lea.vmem %s4256_s13, 16  ;;  %s5591_s20 = scalar_lea.vmem %s4256_s13, 32 }
0x116e   :  { %p5588_p13 = scmp.ne.s32.totalorder %s4256_s13, %s5587_s16  ;;  %p5592_p0 = scmp.lt.s32.totalorder %s4256_s13, %s4256_s13 }
0x116f   :  { %p5593_p1 = scmp.lt.s32.totalorder %s5591_s20, %s5587_s16 }
0x1171   :  { %4278 = dma.vmem_to_hbm [thread:$0]  %s4276_s1, 16, %s7804_s6, [#allocation25]  }
0x1172   :  { %v4172_v9 = vld [vmem:[%s7805_s10] sm:$0x1]  ;;  %p5594_p2 = por %p5593_p1, %p5592_p0 }
0x1174   :  { %p5595_p3 = pnand %p5594_p2, %p5588_p13 }
0x121d   :  { %v4243_v22 = vpop.f32.mrf.mxu1 }
0x121e   :  { %v4244_v42 = vadd.f32 %v4243_v22, %v4172_v9 }
0x121f   :  { %v4918_v12 = vpop.f32.mrf.mxu1 }
0x1220   :  { %4248 = vst.msk [vmem:[#allocation23] sm:$0x1] %vm4247_vm2, %v4244_v42 }
0x1221   :  { %5598 = shalt.err (!%p5595_p3)
}
0x1222   :  { %s7806_s24 = sld [smem:[#allocation90_spill]] }
0x1228   :  { %4258 = dma.vmem_to_hbm [thread:$0]  %s4256_s13, 16, %s7806_s24, [#allocation6]  }
0x1229   :  { %5629 = dma.done.wait [#allocation6], 16  }
0x122a   :  { %5630 = vsyncadd [#allocation6], 4294967280 }
0x122b   :  { %5631 = dma.done.wait [#allocation25], 32  }
0x122c   :  { %5632 = vsyncadd [#allocation25], 4294967264 }
0x122d   :  { %4288 = vsyncpa [#allocation5], 1 }
0x122e   :  { %4289 = vsyncpa [#allocation15], 1 }
0x122f   :  { %4290 = vsyncpa [#allocation18], 1 }
0x1230   :  { %4291 = vsyncpa [#allocation21], 1 }
0x1231   :  { %4292 = vsyncpa [#allocation6], 1 }
0x1232   :  { %4293 = vsyncpa [#allocation25], 1 }
0x1233   :  { %4294 = vsyncpa [#allocation7], 1 }
0x1234   :  { %4295 = vsyncpa [#allocation9], 1 }
0x1235   :  { %4296 = vsyncpa [#allocation12], 1 }
0x1236   :  { %4297 = vsyncmov [#allocation3] }
0x1239   :  { %s4298_s5 = vpop.sfrf %4297 }
0x123a   :  { %p4611_p4 = scmp.ne.s32.totalorder %s4298_s5, 0 }
0x123c   :  { %4302 = shalt.err (%p4611_p4)  }
0x123d   :  { %4304 = vsyncmov [#allocation3 + $0x1] }
0x1240   :  { %s4305_s15 = vpop.sfrf %4304 }
0x1241   :  { %p4612_p5 = scmp.ne.s32.totalorder %s4305_s15, 0 }
0x1243   :  { %4309 = shalt.err (%p4612_p5)  }

</bundles_post_ra>
